<compile_context>
chip_gen: v6e
topology: v6e:2x2x1
jax: 0.10.0
libtpu: 0.0.40
codegen_flags: <defaults>
</compile_context>

<pallas_src>
import functools

import jax
import jax.numpy as jnp
from jax.experimental import pallas as pl
from jax.experimental.pallas import tpu as pltpu

jax.config.update("jax_default_matmul_precision", "float32")


# ----------------------------------------------------------------------------- kernel

def _cab_kernel(
        x_ref, y_ref, mask_ref,
        lnq_w, lnq_b, lnkv_w, lnkv_b, lnout_w, lnout_b,
        w_kv, b_kv, w_kvdw, b_kvdw, w_q, b_q,
        temp_pc, head_mask,
        w_proj, b_proj, w_f0x, w_f0v, b_f0, w_f1dw, b_f1dw, w_f3, b_f3,
        out_ref, *, H, W):
    C = x_ref.shape[1]
    HW = H * W

    x = x_ref[0]          # (C, HW)  -- HW on the lane axis (lane dense)
    y = y_ref[0]          # (C, HW)

    # ---- helpers -------------------------------------------------------------
    def taps9(z):
        # 9 zero-padded 3x3 neighborhood taps of z (Cz, HW), built with lane rolls.
        out = []
        t = 0
        for dh in (-1, 0, 1):
            for dw in (-1, 0, 1):
                s = dh * W + dw
                sh = z if s == 0 else pltpu.roll(z, (-s) % HW, axis=1)
                out.append(sh * mask_ref[t])          # mask_ref[t]: (1, HW)
                t += 1
        return out

    def layernorm(z, w_r, b_r):
        # WithBias_LayerNorm over channels (sublane axis), eps=1e-5, biased var.
        mu = jnp.mean(z, axis=0, keepdims=True)
        zm = z - mu
        var = jnp.mean(zm * zm, axis=0, keepdims=True)
        return zm * jax.lax.rsqrt(var + 1e-5) * w_r[...] + b_r[...]

    def conv1x1(z, w_r, b_r):
        return jnp.dot(w_r[...], z, preferred_element_type=jnp.float32) + b_r[...]

    def dwconv3x3(z, w_r, b_r):
        ts = taps9(z)
        acc = b_r[...]                                 # (Cz, 1)
        for t in range(9):
            acc = acc + ts[t] * w_r[t]                 # w_r[t]: (Cz, 1)
        return acc

    def conv3x3(z, w_r, b_r):
        # single MXU matmul with K = 9*Cz (taps stacked on the sublane axis)
        tall = jnp.concatenate(taps9(z), axis=0)       # (9*Cz, HW)
        return jnp.dot(w_r[...], tall, preferred_element_type=jnp.float32) + b_r[...]

    def erf(u):
        # Abramowitz & Stegun 7.1.26, max abs error 1.5e-7.
        a1, a2, a3, a4, a5 = 0.254829592, -0.284496736, 1.421413741, -1.453152027, 1.061405429
        pp = 0.3275911
        z = jnp.abs(u)
        t = 1.0 / (1.0 + pp * z)
        poly = ((((a5 * t + a4) * t + a3) * t + a2) * t + a1) * t
        yv = 1.0 - poly * jnp.exp(-z * z)
        return jnp.where(u >= 0, yv, -yv)

    def gelu(u):                                       # exact (erf) GELU
        return 0.5 * u * (1.0 + erf(u * 0.7071067811865476))

    # ---- LayerNorms ------------------------------------------------------------
    xn = layernorm(x, lnq_w, lnq_b)
    yn = layernorm(y, lnkv_w, lnkv_b)

    # ---- CrossChannelAttention ---------------------------------------------------
    kv = dwconv3x3(conv1x1(yn, w_kv, b_kv), w_kvdw, b_kvdw)   # (2C, HW)
    k = kv[:C]
    v = kv[C:]
    q = conv3x3(xn, w_q, b_q)                                  # (C, HW)

    # L2 normalize over HW (EUP rsqrt); eps matches F.normalize (1e-12 on the norm).
    qn = q * jax.lax.rsqrt(jnp.maximum(jnp.sum(q * q, axis=1, keepdims=True), 1e-24))
    kn = k * jax.lax.rsqrt(jnp.maximum(jnp.sum(k * k, axis=1, keepdims=True), 1e-24))

    # Per-head attention done jointly: block-diagonal head mask + per-channel temp.
    attn = jax.lax.dot_general(qn, kn, (((1,), (1,)), ((), ())),
                               preferred_element_type=jnp.float32)       # (C, C)
    attn = attn * temp_pc[...]
    e = jnp.exp(attn - jnp.max(attn, axis=1, keepdims=True)) * head_mask[...]
    se = jnp.sum(e, axis=1, keepdims=True)
    inv = pl.reciprocal(se, approx=True)
    inv = inv * (2.0 - se * inv)                       # one Newton step -> ~f32 exact
    attn_out = jnp.dot(e * inv, v, preferred_element_type=jnp.float32)   # (C, HW)

    o = conv1x1(attn_out, w_proj, b_proj)

    # ---- norm_out + FFN (concat folded into two matmuls) -------------------------
    vo = layernorm(o, lnout_w, lnout_b)
    h1 = (jnp.dot(w_f0x[...], xn, preferred_element_type=jnp.float32)
          + jnp.dot(w_f0v[...], vo, preferred_element_type=jnp.float32)
          + b_f0[...])
    h2 = gelu(dwconv3x3(h1, w_f1dw, b_f1dw))
    out_ref[0] = (jnp.dot(w_f3[...], h2, preferred_element_type=jnp.float32)
                  + b_f3[...]).astype(out_ref.dtype)


# ----------------------------------------------------------------------------- wrapper

def _make_tap_masks(H, W):
    hh = jnp.arange(H)[:, None]
    ww = jnp.arange(W)[None, :]
    ms = []
    for dh in (-1, 0, 1):
        for dw in (-1, 0, 1):
            m = ((hh + dh >= 0) & (hh + dh < H) & (ww + dw >= 0) & (ww + dw < W))
            ms.append(m.astype(jnp.float32).reshape(1, H * W))
    return jnp.stack(ms, axis=0)              # (9, 1, HW)


def channel_attention_block_pallas(x_nchw, y_nchw, P, num_heads):
    B, C, H, W = x_nchw.shape
    HW = H * W
    if C % 8 != 0 or HW % 128 != 0 or C % num_heads != 0:
        raise ValueError("this implementation assumes C % 8 == 0, H*W % 128 == 0, "
                         "C % num_heads == 0")
    ch = C // num_heads

    x3 = x_nchw.reshape(B, C, HW)             # NCHW -> (B, C, HW): free reshape
    y3 = y_nchw.reshape(B, C, HW)
    masks = _make_tap_masks(H, W)

    col = lambda a: a.reshape(-1, 1)
    temp_pc = jnp.repeat(P['temperature'].reshape(num_heads), ch).reshape(C, 1)
    cidx = jnp.arange(C)
    head_mask = ((cidx[:, None] // ch) == (cidx[None, :] // ch)).astype(jnp.float32)
    w_q2d = P['w_q'].reshape(C, 9 * C)
    w_f0x = P['w_ffn0'][:, :C]
    w_f0v = P['w_ffn0'][:, C:]

    def full(shape):
        return pl.BlockSpec(shape, lambda b, _s=len(shape): (0,) * _s)

    kernel = functools.partial(_cab_kernel, H=H, W=W)

    out3 = pl.pallas_call(
        kernel,
        out_shape=jax.ShapeDtypeStruct((B, C, HW), x_nchw.dtype),
        grid=(B,),
        in_specs=[
            pl.BlockSpec((1, C, HW), lambda b: (b, 0, 0)),
            pl.BlockSpec((1, C, HW), lambda b: (b, 0, 0)),
            full((9, 1, HW)),
            full((C, 1)), full((C, 1)), full((C, 1)),
            full((C, 1)), full((C, 1)), full((C, 1)),
            full((2 * C, C)), full((2 * C, 1)),
            full((9, 2 * C, 1)), full((2 * C, 1)),
            full((C, 9 * C)), full((C, 1)),
            full((C, 1)), full((C, C)),
            full((C, C)), full((C, 1)),
            full((C, C)), full((C, C)), full((C, 1)),
            full((9, C, 1)), full((C, 1)),
            full((C, C)), full((C, 1)),
        ],
        out_specs=pl.BlockSpec((1, C, HW), lambda b: (b, 0, 0)),
        compiler_params=pltpu.CompilerParams(dimension_semantics=("parallel",)),
    )(
        x3, y3, masks,
        col(P['ln_q_w']), col(P['ln_q_b']),
        col(P['ln_kv_w']), col(P['ln_kv_b']),
        col(P['ln_out_w']), col(P['ln_out_b']),
        P['w_kv'], col(P['b_kv']),
        P['w_kv_dw'].reshape(9, 2 * C, 1), col(P['b_kv_dw']),
        w_q2d, col(P['b_q']),
        temp_pc, head_mask,
        P['w_proj'], col(P['b_proj']),
        w_f0x, w_f0v, col(P['b_ffn0']),
        P['w_ffn1_dw'].reshape(9, C, 1), col(P['b_ffn1_dw']),
        P['w_ffn3'], col(P['b_ffn3']),
    )
    return out3.reshape(B, C, H, W)


# ----------------------------------------------------------------------------- pure-JAX reference

def _conv2d_ref(x, w_hwio, b, pad, groups=1):
    out = jax.lax.conv_general_dilated(
        x, w_hwio, window_strides=(1, 1), padding=((pad, pad), (pad, pad)),
        dimension_numbers=('NHWC', 'HWIO', 'NHWC'), feature_group_count=groups)
    return out + b.reshape(1, 1, 1, -1)


def ref_forward(x_nchw, y_nchw, P, heads):
    x = jnp.transpose(x_nchw, (0, 2, 3, 1))
    y = jnp.transpose(y_nchw, (0, 2, 3, 1))
    B, H, W, C = x.shape

    def ln(z, w, b):
        mu = z.mean(-1, keepdims=True)
        var = ((z - mu) ** 2).mean(-1, keepdims=True)
        return (z - mu) / jnp.sqrt(var + 1e-5) * w + b

    xn = ln(x, P['ln_q_w'], P['ln_q_b'])
    yn = ln(y, P['ln_kv_w'], P['ln_kv_b'])

    kv = _conv2d_ref(yn, P['w_kv'].T.reshape(1, 1, C, 2 * C), P['b_kv'], 0)
    kv = _conv2d_ref(kv, P['w_kv_dw'].reshape(3, 3, 1, 2 * C), P['b_kv_dw'], 1, groups=2 * C)
    k, v = jnp.split(kv, 2, axis=-1)
    q = _conv2d_ref(xn, P['w_q'].transpose(1, 2, 0).reshape(3, 3, C, C), P['b_q'], 1)

    def hds(t):
        return t.reshape(B, H * W, heads, C // heads).transpose(0, 2, 3, 1)

    qh, kh, vh = hds(q), hds(k), hds(v)
    qn = qh / jnp.maximum(jnp.sqrt((qh * qh).sum(-1, keepdims=True)), 1e-12)
    kn = kh / jnp.maximum(jnp.sqrt((kh * kh).sum(-1, keepdims=True)), 1e-12)
    a = jnp.einsum('bhce,bhde->bhcd', qn, kn) * P['temperature'][None]
    a = jax.nn.softmax(a, axis=-1)
    oh = jnp.einsum('bhcd,bhde->bhce', a, vh)
    o = oh.transpose(0, 3, 1, 2).reshape(B, H, W, C)
    o = _conv2d_ref(o, P['w_proj'].T.reshape(1, 1, C, C), P['b_proj'], 0)
    vo = ln(o, P['ln_out_w'], P['ln_out_b'])
    cat = jnp.concatenate([xn, vo], axis=-1)
    h1 = _conv2d_ref(cat, P['w_ffn0'].T.reshape(1, 1, 2 * C, C), P['b_ffn0'], 0)
    h2 = _conv2d_ref(h1, P['w_ffn1_dw'].reshape(3, 3, 1, C), P['b_ffn1_dw'], 1, groups=C)
    h2 = jax.nn.gelu(h2, approximate=False)
    out = _conv2d_ref(h2, P['w_ffn3'].T.reshape(1, 1, C, C), P['b_ffn3'], 0)
    return jnp.transpose(out, (0, 3, 1, 2))


# ----------------------------------------------------------------------------- params

def init_params(key, C, heads):
    ks = jax.random.split(key, 24)

    def nrm(k, shape, s=0.1):
        return s * jax.random.normal(k, shape, jnp.float32)

    return dict(
        # LayerNorm params (perturbed from PyTorch's ones/zeros init to exercise them)
        ln_q_w=1.0 + nrm(ks[14], (C,)), ln_q_b=nrm(ks[15], (C,), 0.05),
        ln_kv_w=1.0 + nrm(ks[16], (C,)), ln_kv_b=nrm(ks[17], (C,), 0.05),
        ln_out_w=1.0 + nrm(ks[18], (C,)), ln_out_b=nrm(ks[19], (C,), 0.05),
        temperature=1.0 + nrm(ks[20], (heads, 1, 1)),
        # CrossChannelAttention convs (kernel-friendly layouts)
        w_kv=nrm(ks[0], (2 * C, C)), b_kv=nrm(ks[1], (2 * C,), 0.05),
        w_kv_dw=nrm(ks[2], (9, 2 * C)), b_kv_dw=nrm(ks[3], (2 * C,), 0.05),
        w_q=nrm(ks[4], (C, 9, C)), b_q=nrm(ks[5], (C,), 0.05),
        w_proj=nrm(ks[6], (C, C)), b_proj=nrm(ks[7], (C,), 0.05),
        # FFN
        w_ffn0=nrm(ks[8], (C, 2 * C)), b_ffn0=nrm(ks[9], (C,), 0.05),
        w_ffn1_dw=nrm(ks[10], (9, C)), b_ffn1_dw=nrm(ks[11], (C,), 0.05),
        w_ffn3=nrm(ks[12], (C, C)), b_ffn3=nrm(ks[13], (C,), 0.05),
    )


# ----------------------------------------------------------------------------- main

if __name__ == "__main__":
    B, C, H, W = 2, 8, 16, 16
    num_heads = 2
    key = jax.random.PRNGKey(0)
    kx, ky, kp = jax.random.split(key, 3)
    x = jax.random.normal(kx, (B, C, H, W), jnp.float32)
    y = jax.random.normal(ky, (B, C, H, W), jnp.float32)
    P = init_params(kp, C, num_heads)

    fwd = jax.jit(functools.partial(channel_attention_block_pallas, P=P, num_heads=num_heads))
    out = jax.block_until_ready(fwd(x, y))

    ref = ref_forward(x, y, P, num_heads)
    assert out.shape == (B, C, H, W)
    err = float(jnp.max(jnp.abs(out - ref)))
    assert err < 2e-3, f"max abs err {err}"
    print("KERNEL_OK")
</pallas_src>

<mosaic_0001>
module attributes {stable_mosaic.version = 11 : i64} {
  func.func @_cab_kernel(%arg0: i32, %arg1: memref<1x8x256xf32, #tpu.memory_space<vmem>>, %arg2: memref<1x8x256xf32, #tpu.memory_space<vmem>>, %arg3: memref<9x1x256xf32, #tpu.memory_space<vmem>>, %arg4: memref<8x1xf32, #tpu.memory_space<vmem>>, %arg5: memref<8x1xf32, #tpu.memory_space<vmem>>, %arg6: memref<8x1xf32, #tpu.memory_space<vmem>>, %arg7: memref<8x1xf32, #tpu.memory_space<vmem>>, %arg8: memref<8x1xf32, #tpu.memory_space<vmem>>, %arg9: memref<8x1xf32, #tpu.memory_space<vmem>>, %arg10: memref<16x8xf32, #tpu.memory_space<vmem>>, %arg11: memref<16x1xf32, #tpu.memory_space<vmem>>, %arg12: memref<9x16x1xf32, #tpu.memory_space<vmem>>, %arg13: memref<16x1xf32, #tpu.memory_space<vmem>>, %arg14: memref<8x72xf32, #tpu.memory_space<vmem>>, %arg15: memref<8x1xf32, #tpu.memory_space<vmem>>, %arg16: memref<8x1xf32, #tpu.memory_space<vmem>>, %arg17: memref<8x8xf32, #tpu.memory_space<vmem>>, %arg18: memref<8x8xf32, #tpu.memory_space<vmem>>, %arg19: memref<8x1xf32, #tpu.memory_space<vmem>>, %arg20: memref<8x8xf32, #tpu.memory_space<vmem>>, %arg21: memref<8x8xf32, #tpu.memory_space<vmem>>, %arg22: memref<8x1xf32, #tpu.memory_space<vmem>>, %arg23: memref<9x8x1xf32, #tpu.memory_space<vmem>>, %arg24: memref<8x1xf32, #tpu.memory_space<vmem>>, %arg25: memref<8x8xf32, #tpu.memory_space<vmem>>, %arg26: memref<8x1xf32, #tpu.memory_space<vmem>>, %arg27: memref<1x8x256xf32, #tpu.memory_space<vmem>>) attributes {dimension_semantics = [#tpu.dimension_semantics<parallel>], iteration_bounds = array<i64: 2>, scalar_prefetch = 0 : i64, scratch_operands = 0 : i64, tpu.core_type = #tpu.core_type<tc>, window_params = [{transform_indices = @transform_0, window_bounds = array<i64: 1, 8, 256>}, {transform_indices = @transform_1, window_bounds = array<i64: 1, 8, 256>}, {pipeline_mode = #tpu.pipeline_mode<synchronous>, transform_indices = @transform_2, window_bounds = array<i64: 9, 1, 256>}, {pipeline_mode = #tpu.pipeline_mode<synchronous>, transform_indices = @transform_3, window_bounds = array<i64: 8, 1>}, {pipeline_mode = #tpu.pipeline_mode<synchronous>, transform_indices = @transform_4, window_bounds = array<i64: 8, 1>}, {pipeline_mode = #tpu.pipeline_mode<synchronous>, transform_indices = @transform_5, window_bounds = array<i64: 8, 1>}, {pipeline_mode = #tpu.pipeline_mode<synchronous>, transform_indices = @transform_6, window_bounds = array<i64: 8, 1>}, {pipeline_mode = #tpu.pipeline_mode<synchronous>, transform_indices = @transform_7, window_bounds = array<i64: 8, 1>}, {pipeline_mode = #tpu.pipeline_mode<synchronous>, transform_indices = @transform_8, window_bounds = array<i64: 8, 1>}, {pipeline_mode = #tpu.pipeline_mode<synchronous>, transform_indices = @transform_9, window_bounds = array<i64: 16, 8>}, {pipeline_mode = #tpu.pipeline_mode<synchronous>, transform_indices = @transform_10, window_bounds = array<i64: 16, 1>}, {pipeline_mode = #tpu.pipeline_mode<synchronous>, transform_indices = @transform_11, window_bounds = array<i64: 9, 16, 1>}, {pipeline_mode = #tpu.pipeline_mode<synchronous>, transform_indices = @transform_12, window_bounds = array<i64: 16, 1>}, {pipeline_mode = #tpu.pipeline_mode<synchronous>, transform_indices = @transform_13, window_bounds = array<i64: 8, 72>}, {pipeline_mode = #tpu.pipeline_mode<synchronous>, transform_indices = @transform_14, window_bounds = array<i64: 8, 1>}, {pipeline_mode = #tpu.pipeline_mode<synchronous>, transform_indices = @transform_15, window_bounds = array<i64: 8, 1>}, {pipeline_mode = #tpu.pipeline_mode<synchronous>, transform_indices = @transform_16, window_bounds = array<i64: 8, 8>}, {pipeline_mode = #tpu.pipeline_mode<synchronous>, transform_indices = @transform_17, window_bounds = array<i64: 8, 8>}, {pipeline_mode = #tpu.pipeline_mode<synchronous>, transform_indices = @transform_18, window_bounds = array<i64: 8, 1>}, {pipeline_mode = #tpu.pipeline_mode<synchronous>, transform_indices = @transform_19, window_bounds = array<i64: 8, 8>}, {pipeline_mode = #tpu.pipeline_mode<synchronous>, transform_indices = @transform_20, window_bounds = array<i64: 8, 8>}, {pipeline_mode = #tpu.pipeline_mode<synchronous>, transform_indices = @transform_21, window_bounds = array<i64: 8, 1>}, {pipeline_mode = #tpu.pipeline_mode<synchronous>, transform_indices = @transform_22, window_bounds = array<i64: 9, 8, 1>}, {pipeline_mode = #tpu.pipeline_mode<synchronous>, transform_indices = @transform_23, window_bounds = array<i64: 8, 1>}, {pipeline_mode = #tpu.pipeline_mode<synchronous>, transform_indices = @transform_24, window_bounds = array<i64: 8, 8>}, {pipeline_mode = #tpu.pipeline_mode<synchronous>, transform_indices = @transform_25, window_bounds = array<i64: 8, 1>}, {transform_indices = @transform_26, window_bounds = array<i64: 1, 8, 256>}]} {
    %c0 = arith.constant 0 : index
    %c0_0 = arith.constant 0 : index
    %c0_1 = arith.constant 0 : index
    %0 = vector.load %arg1[%c0, %c0_0, %c0_1] : memref<1x8x256xf32, #tpu.memory_space<vmem>>, vector<1x8x256xf32>
    %1 = vector.shape_cast %0 : vector<1x8x256xf32> to vector<8x256xf32>
    %c0_2 = arith.constant 0 : index
    %c0_3 = arith.constant 0 : index
    %c0_4 = arith.constant 0 : index
    %2 = vector.load %arg2[%c0_2, %c0_3, %c0_4] : memref<1x8x256xf32, #tpu.memory_space<vmem>>, vector<1x8x256xf32>
    %3 = vector.shape_cast %2 : vector<1x8x256xf32> to vector<8x256xf32>
    %cst = arith.constant dense<0.000000e+00> : vector<256xf32>
    %4 = vector.multi_reduction <add>, %1, %cst [0] : vector<8x256xf32> to vector<256xf32>
    %5 = vector.shape_cast %4 : vector<256xf32> to vector<1x256xf32>
    %cst_5 = arith.constant 8.000000e+00 : f32
    %6 = vector.broadcast %cst_5 : f32 to vector<1x256xf32>
    %7 = arith.divf %5, %6 : vector<1x256xf32>
    %8 = vector.broadcast %7 : vector<1x256xf32> to vector<8x256xf32>
    %9 = arith.subf %1, %8 : vector<8x256xf32>
    %10 = arith.mulf %9, %9 : vector<8x256xf32>
    %cst_6 = arith.constant dense<0.000000e+00> : vector<256xf32>
    %11 = vector.multi_reduction <add>, %10, %cst_6 [0] : vector<8x256xf32> to vector<256xf32>
    %12 = vector.shape_cast %11 : vector<256xf32> to vector<1x256xf32>
    %cst_7 = arith.constant 8.000000e+00 : f32
    %13 = vector.broadcast %cst_7 : f32 to vector<1x256xf32>
    %14 = arith.divf %12, %13 : vector<1x256xf32>
    %cst_8 = arith.constant 9.99999974E-6 : f32
    %15 = vector.broadcast %cst_8 : f32 to vector<1x256xf32>
    %16 = arith.addf %14, %15 : vector<1x256xf32>
    %17 = math.rsqrt %16 : vector<1x256xf32>
    %18 = vector.broadcast %17 : vector<1x256xf32> to vector<8x256xf32>
    %19 = arith.mulf %9, %18 : vector<8x256xf32>
    %c0_9 = arith.constant 0 : index
    %c0_10 = arith.constant 0 : index
    %20 = vector.load %arg4[%c0_9, %c0_10] : memref<8x1xf32, #tpu.memory_space<vmem>>, vector<8x1xf32>
    %21 = vector.broadcast %20 : vector<8x1xf32> to vector<8x256xf32>
    %22 = arith.mulf %19, %21 : vector<8x256xf32>
    %c0_11 = arith.constant 0 : index
    %c0_12 = arith.constant 0 : index
    %23 = vector.load %arg5[%c0_11, %c0_12] : memref<8x1xf32, #tpu.memory_space<vmem>>, vector<8x1xf32>
    %24 = vector.broadcast %23 : vector<8x1xf32> to vector<8x256xf32>
    %25 = arith.addf %22, %24 : vector<8x256xf32>
    %cst_13 = arith.constant dense<0.000000e+00> : vector<256xf32>
    %26 = vector.multi_reduction <add>, %3, %cst_13 [0] : vector<8x256xf32> to vector<256xf32>
    %27 = vector.shape_cast %26 : vector<256xf32> to vector<1x256xf32>
    %cst_14 = arith.constant 8.000000e+00 : f32
    %28 = vector.broadcast %cst_14 : f32 to vector<1x256xf32>
    %29 = arith.divf %27, %28 : vector<1x256xf32>
    %30 = vector.broadcast %29 : vector<1x256xf32> to vector<8x256xf32>
    %31 = arith.subf %3, %30 : vector<8x256xf32>
    %32 = arith.mulf %31, %31 : vector<8x256xf32>
    %cst_15 = arith.constant dense<0.000000e+00> : vector<256xf32>
    %33 = vector.multi_reduction <add>, %32, %cst_15 [0] : vector<8x256xf32> to vector<256xf32>
    %34 = vector.shape_cast %33 : vector<256xf32> to vector<1x256xf32>
    %cst_16 = arith.constant 8.000000e+00 : f32
    %35 = vector.broadcast %cst_16 : f32 to vector<1x256xf32>
    %36 = arith.divf %34, %35 : vector<1x256xf32>
    %cst_17 = arith.constant 9.99999974E-6 : f32
    %37 = vector.broadcast %cst_17 : f32 to vector<1x256xf32>
    %38 = arith.addf %36, %37 : vector<1x256xf32>
    %39 = math.rsqrt %38 : vector<1x256xf32>
    %40 = vector.broadcast %39 : vector<1x256xf32> to vector<8x256xf32>
    %41 = arith.mulf %31, %40 : vector<8x256xf32>
    %c0_18 = arith.constant 0 : index
    %c0_19 = arith.constant 0 : index
    %42 = vector.load %arg6[%c0_18, %c0_19] : memref<8x1xf32, #tpu.memory_space<vmem>>, vector<8x1xf32>
    %43 = vector.broadcast %42 : vector<8x1xf32> to vector<8x256xf32>
    %44 = arith.mulf %41, %43 : vector<8x256xf32>
    %c0_20 = arith.constant 0 : index
    %c0_21 = arith.constant 0 : index
    %45 = vector.load %arg7[%c0_20, %c0_21] : memref<8x1xf32, #tpu.memory_space<vmem>>, vector<8x1xf32>
    %46 = vector.broadcast %45 : vector<8x1xf32> to vector<8x256xf32>
    %47 = arith.addf %44, %46 : vector<8x256xf32>
    %c0_22 = arith.constant 0 : index
    %c0_23 = arith.constant 0 : index
    %48 = vector.load %arg10[%c0_22, %c0_23] : memref<16x8xf32, #tpu.memory_space<vmem>>, vector<16x8xf32>
    %cst_24 = arith.constant dense<0.000000e+00> : vector<16x256xf32>
    %49 = tpu.matmul %48, %47, %cst_24 {dimension_numbers = #tpu.dot_dimension_numbers<[1], [0], [0], [1], [0, 0, 1, 1], [], []>, precision = #tpu.contract_precision<fp32>} : vector<16x8xf32>, vector<8x256xf32>, vector<16x256xf32> -> vector<16x256xf32>
    %c0_25 = arith.constant 0 : index
    %c0_26 = arith.constant 0 : index
    %50 = vector.load %arg11[%c0_25, %c0_26] : memref<16x1xf32, #tpu.memory_space<vmem>>, vector<16x1xf32>
    %51 = vector.broadcast %50 : vector<16x1xf32> to vector<16x256xf32>
    %52 = arith.addf %49, %51 : vector<16x256xf32>
    %c17_i32 = arith.constant 17 : i32
    %53 = tpu.dynamic_rotate %52 by %c17_i32 dim 1 : vector<16x256xf32>, i32 -> vector<16x256xf32>
    %c0_27 = arith.constant 0 : index
    %c0_28 = arith.constant 0 : index
    %c0_29 = arith.constant 0 : index
    %54 = vector.load %arg3[%c0_27, %c0_28, %c0_29] : memref<9x1x256xf32, #tpu.memory_space<vmem>>, vector<1x1x256xf32>
    %55 = vector.shape_cast %54 : vector<1x1x256xf32> to vector<1x256xf32>
    %56 = vector.broadcast %55 : vector<1x256xf32> to vector<16x256xf32>
    %57 = arith.mulf %53, %56 : vector<16x256xf32>
    %c16_i32 = arith.constant 16 : i32
    %58 = tpu.dynamic_rotate %52 by %c16_i32 dim 1 : vector<16x256xf32>, i32 -> vector<16x256xf32>
    %c1 = arith.constant 1 : index
    %c0_30 = arith.constant 0 : index
    %c0_31 = arith.constant 0 : index
    %59 = vector.load %arg3[%c1, %c0_30, %c0_31] : memref<9x1x256xf32, #tpu.memory_space<vmem>>, vector<1x1x256xf32>
    %60 = vector.shape_cast %59 : vector<1x1x256xf32> to vector<1x256xf32>
    %61 = vector.broadcast %60 : vector<1x256xf32> to vector<16x256xf32>
    %62 = arith.mulf %58, %61 : vector<16x256xf32>
    %c15_i32 = arith.constant 15 : i32
    %63 = tpu.dynamic_rotate %52 by %c15_i32 dim 1 : vector<16x256xf32>, i32 -> vector<16x256xf32>
    %c2 = arith.constant 2 : index
    %c0_32 = arith.constant 0 : index
    %c0_33 = arith.constant 0 : index
    %64 = vector.load %arg3[%c2, %c0_32, %c0_33] : memref<9x1x256xf32, #tpu.memory_space<vmem>>, vector<1x1x256xf32>
    %65 = vector.shape_cast %64 : vector<1x1x256xf32> to vector<1x256xf32>
    %66 = vector.broadcast %65 : vector<1x256xf32> to vector<16x256xf32>
    %67 = arith.mulf %63, %66 : vector<16x256xf32>
    %c1_i32 = arith.constant 1 : i32
    %68 = tpu.dynamic_rotate %52 by %c1_i32 dim 1 : vector<16x256xf32>, i32 -> vector<16x256xf32>
    %c3 = arith.constant 3 : index
    %c0_34 = arith.constant 0 : index
    %c0_35 = arith.constant 0 : index
    %69 = vector.load %arg3[%c3, %c0_34, %c0_35] : memref<9x1x256xf32, #tpu.memory_space<vmem>>, vector<1x1x256xf32>
    %70 = vector.shape_cast %69 : vector<1x1x256xf32> to vector<1x256xf32>
    %71 = vector.broadcast %70 : vector<1x256xf32> to vector<16x256xf32>
    %72 = arith.mulf %68, %71 : vector<16x256xf32>
    %c4 = arith.constant 4 : index
    %c0_36 = arith.constant 0 : index
    %c0_37 = arith.constant 0 : index
    %73 = vector.load %arg3[%c4, %c0_36, %c0_37] : memref<9x1x256xf32, #tpu.memory_space<vmem>>, vector<1x1x256xf32>
    %74 = vector.shape_cast %73 : vector<1x1x256xf32> to vector<1x256xf32>
    %75 = vector.broadcast %74 : vector<1x256xf32> to vector<16x256xf32>
    %76 = arith.mulf %52, %75 : vector<16x256xf32>
    %c255_i32 = arith.constant 255 : i32
    %77 = tpu.dynamic_rotate %52 by %c255_i32 dim 1 : vector<16x256xf32>, i32 -> vector<16x256xf32>
    %c5 = arith.constant 5 : index
    %c0_38 = arith.constant 0 : index
    %c0_39 = arith.constant 0 : index
    %78 = vector.load %arg3[%c5, %c0_38, %c0_39] : memref<9x1x256xf32, #tpu.memory_space<vmem>>, vector<1x1x256xf32>
    %79 = vector.shape_cast %78 : vector<1x1x256xf32> to vector<1x256xf32>
    %80 = vector.broadcast %79 : vector<1x256xf32> to vector<16x256xf32>
    %81 = arith.mulf %77, %80 : vector<16x256xf32>
    %c241_i32 = arith.constant 241 : i32
    %82 = tpu.dynamic_rotate %52 by %c241_i32 dim 1 : vector<16x256xf32>, i32 -> vector<16x256xf32>
    %c6 = arith.constant 6 : index
    %c0_40 = arith.constant 0 : index
    %c0_41 = arith.constant 0 : index
    %83 = vector.load %arg3[%c6, %c0_40, %c0_41] : memref<9x1x256xf32, #tpu.memory_space<vmem>>, vector<1x1x256xf32>
    %84 = vector.shape_cast %83 : vector<1x1x256xf32> to vector<1x256xf32>
    %85 = vector.broadcast %84 : vector<1x256xf32> to vector<16x256xf32>
    %86 = arith.mulf %82, %85 : vector<16x256xf32>
    %c240_i32 = arith.constant 240 : i32
    %87 = tpu.dynamic_rotate %52 by %c240_i32 dim 1 : vector<16x256xf32>, i32 -> vector<16x256xf32>
    %c7 = arith.constant 7 : index
    %c0_42 = arith.constant 0 : index
    %c0_43 = arith.constant 0 : index
    %88 = vector.load %arg3[%c7, %c0_42, %c0_43] : memref<9x1x256xf32, #tpu.memory_space<vmem>>, vector<1x1x256xf32>
    %89 = vector.shape_cast %88 : vector<1x1x256xf32> to vector<1x256xf32>
    %90 = vector.broadcast %89 : vector<1x256xf32> to vector<16x256xf32>
    %91 = arith.mulf %87, %90 : vector<16x256xf32>
    %c239_i32 = arith.constant 239 : i32
    %92 = tpu.dynamic_rotate %52 by %c239_i32 dim 1 : vector<16x256xf32>, i32 -> vector<16x256xf32>
    %c8 = arith.constant 8 : index
    %c0_44 = arith.constant 0 : index
    %c0_45 = arith.constant 0 : index
    %93 = vector.load %arg3[%c8, %c0_44, %c0_45] : memref<9x1x256xf32, #tpu.memory_space<vmem>>, vector<1x1x256xf32>
    %94 = vector.shape_cast %93 : vector<1x1x256xf32> to vector<1x256xf32>
    %95 = vector.broadcast %94 : vector<1x256xf32> to vector<16x256xf32>
    %96 = arith.mulf %92, %95 : vector<16x256xf32>
    %c0_46 = arith.constant 0 : index
    %c0_47 = arith.constant 0 : index
    %97 = vector.load %arg13[%c0_46, %c0_47] : memref<16x1xf32, #tpu.memory_space<vmem>>, vector<16x1xf32>
    %c0_48 = arith.constant 0 : index
    %c0_49 = arith.constant 0 : index
    %c0_50 = arith.constant 0 : index
    %98 = vector.load %arg12[%c0_48, %c0_49, %c0_50] : memref<9x16x1xf32, #tpu.memory_space<vmem>>, vector<1x16x1xf32>
    %99 = vector.shape_cast %98 : vector<1x16x1xf32> to vector<16x1xf32>
    %100 = vector.broadcast %99 : vector<16x1xf32> to vector<16x256xf32>
    %101 = arith.mulf %57, %100 : vector<16x256xf32>
    %102 = vector.broadcast %97 : vector<16x1xf32> to vector<16x256xf32>
    %103 = arith.addf %102, %101 : vector<16x256xf32>
    %c1_51 = arith.constant 1 : index
    %c0_52 = arith.constant 0 : index
    %c0_53 = arith.constant 0 : index
    %104 = vector.load %arg12[%c1_51, %c0_52, %c0_53] : memref<9x16x1xf32, #tpu.memory_space<vmem>>, vector<1x16x1xf32>
    %105 = vector.shape_cast %104 : vector<1x16x1xf32> to vector<16x1xf32>
    %106 = vector.broadcast %105 : vector<16x1xf32> to vector<16x256xf32>
    %107 = arith.mulf %62, %106 : vector<16x256xf32>
    %108 = arith.addf %103, %107 : vector<16x256xf32>
    %c2_54 = arith.constant 2 : index
    %c0_55 = arith.constant 0 : index
    %c0_56 = arith.constant 0 : index
    %109 = vector.load %arg12[%c2_54, %c0_55, %c0_56] : memref<9x16x1xf32, #tpu.memory_space<vmem>>, vector<1x16x1xf32>
    %110 = vector.shape_cast %109 : vector<1x16x1xf32> to vector<16x1xf32>
    %111 = vector.broadcast %110 : vector<16x1xf32> to vector<16x256xf32>
    %112 = arith.mulf %67, %111 : vector<16x256xf32>
    %113 = arith.addf %108, %112 : vector<16x256xf32>
    %c3_57 = arith.constant 3 : index
    %c0_58 = arith.constant 0 : index
    %c0_59 = arith.constant 0 : index
    %114 = vector.load %arg12[%c3_57, %c0_58, %c0_59] : memref<9x16x1xf32, #tpu.memory_space<vmem>>, vector<1x16x1xf32>
    %115 = vector.shape_cast %114 : vector<1x16x1xf32> to vector<16x1xf32>
    %116 = vector.broadcast %115 : vector<16x1xf32> to vector<16x256xf32>
    %117 = arith.mulf %72, %116 : vector<16x256xf32>
    %118 = arith.addf %113, %117 : vector<16x256xf32>
    %c4_60 = arith.constant 4 : index
    %c0_61 = arith.constant 0 : index
    %c0_62 = arith.constant 0 : index
    %119 = vector.load %arg12[%c4_60, %c0_61, %c0_62] : memref<9x16x1xf32, #tpu.memory_space<vmem>>, vector<1x16x1xf32>
    %120 = vector.shape_cast %119 : vector<1x16x1xf32> to vector<16x1xf32>
    %121 = vector.broadcast %120 : vector<16x1xf32> to vector<16x256xf32>
    %122 = arith.mulf %76, %121 : vector<16x256xf32>
    %123 = arith.addf %118, %122 : vector<16x256xf32>
    %c5_63 = arith.constant 5 : index
    %c0_64 = arith.constant 0 : index
    %c0_65 = arith.constant 0 : index
    %124 = vector.load %arg12[%c5_63, %c0_64, %c0_65] : memref<9x16x1xf32, #tpu.memory_space<vmem>>, vector<1x16x1xf32>
    %125 = vector.shape_cast %124 : vector<1x16x1xf32> to vector<16x1xf32>
    %126 = vector.broadcast %125 : vector<16x1xf32> to vector<16x256xf32>
    %127 = arith.mulf %81, %126 : vector<16x256xf32>
    %128 = arith.addf %123, %127 : vector<16x256xf32>
    %c6_66 = arith.constant 6 : index
    %c0_67 = arith.constant 0 : index
    %c0_68 = arith.constant 0 : index
    %129 = vector.load %arg12[%c6_66, %c0_67, %c0_68] : memref<9x16x1xf32, #tpu.memory_space<vmem>>, vector<1x16x1xf32>
    %130 = vector.shape_cast %129 : vector<1x16x1xf32> to vector<16x1xf32>
    %131 = vector.broadcast %130 : vector<16x1xf32> to vector<16x256xf32>
    %132 = arith.mulf %86, %131 : vector<16x256xf32>
    %133 = arith.addf %128, %132 : vector<16x256xf32>
    %c7_69 = arith.constant 7 : index
    %c0_70 = arith.constant 0 : index
    %c0_71 = arith.constant 0 : index
    %134 = vector.load %arg12[%c7_69, %c0_70, %c0_71] : memref<9x16x1xf32, #tpu.memory_space<vmem>>, vector<1x16x1xf32>
    %135 = vector.shape_cast %134 : vector<1x16x1xf32> to vector<16x1xf32>
    %136 = vector.broadcast %135 : vector<16x1xf32> to vector<16x256xf32>
    %137 = arith.mulf %91, %136 : vector<16x256xf32>
    %138 = arith.addf %133, %137 : vector<16x256xf32>
    %c8_72 = arith.constant 8 : index
    %c0_73 = arith.constant 0 : index
    %c0_74 = arith.constant 0 : index
    %139 = vector.load %arg12[%c8_72, %c0_73, %c0_74] : memref<9x16x1xf32, #tpu.memory_space<vmem>>, vector<1x16x1xf32>
    %140 = vector.shape_cast %139 : vector<1x16x1xf32> to vector<16x1xf32>
    %141 = vector.broadcast %140 : vector<16x1xf32> to vector<16x256xf32>
    %142 = arith.mulf %96, %141 : vector<16x256xf32>
    %143 = arith.addf %138, %142 : vector<16x256xf32>
    %144 = vector.extract_strided_slice %143 {offsets = [0, 0], sizes = [8, 256], strides = [1, 1]} : vector<16x256xf32> to vector<8x256xf32>
    %145 = vector.extract_strided_slice %143 {offsets = [8, 0], sizes = [8, 256], strides = [1, 1]} : vector<16x256xf32> to vector<8x256xf32>
    %c17_i32_75 = arith.constant 17 : i32
    %146 = tpu.dynamic_rotate %25 by %c17_i32_75 dim 1 : vector<8x256xf32>, i32 -> vector<8x256xf32>
    %c0_76 = arith.constant 0 : index
    %c0_77 = arith.constant 0 : index
    %c0_78 = arith.constant 0 : index
    %147 = vector.load %arg3[%c0_76, %c0_77, %c0_78] : memref<9x1x256xf32, #tpu.memory_space<vmem>>, vector<1x1x256xf32>
    %148 = vector.shape_cast %147 : vector<1x1x256xf32> to vector<1x256xf32>
    %149 = vector.broadcast %148 : vector<1x256xf32> to vector<8x256xf32>
    %150 = arith.mulf %146, %149 : vector<8x256xf32>
    %c16_i32_79 = arith.constant 16 : i32
    %151 = tpu.dynamic_rotate %25 by %c16_i32_79 dim 1 : vector<8x256xf32>, i32 -> vector<8x256xf32>
    %c1_80 = arith.constant 1 : index
    %c0_81 = arith.constant 0 : index
    %c0_82 = arith.constant 0 : index
    %152 = vector.load %arg3[%c1_80, %c0_81, %c0_82] : memref<9x1x256xf32, #tpu.memory_space<vmem>>, vector<1x1x256xf32>
    %153 = vector.shape_cast %152 : vector<1x1x256xf32> to vector<1x256xf32>
    %154 = vector.broadcast %153 : vector<1x256xf32> to vector<8x256xf32>
    %155 = arith.mulf %151, %154 : vector<8x256xf32>
    %c15_i32_83 = arith.constant 15 : i32
    %156 = tpu.dynamic_rotate %25 by %c15_i32_83 dim 1 : vector<8x256xf32>, i32 -> vector<8x256xf32>
    %c2_84 = arith.constant 2 : index
    %c0_85 = arith.constant 0 : index
    %c0_86 = arith.constant 0 : index
    %157 = vector.load %arg3[%c2_84, %c0_85, %c0_86] : memref<9x1x256xf32, #tpu.memory_space<vmem>>, vector<1x1x256xf32>
    %158 = vector.shape_cast %157 : vector<1x1x256xf32> to vector<1x256xf32>
    %159 = vector.broadcast %158 : vector<1x256xf32> to vector<8x256xf32>
    %160 = arith.mulf %156, %159 : vector<8x256xf32>
    %c1_i32_87 = arith.constant 1 : i32
    %161 = tpu.dynamic_rotate %25 by %c1_i32_87 dim 1 : vector<8x256xf32>, i32 -> vector<8x256xf32>
    %c3_88 = arith.constant 3 : index
    %c0_89 = arith.constant 0 : index
    %c0_90 = arith.constant 0 : index
    %162 = vector.load %arg3[%c3_88, %c0_89, %c0_90] : memref<9x1x256xf32, #tpu.memory_space<vmem>>, vector<1x1x256xf32>
    %163 = vector.shape_cast %162 : vector<1x1x256xf32> to vector<1x256xf32>
    %164 = vector.broadcast %163 : vector<1x256xf32> to vector<8x256xf32>
    %165 = arith.mulf %161, %164 : vector<8x256xf32>
    %c4_91 = arith.constant 4 : index
    %c0_92 = arith.constant 0 : index
    %c0_93 = arith.constant 0 : index
    %166 = vector.load %arg3[%c4_91, %c0_92, %c0_93] : memref<9x1x256xf32, #tpu.memory_space<vmem>>, vector<1x1x256xf32>
    %167 = vector.shape_cast %166 : vector<1x1x256xf32> to vector<1x256xf32>
    %168 = vector.broadcast %167 : vector<1x256xf32> to vector<8x256xf32>
    %169 = arith.mulf %25, %168 : vector<8x256xf32>
    %c255_i32_94 = arith.constant 255 : i32
    %170 = tpu.dynamic_rotate %25 by %c255_i32_94 dim 1 : vector<8x256xf32>, i32 -> vector<8x256xf32>
    %c5_95 = arith.constant 5 : index
    %c0_96 = arith.constant 0 : index
    %c0_97 = arith.constant 0 : index
    %171 = vector.load %arg3[%c5_95, %c0_96, %c0_97] : memref<9x1x256xf32, #tpu.memory_space<vmem>>, vector<1x1x256xf32>
    %172 = vector.shape_cast %171 : vector<1x1x256xf32> to vector<1x256xf32>
    %173 = vector.broadcast %172 : vector<1x256xf32> to vector<8x256xf32>
    %174 = arith.mulf %170, %173 : vector<8x256xf32>
    %c241_i32_98 = arith.constant 241 : i32
    %175 = tpu.dynamic_rotate %25 by %c241_i32_98 dim 1 : vector<8x256xf32>, i32 -> vector<8x256xf32>
    %c6_99 = arith.constant 6 : index
    %c0_100 = arith.constant 0 : index
    %c0_101 = arith.constant 0 : index
    %176 = vector.load %arg3[%c6_99, %c0_100, %c0_101] : memref<9x1x256xf32, #tpu.memory_space<vmem>>, vector<1x1x256xf32>
    %177 = vector.shape_cast %176 : vector<1x1x256xf32> to vector<1x256xf32>
    %178 = vector.broadcast %177 : vector<1x256xf32> to vector<8x256xf32>
    %179 = arith.mulf %175, %178 : vector<8x256xf32>
    %c240_i32_102 = arith.constant 240 : i32
    %180 = tpu.dynamic_rotate %25 by %c240_i32_102 dim 1 : vector<8x256xf32>, i32 -> vector<8x256xf32>
    %c7_103 = arith.constant 7 : index
    %c0_104 = arith.constant 0 : index
    %c0_105 = arith.constant 0 : index
    %181 = vector.load %arg3[%c7_103, %c0_104, %c0_105] : memref<9x1x256xf32, #tpu.memory_space<vmem>>, vector<1x1x256xf32>
    %182 = vector.shape_cast %181 : vector<1x1x256xf32> to vector<1x256xf32>
    %183 = vector.broadcast %182 : vector<1x256xf32> to vector<8x256xf32>
    %184 = arith.mulf %180, %183 : vector<8x256xf32>
    %c239_i32_106 = arith.constant 239 : i32
    %185 = tpu.dynamic_rotate %25 by %c239_i32_106 dim 1 : vector<8x256xf32>, i32 -> vector<8x256xf32>
    %c8_107 = arith.constant 8 : index
    %c0_108 = arith.constant 0 : index
    %c0_109 = arith.constant 0 : index
    %186 = vector.load %arg3[%c8_107, %c0_108, %c0_109] : memref<9x1x256xf32, #tpu.memory_space<vmem>>, vector<1x1x256xf32>
    %187 = vector.shape_cast %186 : vector<1x1x256xf32> to vector<1x256xf32>
    %188 = vector.broadcast %187 : vector<1x256xf32> to vector<8x256xf32>
    %189 = arith.mulf %185, %188 : vector<8x256xf32>
    %190 = tpu.concatenate %150, %155, %160, %165, %169, %174, %179, %184, %189 in 0 : vector<8x256xf32>, vector<8x256xf32>, vector<8x256xf32>, vector<8x256xf32>, vector<8x256xf32>, vector<8x256xf32>, vector<8x256xf32>, vector<8x256xf32>, vector<8x256xf32> -> vector<72x256xf32>
    %c0_110 = arith.constant 0 : index
    %c0_111 = arith.constant 0 : index
    %191 = vector.load %arg14[%c0_110, %c0_111] : memref<8x72xf32, #tpu.memory_space<vmem>>, vector<8x72xf32>
    %cst_112 = arith.constant dense<0.000000e+00> : vector<8x256xf32>
    %192 = tpu.matmul %191, %190, %cst_112 {dimension_numbers = #tpu.dot_dimension_numbers<[1], [0], [0], [1], [0, 0, 1, 1], [], []>, precision = #tpu.contract_precision<fp32>} : vector<8x72xf32>, vector<72x256xf32>, vector<8x256xf32> -> vector<8x256xf32>
    %c0_113 = arith.constant 0 : index
    %c0_114 = arith.constant 0 : index
    %193 = vector.load %arg15[%c0_113, %c0_114] : memref<8x1xf32, #tpu.memory_space<vmem>>, vector<8x1xf32>
    %194 = vector.broadcast %193 : vector<8x1xf32> to vector<8x256xf32>
    %195 = arith.addf %192, %194 : vector<8x256xf32>
    %196 = arith.mulf %195, %195 : vector<8x256xf32>
    %cst_115 = arith.constant dense<0.000000e+00> : vector<8xf32>
    %197 = vector.multi_reduction <add>, %196, %cst_115 [1] : vector<8x256xf32> to vector<8xf32>
    %198 = vector.shape_cast %197 : vector<8xf32> to vector<8x1xf32>
    %cst_116 = arith.constant 1.000000e-24 : f32
    %199 = vector.broadcast %cst_116 : f32 to vector<8x1xf32>
    %200 = arith.maximumf %198, %199 : vector<8x1xf32>
    %201 = math.rsqrt %200 : vector<8x1xf32>
    %202 = vector.broadcast %201 : vector<8x1xf32> to vector<8x256xf32>
    %203 = arith.mulf %195, %202 : vector<8x256xf32>
    %204 = arith.mulf %144, %144 : vector<8x256xf32>
    %cst_117 = arith.constant dense<0.000000e+00> : vector<8xf32>
    %205 = vector.multi_reduction <add>, %204, %cst_117 [1] : vector<8x256xf32> to vector<8xf32>
    %206 = vector.shape_cast %205 : vector<8xf32> to vector<8x1xf32>
    %cst_118 = arith.constant 1.000000e-24 : f32
    %207 = vector.broadcast %cst_118 : f32 to vector<8x1xf32>
    %208 = arith.maximumf %206, %207 : vector<8x1xf32>
    %209 = math.rsqrt %208 : vector<8x1xf32>
    %210 = vector.broadcast %209 : vector<8x1xf32> to vector<8x256xf32>
    %211 = arith.mulf %144, %210 : vector<8x256xf32>
    %cst_119 = arith.constant dense<0.000000e+00> : vector<8x8xf32>
    %212 = tpu.matmul %203, %211, %cst_119 {dimension_numbers = #tpu.dot_dimension_numbers<[1], [1], [0], [0], [0, 0, 1, 0], [], []>, precision = #tpu.contract_precision<fp32>} : vector<8x256xf32>, vector<8x256xf32>, vector<8x8xf32> -> vector<8x8xf32>
    %c0_120 = arith.constant 0 : index
    %c0_121 = arith.constant 0 : index
    %213 = vector.load %arg16[%c0_120, %c0_121] : memref<8x1xf32, #tpu.memory_space<vmem>>, vector<8x1xf32>
    %214 = vector.broadcast %213 : vector<8x1xf32> to vector<8x8xf32>
    %215 = arith.mulf %212, %214 : vector<8x8xf32>
    %cst_122 = arith.constant dense<0xFF800000> : vector<8xf32>
    %216 = vector.multi_reduction <maximumf>, %215, %cst_122 [1] : vector<8x8xf32> to vector<8xf32>
    %217 = vector.shape_cast %216 : vector<8xf32> to vector<8x1xf32>
    %218 = vector.broadcast %217 : vector<8x1xf32> to vector<8x8xf32>
    %219 = arith.subf %215, %218 : vector<8x8xf32>
    %220 = math.exp %219 : vector<8x8xf32>
    %c0_123 = arith.constant 0 : index
    %c0_124 = arith.constant 0 : index
    %221 = vector.load %arg17[%c0_123, %c0_124] : memref<8x8xf32, #tpu.memory_space<vmem>>, vector<8x8xf32>
    %222 = arith.mulf %220, %221 : vector<8x8xf32>
    %cst_125 = arith.constant dense<0.000000e+00> : vector<8xf32>
    %223 = vector.multi_reduction <add>, %222, %cst_125 [1] : vector<8x8xf32> to vector<8xf32>
    %224 = vector.shape_cast %223 : vector<8xf32> to vector<8x1xf32>
    %225 = tpu.reciprocal %224 {approx = true} : vector<8x1xf32> -> vector<8x1xf32>
    %226 = arith.mulf %224, %225 : vector<8x1xf32>
    %cst_126 = arith.constant 2.000000e+00 : f32
    %227 = vector.broadcast %cst_126 : f32 to vector<8x1xf32>
    %228 = arith.subf %227, %226 : vector<8x1xf32>
    %229 = arith.mulf %225, %228 : vector<8x1xf32>
    %230 = vector.broadcast %229 : vector<8x1xf32> to vector<8x8xf32>
    %231 = arith.mulf %222, %230 : vector<8x8xf32>
    %cst_127 = arith.constant dense<0.000000e+00> : vector<8x256xf32>
    %232 = tpu.matmul %231, %145, %cst_127 {dimension_numbers = #tpu.dot_dimension_numbers<[1], [0], [0], [1], [0, 0, 1, 1], [], []>, precision = #tpu.contract_precision<fp32>} : vector<8x8xf32>, vector<8x256xf32>, vector<8x256xf32> -> vector<8x256xf32>
    %c0_128 = arith.constant 0 : index
    %c0_129 = arith.constant 0 : index
    %233 = vector.load %arg18[%c0_128, %c0_129] : memref<8x8xf32, #tpu.memory_space<vmem>>, vector<8x8xf32>
    %cst_130 = arith.constant dense<0.000000e+00> : vector<8x256xf32>
    %234 = tpu.matmul %233, %232, %cst_130 {dimension_numbers = #tpu.dot_dimension_numbers<[1], [0], [0], [1], [0, 0, 1, 1], [], []>, precision = #tpu.contract_precision<fp32>} : vector<8x8xf32>, vector<8x256xf32>, vector<8x256xf32> -> vector<8x256xf32>
    %c0_131 = arith.constant 0 : index
    %c0_132 = arith.constant 0 : index
    %235 = vector.load %arg19[%c0_131, %c0_132] : memref<8x1xf32, #tpu.memory_space<vmem>>, vector<8x1xf32>
    %236 = vector.broadcast %235 : vector<8x1xf32> to vector<8x256xf32>
    %237 = arith.addf %234, %236 : vector<8x256xf32>
    %cst_133 = arith.constant dense<0.000000e+00> : vector<256xf32>
    %238 = vector.multi_reduction <add>, %237, %cst_133 [0] : vector<8x256xf32> to vector<256xf32>
    %239 = vector.shape_cast %238 : vector<256xf32> to vector<1x256xf32>
    %cst_134 = arith.constant 8.000000e+00 : f32
    %240 = vector.broadcast %cst_134 : f32 to vector<1x256xf32>
    %241 = arith.divf %239, %240 : vector<1x256xf32>
    %242 = vector.broadcast %241 : vector<1x256xf32> to vector<8x256xf32>
    %243 = arith.subf %237, %242 : vector<8x256xf32>
    %244 = arith.mulf %243, %243 : vector<8x256xf32>
    %cst_135 = arith.constant dense<0.000000e+00> : vector<256xf32>
    %245 = vector.multi_reduction <add>, %244, %cst_135 [0] : vector<8x256xf32> to vector<256xf32>
    %246 = vector.shape_cast %245 : vector<256xf32> to vector<1x256xf32>
    %cst_136 = arith.constant 8.000000e+00 : f32
    %247 = vector.broadcast %cst_136 : f32 to vector<1x256xf32>
    %248 = arith.divf %246, %247 : vector<1x256xf32>
    %cst_137 = arith.constant 9.99999974E-6 : f32
    %249 = vector.broadcast %cst_137 : f32 to vector<1x256xf32>
    %250 = arith.addf %248, %249 : vector<1x256xf32>
    %251 = math.rsqrt %250 : vector<1x256xf32>
    %252 = vector.broadcast %251 : vector<1x256xf32> to vector<8x256xf32>
    %253 = arith.mulf %243, %252 : vector<8x256xf32>
    %c0_138 = arith.constant 0 : index
    %c0_139 = arith.constant 0 : index
    %254 = vector.load %arg8[%c0_138, %c0_139] : memref<8x1xf32, #tpu.memory_space<vmem>>, vector<8x1xf32>
    %255 = vector.broadcast %254 : vector<8x1xf32> to vector<8x256xf32>
    %256 = arith.mulf %253, %255 : vector<8x256xf32>
    %c0_140 = arith.constant 0 : index
    %c0_141 = arith.constant 0 : index
    %257 = vector.load %arg9[%c0_140, %c0_141] : memref<8x1xf32, #tpu.memory_space<vmem>>, vector<8x1xf32>
    %258 = vector.broadcast %257 : vector<8x1xf32> to vector<8x256xf32>
    %259 = arith.addf %256, %258 : vector<8x256xf32>
    %c0_142 = arith.constant 0 : index
    %c0_143 = arith.constant 0 : index
    %260 = vector.load %arg20[%c0_142, %c0_143] : memref<8x8xf32, #tpu.memory_space<vmem>>, vector<8x8xf32>
    %cst_144 = arith.constant dense<0.000000e+00> : vector<8x256xf32>
    %261 = tpu.matmul %260, %25, %cst_144 {dimension_numbers = #tpu.dot_dimension_numbers<[1], [0], [0], [1], [0, 0, 1, 1], [], []>, precision = #tpu.contract_precision<fp32>} : vector<8x8xf32>, vector<8x256xf32>, vector<8x256xf32> -> vector<8x256xf32>
    %c0_145 = arith.constant 0 : index
    %c0_146 = arith.constant 0 : index
    %262 = vector.load %arg21[%c0_145, %c0_146] : memref<8x8xf32, #tpu.memory_space<vmem>>, vector<8x8xf32>
    %cst_147 = arith.constant dense<0.000000e+00> : vector<8x256xf32>
    %263 = tpu.matmul %262, %259, %cst_147 {dimension_numbers = #tpu.dot_dimension_numbers<[1], [0], [0], [1], [0, 0, 1, 1], [], []>, precision = #tpu.contract_precision<fp32>} : vector<8x8xf32>, vector<8x256xf32>, vector<8x256xf32> -> vector<8x256xf32>
    %264 = arith.addf %261, %263 : vector<8x256xf32>
    %c0_148 = arith.constant 0 : index
    %c0_149 = arith.constant 0 : index
    %265 = vector.load %arg22[%c0_148, %c0_149] : memref<8x1xf32, #tpu.memory_space<vmem>>, vector<8x1xf32>
    %266 = vector.broadcast %265 : vector<8x1xf32> to vector<8x256xf32>
    %267 = arith.addf %264, %266 : vector<8x256xf32>
    %c17_i32_150 = arith.constant 17 : i32
    %268 = tpu.dynamic_rotate %267 by %c17_i32_150 dim 1 : vector<8x256xf32>, i32 -> vector<8x256xf32>
    %c0_151 = arith.constant 0 : index
    %c0_152 = arith.constant 0 : index
    %c0_153 = arith.constant 0 : index
    %269 = vector.load %arg3[%c0_151, %c0_152, %c0_153] : memref<9x1x256xf32, #tpu.memory_space<vmem>>, vector<1x1x256xf32>
    %270 = vector.shape_cast %269 : vector<1x1x256xf32> to vector<1x256xf32>
    %271 = vector.broadcast %270 : vector<1x256xf32> to vector<8x256xf32>
    %272 = arith.mulf %268, %271 : vector<8x256xf32>
    %c16_i32_154 = arith.constant 16 : i32
    %273 = tpu.dynamic_rotate %267 by %c16_i32_154 dim 1 : vector<8x256xf32>, i32 -> vector<8x256xf32>
    %c1_155 = arith.constant 1 : index
    %c0_156 = arith.constant 0 : index
    %c0_157 = arith.constant 0 : index
    %274 = vector.load %arg3[%c1_155, %c0_156, %c0_157] : memref<9x1x256xf32, #tpu.memory_space<vmem>>, vector<1x1x256xf32>
    %275 = vector.shape_cast %274 : vector<1x1x256xf32> to vector<1x256xf32>
    %276 = vector.broadcast %275 : vector<1x256xf32> to vector<8x256xf32>
    %277 = arith.mulf %273, %276 : vector<8x256xf32>
    %c15_i32_158 = arith.constant 15 : i32
    %278 = tpu.dynamic_rotate %267 by %c15_i32_158 dim 1 : vector<8x256xf32>, i32 -> vector<8x256xf32>
    %c2_159 = arith.constant 2 : index
    %c0_160 = arith.constant 0 : index
    %c0_161 = arith.constant 0 : index
    %279 = vector.load %arg3[%c2_159, %c0_160, %c0_161] : memref<9x1x256xf32, #tpu.memory_space<vmem>>, vector<1x1x256xf32>
    %280 = vector.shape_cast %279 : vector<1x1x256xf32> to vector<1x256xf32>
    %281 = vector.broadcast %280 : vector<1x256xf32> to vector<8x256xf32>
    %282 = arith.mulf %278, %281 : vector<8x256xf32>
    %c1_i32_162 = arith.constant 1 : i32
    %283 = tpu.dynamic_rotate %267 by %c1_i32_162 dim 1 : vector<8x256xf32>, i32 -> vector<8x256xf32>
    %c3_163 = arith.constant 3 : index
    %c0_164 = arith.constant 0 : index
    %c0_165 = arith.constant 0 : index
    %284 = vector.load %arg3[%c3_163, %c0_164, %c0_165] : memref<9x1x256xf32, #tpu.memory_space<vmem>>, vector<1x1x256xf32>
    %285 = vector.shape_cast %284 : vector<1x1x256xf32> to vector<1x256xf32>
    %286 = vector.broadcast %285 : vector<1x256xf32> to vector<8x256xf32>
    %287 = arith.mulf %283, %286 : vector<8x256xf32>
    %c4_166 = arith.constant 4 : index
    %c0_167 = arith.constant 0 : index
    %c0_168 = arith.constant 0 : index
    %288 = vector.load %arg3[%c4_166, %c0_167, %c0_168] : memref<9x1x256xf32, #tpu.memory_space<vmem>>, vector<1x1x256xf32>
    %289 = vector.shape_cast %288 : vector<1x1x256xf32> to vector<1x256xf32>
    %290 = vector.broadcast %289 : vector<1x256xf32> to vector<8x256xf32>
    %291 = arith.mulf %267, %290 : vector<8x256xf32>
    %c255_i32_169 = arith.constant 255 : i32
    %292 = tpu.dynamic_rotate %267 by %c255_i32_169 dim 1 : vector<8x256xf32>, i32 -> vector<8x256xf32>
    %c5_170 = arith.constant 5 : index
    %c0_171 = arith.constant 0 : index
    %c0_172 = arith.constant 0 : index
    %293 = vector.load %arg3[%c5_170, %c0_171, %c0_172] : memref<9x1x256xf32, #tpu.memory_space<vmem>>, vector<1x1x256xf32>
    %294 = vector.shape_cast %293 : vector<1x1x256xf32> to vector<1x256xf32>
    %295 = vector.broadcast %294 : vector<1x256xf32> to vector<8x256xf32>
    %296 = arith.mulf %292, %295 : vector<8x256xf32>
    %c241_i32_173 = arith.constant 241 : i32
    %297 = tpu.dynamic_rotate %267 by %c241_i32_173 dim 1 : vector<8x256xf32>, i32 -> vector<8x256xf32>
    %c6_174 = arith.constant 6 : index
    %c0_175 = arith.constant 0 : index
    %c0_176 = arith.constant 0 : index
    %298 = vector.load %arg3[%c6_174, %c0_175, %c0_176] : memref<9x1x256xf32, #tpu.memory_space<vmem>>, vector<1x1x256xf32>
    %299 = vector.shape_cast %298 : vector<1x1x256xf32> to vector<1x256xf32>
    %300 = vector.broadcast %299 : vector<1x256xf32> to vector<8x256xf32>
    %301 = arith.mulf %297, %300 : vector<8x256xf32>
    %c240_i32_177 = arith.constant 240 : i32
    %302 = tpu.dynamic_rotate %267 by %c240_i32_177 dim 1 : vector<8x256xf32>, i32 -> vector<8x256xf32>
    %c7_178 = arith.constant 7 : index
    %c0_179 = arith.constant 0 : index
    %c0_180 = arith.constant 0 : index
    %303 = vector.load %arg3[%c7_178, %c0_179, %c0_180] : memref<9x1x256xf32, #tpu.memory_space<vmem>>, vector<1x1x256xf32>
    %304 = vector.shape_cast %303 : vector<1x1x256xf32> to vector<1x256xf32>
    %305 = vector.broadcast %304 : vector<1x256xf32> to vector<8x256xf32>
    %306 = arith.mulf %302, %305 : vector<8x256xf32>
    %c239_i32_181 = arith.constant 239 : i32
    %307 = tpu.dynamic_rotate %267 by %c239_i32_181 dim 1 : vector<8x256xf32>, i32 -> vector<8x256xf32>
    %c8_182 = arith.constant 8 : index
    %c0_183 = arith.constant 0 : index
    %c0_184 = arith.constant 0 : index
    %308 = vector.load %arg3[%c8_182, %c0_183, %c0_184] : memref<9x1x256xf32, #tpu.memory_space<vmem>>, vector<1x1x256xf32>
    %309 = vector.shape_cast %308 : vector<1x1x256xf32> to vector<1x256xf32>
    %310 = vector.broadcast %309 : vector<1x256xf32> to vector<8x256xf32>
    %311 = arith.mulf %307, %310 : vector<8x256xf32>
    %c0_185 = arith.constant 0 : index
    %c0_186 = arith.constant 0 : index
    %312 = vector.load %arg24[%c0_185, %c0_186] : memref<8x1xf32, #tpu.memory_space<vmem>>, vector<8x1xf32>
    %c0_187 = arith.constant 0 : index
    %c0_188 = arith.constant 0 : index
    %c0_189 = arith.constant 0 : index
    %313 = vector.load %arg23[%c0_187, %c0_188, %c0_189] : memref<9x8x1xf32, #tpu.memory_space<vmem>>, vector<1x8x1xf32>
    %314 = vector.shape_cast %313 : vector<1x8x1xf32> to vector<8x1xf32>
    %315 = vector.broadcast %314 : vector<8x1xf32> to vector<8x256xf32>
    %316 = arith.mulf %272, %315 : vector<8x256xf32>
    %317 = vector.broadcast %312 : vector<8x1xf32> to vector<8x256xf32>
    %318 = arith.addf %317, %316 : vector<8x256xf32>
    %c1_190 = arith.constant 1 : index
    %c0_191 = arith.constant 0 : index
    %c0_192 = arith.constant 0 : index
    %319 = vector.load %arg23[%c1_190, %c0_191, %c0_192] : memref<9x8x1xf32, #tpu.memory_space<vmem>>, vector<1x8x1xf32>
    %320 = vector.shape_cast %319 : vector<1x8x1xf32> to vector<8x1xf32>
    %321 = vector.broadcast %320 : vector<8x1xf32> to vector<8x256xf32>
    %322 = arith.mulf %277, %321 : vector<8x256xf32>
    %323 = arith.addf %318, %322 : vector<8x256xf32>
    %c2_193 = arith.constant 2 : index
    %c0_194 = arith.constant 0 : index
    %c0_195 = arith.constant 0 : index
    %324 = vector.load %arg23[%c2_193, %c0_194, %c0_195] : memref<9x8x1xf32, #tpu.memory_space<vmem>>, vector<1x8x1xf32>
    %325 = vector.shape_cast %324 : vector<1x8x1xf32> to vector<8x1xf32>
    %326 = vector.broadcast %325 : vector<8x1xf32> to vector<8x256xf32>
    %327 = arith.mulf %282, %326 : vector<8x256xf32>
    %328 = arith.addf %323, %327 : vector<8x256xf32>
    %c3_196 = arith.constant 3 : index
    %c0_197 = arith.constant 0 : index
    %c0_198 = arith.constant 0 : index
    %329 = vector.load %arg23[%c3_196, %c0_197, %c0_198] : memref<9x8x1xf32, #tpu.memory_space<vmem>>, vector<1x8x1xf32>
    %330 = vector.shape_cast %329 : vector<1x8x1xf32> to vector<8x1xf32>
    %331 = vector.broadcast %330 : vector<8x1xf32> to vector<8x256xf32>
    %332 = arith.mulf %287, %331 : vector<8x256xf32>
    %333 = arith.addf %328, %332 : vector<8x256xf32>
    %c4_199 = arith.constant 4 : index
    %c0_200 = arith.constant 0 : index
    %c0_201 = arith.constant 0 : index
    %334 = vector.load %arg23[%c4_199, %c0_200, %c0_201] : memref<9x8x1xf32, #tpu.memory_space<vmem>>, vector<1x8x1xf32>
    %335 = vector.shape_cast %334 : vector<1x8x1xf32> to vector<8x1xf32>
    %336 = vector.broadcast %335 : vector<8x1xf32> to vector<8x256xf32>
    %337 = arith.mulf %291, %336 : vector<8x256xf32>
    %338 = arith.addf %333, %337 : vector<8x256xf32>
    %c5_202 = arith.constant 5 : index
    %c0_203 = arith.constant 0 : index
    %c0_204 = arith.constant 0 : index
    %339 = vector.load %arg23[%c5_202, %c0_203, %c0_204] : memref<9x8x1xf32, #tpu.memory_space<vmem>>, vector<1x8x1xf32>
    %340 = vector.shape_cast %339 : vector<1x8x1xf32> to vector<8x1xf32>
    %341 = vector.broadcast %340 : vector<8x1xf32> to vector<8x256xf32>
    %342 = arith.mulf %296, %341 : vector<8x256xf32>
    %343 = arith.addf %338, %342 : vector<8x256xf32>
    %c6_205 = arith.constant 6 : index
    %c0_206 = arith.constant 0 : index
    %c0_207 = arith.constant 0 : index
    %344 = vector.load %arg23[%c6_205, %c0_206, %c0_207] : memref<9x8x1xf32, #tpu.memory_space<vmem>>, vector<1x8x1xf32>
    %345 = vector.shape_cast %344 : vector<1x8x1xf32> to vector<8x1xf32>
    %346 = vector.broadcast %345 : vector<8x1xf32> to vector<8x256xf32>
    %347 = arith.mulf %301, %346 : vector<8x256xf32>
    %348 = arith.addf %343, %347 : vector<8x256xf32>
    %c7_208 = arith.constant 7 : index
    %c0_209 = arith.constant 0 : index
    %c0_210 = arith.constant 0 : index
    %349 = vector.load %arg23[%c7_208, %c0_209, %c0_210] : memref<9x8x1xf32, #tpu.memory_space<vmem>>, vector<1x8x1xf32>
    %350 = vector.shape_cast %349 : vector<1x8x1xf32> to vector<8x1xf32>
    %351 = vector.broadcast %350 : vector<8x1xf32> to vector<8x256xf32>
    %352 = arith.mulf %306, %351 : vector<8x256xf32>
    %353 = arith.addf %348, %352 : vector<8x256xf32>
    %c8_211 = arith.constant 8 : index
    %c0_212 = arith.constant 0 : index
    %c0_213 = arith.constant 0 : index
    %354 = vector.load %arg23[%c8_211, %c0_212, %c0_213] : memref<9x8x1xf32, #tpu.memory_space<vmem>>, vector<1x8x1xf32>
    %355 = vector.shape_cast %354 : vector<1x8x1xf32> to vector<8x1xf32>
    %356 = vector.broadcast %355 : vector<8x1xf32> to vector<8x256xf32>
    %357 = arith.mulf %311, %356 : vector<8x256xf32>
    %358 = arith.addf %353, %357 : vector<8x256xf32>
    %cst_214 = arith.constant 5.000000e-01 : f32
    %359 = vector.broadcast %cst_214 : f32 to vector<8x256xf32>
    %360 = arith.mulf %359, %358 : vector<8x256xf32>
    %cst_215 = arith.constant 0.707106769 : f32
    %361 = vector.broadcast %cst_215 : f32 to vector<8x256xf32>
    %362 = arith.mulf %358, %361 : vector<8x256xf32>
    %363 = math.absf %362 : vector<8x256xf32>
    %cst_216 = arith.constant 0.327591091 : f32
    %364 = vector.broadcast %cst_216 : f32 to vector<8x256xf32>
    %365 = arith.mulf %364, %363 : vector<8x256xf32>
    %cst_217 = arith.constant 1.000000e+00 : f32
    %366 = vector.broadcast %cst_217 : f32 to vector<8x256xf32>
    %367 = arith.addf %366, %365 : vector<8x256xf32>
    %cst_218 = arith.constant 1.000000e+00 : f32
    %368 = vector.broadcast %cst_218 : f32 to vector<8x256xf32>
    %369 = arith.divf %368, %367 : vector<8x256xf32>
    %cst_219 = arith.constant 1.06140542 : f32
    %370 = vector.broadcast %cst_219 : f32 to vector<8x256xf32>
    %371 = arith.mulf %370, %369 : vector<8x256xf32>
    %cst_220 = arith.constant -1.45315206 : f32
    %372 = vector.broadcast %cst_220 : f32 to vector<8x256xf32>
    %373 = arith.addf %371, %372 : vector<8x256xf32>
    %374 = arith.mulf %373, %369 : vector<8x256xf32>
    %cst_221 = arith.constant 1.42141378 : f32
    %375 = vector.broadcast %cst_221 : f32 to vector<8x256xf32>
    %376 = arith.addf %374, %375 : vector<8x256xf32>
    %377 = arith.mulf %376, %369 : vector<8x256xf32>
    %cst_222 = arith.constant -0.284496725 : f32
    %378 = vector.broadcast %cst_222 : f32 to vector<8x256xf32>
    %379 = arith.addf %377, %378 : vector<8x256xf32>
    %380 = arith.mulf %379, %369 : vector<8x256xf32>
    %cst_223 = arith.constant 0.254829586 : f32
    %381 = vector.broadcast %cst_223 : f32 to vector<8x256xf32>
    %382 = arith.addf %380, %381 : vector<8x256xf32>
    %383 = arith.mulf %382, %369 : vector<8x256xf32>
    %cst_224 = arith.constant 0.000000e+00 : f32
    %384 = vector.broadcast %cst_224 : f32 to vector<8x256xf32>
    %385 = arith.subf %384, %363 : vector<8x256xf32>
    %386 = arith.mulf %385, %363 : vector<8x256xf32>
    %387 = math.exp %386 : vector<8x256xf32>
    %388 = arith.mulf %383, %387 : vector<8x256xf32>
    %cst_225 = arith.constant 1.000000e+00 : f32
    %389 = vector.broadcast %cst_225 : f32 to vector<8x256xf32>
    %390 = arith.subf %389, %388 : vector<8x256xf32>
    %cst_226 = arith.constant 0.000000e+00 : f32
    %391 = vector.broadcast %cst_226 : f32 to vector<8x256xf32>
    %392 = arith.cmpf oge, %362, %391 : vector<8x256xf32>
    %cst_227 = arith.constant 0.000000e+00 : f32
    %393 = vector.broadcast %cst_227 : f32 to vector<8x256xf32>
    %394 = arith.subf %393, %390 : vector<8x256xf32>
    %395 = arith.select %392, %390, %394 : vector<8x256xi1>, vector<8x256xf32>
    %cst_228 = arith.constant 1.000000e+00 : f32
    %396 = vector.broadcast %cst_228 : f32 to vector<8x256xf32>
    %397 = arith.addf %396, %395 : vector<8x256xf32>
    %398 = arith.mulf %360, %397 : vector<8x256xf32>
    %c0_229 = arith.constant 0 : index
    %c0_230 = arith.constant 0 : index
    %399 = vector.load %arg25[%c0_229, %c0_230] : memref<8x8xf32, #tpu.memory_space<vmem>>, vector<8x8xf32>
    %cst_231 = arith.constant dense<0.000000e+00> : vector<8x256xf32>
    %400 = tpu.matmul %399, %398, %cst_231 {dimension_numbers = #tpu.dot_dimension_numbers<[1], [0], [0], [1], [0, 0, 1, 1], [], []>, precision = #tpu.contract_precision<fp32>} : vector<8x8xf32>, vector<8x256xf32>, vector<8x256xf32> -> vector<8x256xf32>
    %c0_232 = arith.constant 0 : index
    %c0_233 = arith.constant 0 : index
    %401 = vector.load %arg26[%c0_232, %c0_233] : memref<8x1xf32, #tpu.memory_space<vmem>>, vector<8x1xf32>
    %402 = vector.broadcast %401 : vector<8x1xf32> to vector<8x256xf32>
    %403 = arith.addf %400, %402 : vector<8x256xf32>
    %c0_234 = arith.constant 0 : index
    %c0_235 = arith.constant 0 : index
    %c0_236 = arith.constant 0 : index
    %404 = vector.load %arg27[%c0_234, %c0_235, %c0_236] : memref<1x8x256xf32, #tpu.memory_space<vmem>>, vector<1x8x256xf32>
    %405 = vector.shape_cast %404 : vector<1x8x256xf32> to vector<8x256xf32>
    %406 = vector.shape_cast %403 : vector<8x256xf32> to vector<1x8x256xf32>
    tpu.vector_store %arg27[%c0_234, %c0_235, %c0_236], %406 {strides = array<i32>} : memref<1x8x256xf32, #tpu.memory_space<vmem>>, vector<1x8x256xf32>,
    return
  }
  func.func @transform_0(%arg0: i32) -> (i32, i32, i32) {
    %c0_i32 = arith.constant 0 : i32
    %c0_i32_0 = arith.constant 0 : i32
    %c0_i32_1 = arith.constant 0 : i32
    return %arg0, %c0_i32, %c0_i32_0 : i32, i32, i32
  }
  func.func @transform_1(%arg0: i32) -> (i32, i32, i32) {
    %c0_i32 = arith.constant 0 : i32
    %c0_i32_0 = arith.constant 0 : i32
    %c0_i32_1 = arith.constant 0 : i32
    return %arg0, %c0_i32, %c0_i32_0 : i32, i32, i32
  }
  func.func @transform_2(%arg0: i32) -> (i32, i32, i32) {
    %c0_i32 = arith.constant 0 : i32
    %c0_i32_0 = arith.constant 0 : i32
    %c0_i32_1 = arith.constant 0 : i32
    %c0_i32_2 = arith.constant 0 : i32
    return %c0_i32, %c0_i32_0, %c0_i32_1 : i32, i32, i32
  }
  func.func @transform_3(%arg0: i32) -> (i32, i32) {
    %c0_i32 = arith.constant 0 : i32
    %c0_i32_0 = arith.constant 0 : i32
    %c0_i32_1 = arith.constant 0 : i32
    return %c0_i32, %c0_i32_0 : i32, i32
  }
  func.func @transform_4(%arg0: i32) -> (i32, i32) {
    %c0_i32 = arith.constant 0 : i32
    %c0_i32_0 = arith.constant 0 : i32
    %c0_i32_1 = arith.constant 0 : i32
    return %c0_i32, %c0_i32_0 : i32, i32
  }
  func.func @transform_5(%arg0: i32) -> (i32, i32) {
    %c0_i32 = arith.constant 0 : i32
    %c0_i32_0 = arith.constant 0 : i32
    %c0_i32_1 = arith.constant 0 : i32
    return %c0_i32, %c0_i32_0 : i32, i32
  }
  func.func @transform_6(%arg0: i32) -> (i32, i32) {
    %c0_i32 = arith.constant 0 : i32
    %c0_i32_0 = arith.constant 0 : i32
    %c0_i32_1 = arith.constant 0 : i32
    return %c0_i32, %c0_i32_0 : i32, i32
  }
  func.func @transform_7(%arg0: i32) -> (i32, i32) {
    %c0_i32 = arith.constant 0 : i32
    %c0_i32_0 = arith.constant 0 : i32
    %c0_i32_1 = arith.constant 0 : i32
    return %c0_i32, %c0_i32_0 : i32, i32
  }
  func.func @transform_8(%arg0: i32) -> (i32, i32) {
    %c0_i32 = arith.constant 0 : i32
    %c0_i32_0 = arith.constant 0 : i32
    %c0_i32_1 = arith.constant 0 : i32
    return %c0_i32, %c0_i32_0 : i32, i32
  }
  func.func @transform_9(%arg0: i32) -> (i32, i32) {
    %c0_i32 = arith.constant 0 : i32
    %c0_i32_0 = arith.constant 0 : i32
    %c0_i32_1 = arith.constant 0 : i32
    return %c0_i32, %c0_i32_0 : i32, i32
  }
  func.func @transform_10(%arg0: i32) -> (i32, i32) {
    %c0_i32 = arith.constant 0 : i32
    %c0_i32_0 = arith.constant 0 : i32
    %c0_i32_1 = arith.constant 0 : i32
    return %c0_i32, %c0_i32_0 : i32, i32
  }
  func.func @transform_11(%arg0: i32) -> (i32, i32, i32) {
    %c0_i32 = arith.constant 0 : i32
    %c0_i32_0 = arith.constant 0 : i32
    %c0_i32_1 = arith.constant 0 : i32
    %c0_i32_2 = arith.constant 0 : i32
    return %c0_i32, %c0_i32_0, %c0_i32_1 : i32, i32, i32
  }
  func.func @transform_12(%arg0: i32) -> (i32, i32) {
    %c0_i32 = arith.constant 0 : i32
    %c0_i32_0 = arith.constant 0 : i32
    %c0_i32_1 = arith.constant 0 : i32
    return %c0_i32, %c0_i32_0 : i32, i32
  }
  func.func @transform_13(%arg0: i32) -> (i32, i32) {
    %c0_i32 = arith.constant 0 : i32
    %c0_i32_0 = arith.constant 0 : i32
    %c0_i32_1 = arith.constant 0 : i32
    return %c0_i32, %c0_i32_0 : i32, i32
  }
  func.func @transform_14(%arg0: i32) -> (i32, i32) {
    %c0_i32 = arith.constant 0 : i32
    %c0_i32_0 = arith.constant 0 : i32
    %c0_i32_1 = arith.constant 0 : i32
    return %c0_i32, %c0_i32_0 : i32, i32
  }
  func.func @transform_15(%arg0: i32) -> (i32, i32) {
    %c0_i32 = arith.constant 0 : i32
    %c0_i32_0 = arith.constant 0 : i32
    %c0_i32_1 = arith.constant 0 : i32
    return %c0_i32, %c0_i32_0 : i32, i32
  }
  func.func @transform_16(%arg0: i32) -> (i32, i32) {
    %c0_i32 = arith.constant 0 : i32
    %c0_i32_0 = arith.constant 0 : i32
    %c0_i32_1 = arith.constant 0 : i32
    return %c0_i32, %c0_i32_0 : i32, i32
  }
  func.func @transform_17(%arg0: i32) -> (i32, i32) {
    %c0_i32 = arith.constant 0 : i32
    %c0_i32_0 = arith.constant 0 : i32
    %c0_i32_1 = arith.constant 0 : i32
    return %c0_i32, %c0_i32_0 : i32, i32
  }
  func.func @transform_18(%arg0: i32) -> (i32, i32) {
    %c0_i32 = arith.constant 0 : i32
    %c0_i32_0 = arith.constant 0 : i32
    %c0_i32_1 = arith.constant 0 : i32
    return %c0_i32, %c0_i32_0 : i32, i32
  }
  func.func @transform_19(%arg0: i32) -> (i32, i32) {
    %c0_i32 = arith.constant 0 : i32
    %c0_i32_0 = arith.constant 0 : i32
    %c0_i32_1 = arith.constant 0 : i32
    return %c0_i32, %c0_i32_0 : i32, i32
  }
  func.func @transform_20(%arg0: i32) -> (i32, i32) {
    %c0_i32 = arith.constant 0 : i32
    %c0_i32_0 = arith.constant 0 : i32
    %c0_i32_1 = arith.constant 0 : i32
    return %c0_i32, %c0_i32_0 : i32, i32
  }
  func.func @transform_21(%arg0: i32) -> (i32, i32) {
    %c0_i32 = arith.constant 0 : i32
    %c0_i32_0 = arith.constant 0 : i32
    %c0_i32_1 = arith.constant 0 : i32
    return %c0_i32, %c0_i32_0 : i32, i32
  }
  func.func @transform_22(%arg0: i32) -> (i32, i32, i32) {
    %c0_i32 = arith.constant 0 : i32
    %c0_i32_0 = arith.constant 0 : i32
    %c0_i32_1 = arith.constant 0 : i32
    %c0_i32_2 = arith.constant 0 : i32
    return %c0_i32, %c0_i32_0, %c0_i32_1 : i32, i32, i32
  }
  func.func @transform_23(%arg0: i32) -> (i32, i32) {
    %c0_i32 = arith.constant 0 : i32
    %c0_i32_0 = arith.constant 0 : i32
    %c0_i32_1 = arith.constant 0 : i32
    return %c0_i32, %c0_i32_0 : i32, i32
  }
  func.func @transform_24(%arg0: i32) -> (i32, i32) {
    %c0_i32 = arith.constant 0 : i32
    %c0_i32_0 = arith.constant 0 : i32
    %c0_i32_1 = arith.constant 0 : i32
    return %c0_i32, %c0_i32_0 : i32, i32
  }
  func.func @transform_25(%arg0: i32) -> (i32, i32) {
    %c0_i32 = arith.constant 0 : i32
    %c0_i32_0 = arith.constant 0 : i32
    %c0_i32_1 = arith.constant 0 : i32
    return %c0_i32, %c0_i32_0 : i32, i32
  }
  func.func @transform_26(%arg0: i32) -> (i32, i32, i32) {
    %c0_i32 = arith.constant 0 : i32
    %c0_i32_0 = arith.constant 0 : i32
    %c0_i32_1 = arith.constant 0 : i32
    return %arg0, %c0_i32, %c0_i32_0 : i32, i32, i32
  }
}

</mosaic_0001>

<bundles_post_ra>
// kernel: channel_attention_block_pallas.1
= control target key start
LH: loop header
LB: loop body
LE: loop exit
PB: predicated region body
PF: predicated region fallthrough
CT: control target
= control target key end

     0   :  { %s6141_s27 = smov 0   ;;  %s7240_s0 = inlined_call_operand.vmem [shape: f32[2,8,256], index: 0, kind: input, shape index: {}]   ;;  %s7241_s1 = inlined_call_operand.vmem [shape: f32[2,8,256], index: 1, kind: input, shape index: {}]   ;;  %s7242_s2 = inlined_call_operand.vmem [shape: f32[9,1,256], index: 2, kind: input, shape index: {}]   ;;  %s7243_s3 = inlined_call_operand.vmem [shape: f32[8,1], index: 3, kind: input, shape index: {}]   ;;  %s7244_s4 = inlined_call_operand.vmem [shape: f32[8,1], index: 4, kind: input, shape index: {}]   ;;  %s7245_s5 = inlined_call_operand.vmem [shape: f32[8,1], index: 5, kind: input, shape index: {}]   ;;  %s7246_s6 = inlined_call_operand.vmem [shape: f32[8,1], index: 6, kind: input, shape index: {}]   ;;  %s7247_s7 = inlined_call_operand.vmem [shape: f32[8,1], index: 7, kind: input, shape index: {}]   ;;  %s7248_s8 = inlined_call_operand.vmem [shape: f32[8,1], index: 8, kind: input, shape index: {}]   ;;  %s7249_s9 = inlined_call_operand.vmem [shape: f32[16,8], index: 9, kind: input, shape index: {}]   ;;  %s7250_s10 = inlined_call_operand.vmem [shape: f32[16,1], index: 10, kind: input, shape index: {}]   ;;  %s7251_s11 = inlined_call_operand.vmem [shape: f32[9,16,1], index: 11, kind: input, shape index: {}]   ;;  %s7252_s12 = inlined_call_operand.vmem [shape: f32[16,1], index: 12, kind: input, shape index: {}]   ;;  %s7253_s13 = inlined_call_operand.vmem [shape: f32[8,72], index: 13, kind: input, shape index: {}]   ;;  %s7254_s14 = inlined_call_operand.vmem [shape: f32[8,1], index: 14, kind: input, shape index: {}]   ;;  %s7255_s15 = inlined_call_operand.vmem [shape: f32[8,1], index: 15, kind: input, shape index: {}]   ;;  %s7256_s16 = inlined_call_operand.vmem [shape: f32[8,8], index: 16, kind: input, shape index: {}]   ;;  %s7257_s17 = inlined_call_operand.vmem [shape: f32[8,8], index: 17, kind: input, shape index: {}]   ;;  %s7258_s18 = inlined_call_operand.vmem [shape: f32[8,1], index: 18, kind: input, shape index: {}]   ;;  %s7259_s19 = inlined_call_operand.vmem [shape: f32[8,8], index: 19, kind: input, shape index: {}]   ;;  %s7260_s20 = inlined_call_operand.vmem [shape: f32[8,8], index: 20, kind: input, shape index: {}]   ;;  %s7261_s21 = inlined_call_operand.vmem [shape: f32[8,1], index: 21, kind: input, shape index: {}]   ;;  %s7262_s22 = inlined_call_operand.vmem [shape: f32[9,8,1], index: 22, kind: input, shape index: {}]   ;;  %s7263_s23 = inlined_call_operand.vmem [shape: f32[8,1], index: 23, kind: input, shape index: {}]   ;;  %s7264_s24 = inlined_call_operand.vmem [shape: f32[8,8], index: 24, kind: input, shape index: {}]   ;;  %s7265_s25 = inlined_call_operand.vmem [shape: f32[8,1], index: 25, kind: input, shape index: {}]   ;;  %s7266_s26 = inlined_call_operand.vmem [shape: f32[2,8,256], index: 26, kind: output, shape index: {}]  }
   0x1   :  { %7315 = sst [smem:[#allocation9_spill]] %s7240_s0 }
   0x2   :  { %7316 = sst [smem:[#allocation10_spill]] %s7241_s1 }
   0x3   :  { %7317 = sst [smem:[#allocation11_spill]] %s7242_s2 }
   0x4   :  { %7318 = sst [smem:[#allocation12_spill]] %s7243_s3 }
   0x5   :  { %7319 = sst [smem:[#allocation13_spill]] %s7244_s4 }
   0x6   :  { %7320 = sst [smem:[#allocation14_spill]] %s7245_s5 }
   0x7   :  { %7321 = sst [smem:[#allocation15_spill]] %s7246_s6 }
   0x8   :  { %7322 = sst [smem:[#allocation16_spill]] %s7247_s7 }
   0x9   :  { %7323 = sst [smem:[#allocation17_spill]] %s7248_s8 }
   0xa   :  { %7324 = sst [smem:[#allocation18_spill]] %s7249_s9 }
   0xb   :  { %7325 = sst [smem:[#allocation19_spill]] %s7250_s10 }
   0xc   :  { %7326 = sst [smem:[#allocation20_spill]] %s7251_s11 }
   0xd   :  { %7327 = sst [smem:[#allocation21_spill]] %s7252_s12 }
   0xe   :  { %7328 = sst [smem:[#allocation22_spill]] %s7253_s13 }
   0xf   :  { %7329 = sst [smem:[#allocation23_spill]] %s7254_s14 }
  0x10   :  { %7330 = sst [smem:[#allocation24_spill]] %s7255_s15 }
  0x11   :  { %7331 = sst [smem:[#allocation25_spill]] %s7256_s16 }
  0x12   :  { %7332 = sst [smem:[#allocation26_spill]] %s7258_s18 }
  0x13 LB: > { %s5892_s3 = sadd.s32 4294967295, %s5994_s27   ;;  %p5896_p0 = scmp.ge.s32.totalorder %s5994_s27, 1  ;;  %s5994_s27 = sphi %s6141_s27, %s36_s27  }
  0x14   : > { %p722_p1 = scmp.lt.s32.totalorder %s5994_s27, 3 }
  0x16   : > { %p723_p2 = pnand %p5896_p0, %p722_p1 }
  0x18   : > { %726 = sbr.rel (%p723_p2) target bundleno = 2450 (0x992), region = 124 }
  0x1d   : > { %s7333_s8 = sld [smem:[#allocation14_spill]]  ;;  %v5996_v2 = vmov 0   ;;  %v7292_v5 = vmov 0.0   ;;  %p797_p3 = scmp.lt.s32.totalorder %s5892_s3, 1  ;;  %vm939_vm0 = vcmask 64512   ;;  %vm1991_vm6 = vcmask 588800  }
  0x1e   : > { %s7334_s0 = sld [smem:[#allocation12_spill]]  ;;  %5959 = vset.pattern.permute.xlu1 %v5996_v2  ;;  %5958 = vset.pattern.permute.xlu0 %v5996_v2  ;;  %s7270_s7 = smov 111  }
  0x1f   : > { %s7335_s2 = sld [smem:[#allocation15_spill]]  ;;  %1012 = vmatprep.mubr.f32.mxu0 %v7292_v5  ;;  %1109 = vmatprep.mubr.f32.mxu1 %v7292_v5  ;;  %s7396_s3 = smov (!%p797_p3, %s5892_s3), 1 }
  0x20   : > { %s7336_s6 = sld [smem:[#allocation13_spill]]  ;;  %s6163_s1 = sshll.u32 %s7396_s3, 4 }
  0x21   : > { %s7338_s9 = sld [smem:[#allocation9_spill]]  ;;  %s7276_s28 = smov 112  }
  0x22   : > { %s7339_s5 = sld [smem:[#allocation18_spill]]  ;;  %s7274_s29 = smov 1  }
  0x23   : > { %v909_v0 = vld [vmem:[%s7333_s8] sm:$0xff]  ;;  %s7337_s8 = sld [smem:[#allocation10_spill]]  ;;  %s7378_s3 = smov 112  }
  0x24   : > { %v855_v1 = vld [vmem:[%s7334_s0] sm:$0xff]  ;;  %912 = vperm.xlu1 %5959, %v909_v0   ;;  %s7310_s0 = smov 15   ;;  %s7342_s11 = sld [smem:[#allocation20_spill]] }
  0x25   : > { %858 = vperm.xlu0 %5958, %v855_v1   ;;  %v917_v3 = vld [vmem:[%s7335_s2] sm:$0xff]  ;;  %s7344_s12 = sld [smem:[#allocation21_spill]]  ;;  %s7379_s2 = smov 1  }
  0x26   : > { %v863_v4 = vld [vmem:[%s7336_s6] sm:$0xff]  ;;  %s7345_s14 = sld [smem:[#allocation23_spill]]  ;;  %s7380_s10 = smov 113  }
  0x27   : > { %s801_s30 = scalar_lea.vmem %s7338_s9, %s6163_s1  ;;  %s7278_s9 = smov 16  }
  0x28   : > { %920 = vperm.xlu1 %5959, %v917_v3   ;;  %v812_v8 = vld [vmem:[%s801_s30] sm:$0xff]  ;;  %v813_v10 = vld [vmem:[%s801_s30 + $0x8] sm:$0xff]  ;;  %s7282_s30 = smov 17   ;;  %s7352_s13 = sld [smem:[#allocation22_spill]] }
  0x29   : > { %866 = vperm.xlu0 %5958, %v863_v4   ;;  %s806_s4 = scalar_lea.vmem %s7337_s8, %s6163_s1  ;;  %v816_v12 = vrot.slane %v812_v8, 4  ;;  %v822_v13 = vrot.slane %v813_v10, 4  ;;  %s7272_s8 = smov 113  }
  0x2a   : > { %v814_v6 = vld [vmem:[%s806_s4] sm:$0xff]  ;;  %v815_v7 = vld [vmem:[%s806_s4 + $0x8] sm:$0xff]  ;;  %s7280_s4 = smov 127   ;;  %s7387_s15 = sld [smem:[#allocation24_spill]] }
  0x2b   : > { %v871_v9 = vrot.slane %v814_v6, 4  ;;  %v877_v11 = vrot.slane %v815_v7, 4  ;;  %v817_v16 = vadd.f32 %v816_v12, %v812_v8  ;;  %v823_v17 = vadd.f32 %v822_v13, %v813_v10  ;;  %s7388_s6 = smov 15   ;;  %s7389_s16 = sld [smem:[#allocation25_spill]] }
  0x2c   : > { %s7390_s18 = sld [smem:[#allocation26_spill]] }
  0x2d   : > { %v872_v14 = vadd.f32 %v871_v9, %v814_v6  ;;  %v878_v15 = vadd.f32 %v877_v11, %v815_v7  ;;  %v818_v20 = vrot.slane %v817_v16, 2  ;;  %v824_v21 = vrot.slane %v823_v17, 2 }
  0x2f   : > { %v873_v18 = vrot.slane %v872_v14, 2  ;;  %v879_v19 = vrot.slane %v878_v15, 2  ;;  %v819_v24 = vadd.f32 %v818_v20, %v817_v16  ;;  %v825_v25 = vadd.f32 %v824_v21, %v823_v17  ;;  %v926_v17 = vld [vmem:[%s7339_s5 + $0x8] sm:$0xff] }
  0x31   : > { %v874_v22 = vadd.f32 %v873_v18, %v872_v14  ;;  %v880_v23 = vadd.f32 %v879_v19, %v878_v15  ;;  %v820_v28 = vrot.slane %v819_v24, 1  ;;  %v826_v29 = vrot.slane %v825_v25, 1  ;;  %v925_v15 = vld [vmem:[%s7339_s5] sm:$0xff] }
  0x32   : > { %v941_v16 = vsel %vm939_vm0, %v925_v15, 0  ;;  %v944_v19 = vsel %vm939_vm0, %v926_v17, 0 }
  0x33   : > { %v875_v26 = vrot.slane %v874_v22, 1  ;;  %v881_v27 = vrot.slane %v880_v23, 1  ;;  %v821_v32 = vadd.f32 %v820_v28, %v819_v24  ;;  %v827_v33 = vadd.f32 %v826_v29, %v825_v25 }
  0x34   : > { %v6180_v18 = vand.u32 4294901760, %v941_v16  ;;  %v6186_v24 = vand.u32 4294901760, %v944_v19 }
  0x35   : > { %v876_v30 = vadd.f32 %v875_v26, %v874_v22  ;;  %v882_v31 = vadd.f32 %v881_v27, %v880_v23  ;;  %v829_v36 = vmul.f32 0.125, %v821_v32  ;;  %v830_v37 = vmul.f32 0.125, %v827_v33 }
  0x36   : > { %v6184_v23 = vsub.f32 %v941_v16, %v6180_v18 }
  0x37   : > { %v883_v34 = vmul.f32 0.125, %v876_v30  ;;  %v884_v35 = vmul.f32 0.125, %v882_v31  ;;  %v831_v40 = vsub.f32 %v812_v8, %v829_v36  ;;  %v832_v41 = vsub.f32 %v813_v10, %v830_v37 }
  0x38   : > { %v1015_v30 = vand.u32 4294901760, %v6184_v23  ;;  %v6190_v31 = vsub.f32 %v944_v19, %v6186_v24 }
  0x39   : > { %v885_v38 = vsub.f32 %v814_v6, %v883_v34  ;;  %v886_v39 = vsub.f32 %v815_v7, %v884_v35  ;;  %v833_v44 = vmul.f32 %v831_v40, %v831_v40  ;;  %v834_v45 = vmul.f32 %v832_v41, %v832_v41 }
  0x3b   : > { %v887_v42 = vmul.f32 %v885_v38, %v885_v38  ;;  %v888_v43 = vmul.f32 %v886_v39, %v886_v39  ;;  %v835_v48 = vrot.slane %v833_v44, 4  ;;  %v841_v49 = vrot.slane %v834_v45, 4 }
  0x3d   : > { %v889_v46 = vrot.slane %v887_v42, 4  ;;  %v895_v47 = vrot.slane %v888_v43, 4  ;;  %v836_v52 = vadd.f32 %v835_v48, %v833_v44  ;;  %v842_v53 = vadd.f32 %v841_v49, %v834_v45 }
  0x3f   : > { %v890_v50 = vadd.f32 %v889_v46, %v887_v42  ;;  %v896_v51 = vadd.f32 %v895_v47, %v888_v43  ;;  %v837_v56 = vrot.slane %v836_v52, 2  ;;  %v843_v57 = vrot.slane %v842_v53, 2 }
  0x40   : > { %v1016_v42 = vsub.f32 %v6184_v23, %v1015_v30 }
  0x41   : > { %v891_v54 = vrot.slane %v890_v50, 2  ;;  %v897_v55 = vrot.slane %v896_v51, 2  ;;  %v838_v60 = vadd.f32 %v837_v56, %v836_v52  ;;  %v844_v61 = vadd.f32 %v843_v57, %v842_v53 }
  0x42   : > { %v1017_v48 = vand.u32 4294901760, %v1016_v42 }
  0x43   : > { %v892_v58 = vadd.f32 %v891_v54, %v890_v50  ;;  %v898_v59 = vadd.f32 %v897_v55, %v896_v51  ;;  %v839_v0 = vrot.slane %v838_v60, 1  ;;  %v845_v1 = vrot.slane %v844_v61, 1 }
  0x45   : > { %v893_v62 = vrot.slane %v892_v58, 1  ;;  %v899_v63 = vrot.slane %v898_v59, 1  ;;  %v840_v4 = vadd.f32 %v839_v0, %v838_v60  ;;  %v846_v6 = vadd.f32 %v845_v1, %v844_v61  ;;  %v5911_v61 = vld [vmem:[%s7342_s11 + $0x10] sm:$0xff]  ;;  %v5913_v0 = vld [vmem:[%s7342_s11 + $0x20] sm:$0xff] }
  0x46   : > { %v1985_v1 = vld [vmem:[%s7345_s14] sm:$0xff] }
  0x47   : > { %v894_v2 = vadd.f32 %v893_v62, %v892_v58  ;;  %v900_v3 = vadd.f32 %v899_v63, %v898_v59  ;;  %v847_v9 = vmul.f32 0.125, %v840_v4  ;;  %v848_v10 = vmul.f32 0.125, %v846_v6  ;;  %v1720_v59 = vld [vmem:[%s7342_s11] sm:$0xff]  ;;  %v5915_v63 = vld [vmem:[%s7342_s11 + $0x30] sm:$0xff] }
  0x48   : > { %v1718_v62 = vld [vmem:[%s7344_s12] sm:$0xff]  ;;  %v5919_v4 = vld [vmem:[%s7342_s11 + $0x50] sm:$0xff] }
  0x49   : > { %v901_v7 = vmul.f32 0.125, %v894_v2  ;;  %v902_v8 = vmul.f32 0.125, %v900_v3  ;;  %v849_v13 = vadd.f32 1e-05, %v847_v9  ;;  %v850_v14 = vadd.f32 1e-05, %v848_v10 }
  0x4a   : > { %v5917_v2 = vld [vmem:[%s7342_s11 + $0x40] sm:$0xff]  ;;  %v5923_v6 = vld [vmem:[%s7342_s11 + $0x70] sm:$0xff] }
  0x4b   : > { %v903_v11 = vadd.f32 1e-05, %v901_v7  ;;  %v904_v12 = vadd.f32 1e-05, %v902_v8  ;;  %v5921_v3 = vld [vmem:[%s7342_s11 + $0x60] sm:$0xff]  ;;  %v1468_v7 = vlaneseq }
  0x4d   : > { %5960 = vrsqrt.f32 %v903_v11  ;;  %v1478_v8 = vshrl.u32 %v1468_v7, 7  ;;  %v6307_v15 = vand.u32 127, %v1468_v7 }
  0x4e   : > { %5962 = vrsqrt.f32 %v904_v12 }
  0x4f   : > { %5964 = vrsqrt.f32 %v849_v13  ;;  %v6292_v9 = vsub.s32 1, %v1478_v8  ;;  %v6297_v11 = vsub.s32 0, %v1478_v8  ;;  %vm1696_vm1 = vcmp.lt.s32.totalorder %v6307_v15, 111 }
  0x50   : > { %5966 = vrsqrt.f32 %v850_v14  ;;  %vm1666_vm2 = vcmp.lt.s32.totalorder %v6307_v15, 112  ;;  %vm1636_vm3 = vcmp.lt.s32.totalorder %v6307_v15, 113  ;;  %vm1606_vm4 = vcmp.lt.s32.totalorder %v6307_v15, 127 }
  0x51   : > { %vm1559_vm5 = vcmp.lt.s32.totalorder %v6307_v15, 1  ;;  %vm1529_vm7 = vcmp.lt.s32.totalorder %v6307_v15, 15  ;;  %vm1499_vm8 = vcmp.lt.s32.totalorder %v6307_v15, 16  ;;  %vm1470_vm9 = vcmp.lt.s32.totalorder %v6307_v15, 17 }
  0x5a   : > { %v5961_v20 = vpop.eup %5960 }
  0x5b   : > { %v5963_v21 = vpop.eup %5962  ;;  %v907_v26 = vmul.f32 %v5961_v20, %v885_v38  ;;  %v1026_v38 = vand.u32 4294901760, %v6190_v31 }
  0x5c   : > { %v5965_v22 = vpop.eup %5964  ;;  %v908_v27 = vmul.f32 %v5963_v21, %v886_v39 }
  0x5d   : > { %v5967_v25 = vpop.eup %5966  ;;  %v853_v28 = vmul.f32 %v5965_v22, %v831_v40  ;;  %v1027_v49 = vsub.f32 %v6190_v31, %v1026_v38 }
  0x5e   : > { %v854_v29 = vmul.f32 %v5967_v25, %v832_v41 }
  0x5f   : > { %v1028_v53 = vand.u32 4294901760, %v1027_v49 }
  0x9f   : > { %v913_v32 = vpop.permute.xlu1 %912 }
  0xa0   : > { %v859_v33 = vpop.permute.xlu0 %858  ;;  %v915_v34 = vmul.f32 %v913_v32, %v907_v26  ;;  %v916_v35 = vmul.f32 %v913_v32, %v908_v27 }
  0xa1   : > { %v861_v36 = vmul.f32 %v859_v33, %v853_v28  ;;  %v862_v37 = vmul.f32 %v859_v33, %v854_v29 }
  0xa3   : > { %v921_v39 = vpop.permute.xlu1 %920 }
  0xa4   : > { %v867_v40 = vpop.permute.xlu0 %866  ;;  %v923_v41 = vadd.f32 %v921_v39, %v915_v34  ;;  %v924_v43 = vadd.f32 %v921_v39, %v916_v35 }
  0xa5   : > { %v6196_v44 = vadd.f32 %v867_v40, %v861_v36  ;;  %v6198_v45 = vadd.f32 %v867_v40, %v862_v37 }
  0xa6   : > { %v976_v46 = vand.u32 4294901760, %v924_v43  ;;  %v978_v47 = vand.u32 4294901760, %v923_v41 }
  0xa7   : > { %7340 = vst [vmem:[#allocation2_spill] sm:$0xff] %v6196_v44  ;;  %7341 = vst [vmem:[#allocation3_spill] sm:$0xff] %v6198_v45  ;;  %1978 = vrot.lane.b32.xlu1 %v6198_v45, %s7270_s7  ;;  %1976 = vrot.lane.b32.xlu0 %v6196_v44, %s7270_s7  ;;  %s7343_s7 = sld [smem:[#allocation19_spill]] }
  0xa8   : > { %v1072_v50 = vsub.f32 %v923_v41, %v978_v47  ;;  %977 = vmatprep.subr.mxu0 %v976_v46  ;;  %v1066_v51 = vsub.f32 %v924_v43, %v976_v46 }
  0xa9   : > { %979 = vmatpush1.msra.mxu0 %v978_v47 }
  0xaa   : > { %1018 = vmatmul.mubr.f32.vlgmr.msra.gmra.mxu0 %v1017_v48  ;;  %1156 = vmatprep.subr.mxu0 %v1066_v51  ;;  %v1067_v52 = vand.u32 4294901760, %v1066_v51  ;;  %v1073_v54 = vand.u32 4294901760, %v1072_v50 }
  0xab   : > { %1970 = vrot.lane.b32.xlu1 %v6198_v45, %s7276_s28  ;;  %1968 = vrot.lane.b32.xlu0 %v6196_v44, %s7276_s28  ;;  %s7376_s28 = smov 127  }
  0xac   : > { %1159 = vmatpush1.msra.mxu0 %v1072_v50  ;;  %1023 = vmatprep.mubr.f32.mxu0 %v7292_v5  ;;  %v1068_v55 = vsub.f32 %v1066_v51, %v1067_v52  ;;  %v1074_v56 = vsub.f32 %v1072_v50, %v1073_v54 }
  0xad   : > { %1327 = vmatprep.subr.mxu0 %v1067_v52  ;;  %v927_v60 = vld [vmem:[%s7343_s7] sm:$0xff] }
  0xae   : > { %1029 = vmatmul.mubr.f32.gmra.mxu0 %v1028_v53  ;;  %v1069_v57 = vand.u32 4294901760, %v1068_v55  ;;  %v1075_v58 = vand.u32 4294901760, %v1074_v56 }
  0xaf   : > { %1962 = vrot.lane.b32.xlu1 %v6198_v45, %s7272_s8  ;;  %1960 = vrot.lane.b32.xlu0 %v6196_v44, %s7272_s8  ;;  %s7346_s8 = sld [smem:[#allocation11_spill]] }
  0xb0   : > { %1070 = vmatprep.subr.mxu1 %v1069_v57  ;;  %1192 = vmatprep.mubr.f32.mxu0 %v7292_v5 }
  0xb1   : > { %1076 = vmatpush1.msra.mxu1 %v1075_v58 }
  0xb2   : > { %1111 = vmatmul.mubr.f32.vlgmr.msra.gmra.mxu1 %v6180_v18  ;;  %1195 = vmatmul.mubr.f32.vlgmr.msra.gmra.mxu0 %v6184_v23 }
  0xb3   : > { %1240 = vmatprep.subr.mxu1 %v976_v46  ;;  %1331 = vmatpush1.msra.mxu0 %v1073_v54 }
  0xb4   : > { %1954 = vrot.lane.b32.xlu1 %v6198_v45, %s7280_s4  ;;  %1952 = vrot.lane.b32.xlu0 %v6196_v44, %s7280_s4 }
  0xb5   : > { %1242 = vmatpush1.msra.mxu1 %v978_v47  ;;  %1116 = vmatprep.mubr.f32.mxu1 %v7292_v5  ;;  %v5906_v10 = vld [vmem:[%s7346_s8 + $0x8] sm:$0x3]  ;;  %v5910_v16 = vld [vmem:[%s7346_s8 + $0x10] sm:$0x3]  ;;  %v5909_v23 = vld [vmem:[%s7346_s8 + $0xe] sm:$0x3] }
  0xb6   : > { %1410 = vmatprep.subr.mxu1 %v976_v46  ;;  %1118 = vmatmul.mubr.f32.gmra.mxu1 %v6186_v24  ;;  %v6300_v12 = vrot.slane %v5906_v10, %v6292_v9  ;;  %v6303_v13 = vrot.slane %v5906_v10, %v6297_v11  ;;  %v6318_v19 = vrot.slane %v5910_v16, %v6297_v11  ;;  %v5908_v27 = vld [vmem:[%s7346_s8 + $0xc] sm:$0x3]  ;;  %v5905_v37 = vld [vmem:[%s7346_s8 + $0x6] sm:$0x3]  ;;  %v5903_v10 = vld [vmem:[%s7346_s8 + $0x2] sm:$0x3] }
  0xb7   : > { %1200 = vmatprep.mubr.f32.mxu0 %v7292_v5  ;;  %1275 = vmatprep.mubr.f32.mxu1 %v7292_v5  ;;  %v6321_v20 = vrot.slane %v5910_v16, %v6292_v9  ;;  %v6345_v32 = vrot.slane %v5909_v23, %v6297_v11  ;;  %v6348_v33 = vrot.slane %v5909_v23, %v6292_v9 }
  0xb8   : > { %1944 = vrot.lane.b32.xlu1 %v6198_v45, %s7274_s29  ;;  %1942 = vrot.lane.b32.xlu0 %v6196_v44, %s7274_s29  ;;  %v1951_v14 = vmul.f32 %v6300_v12, %v6198_v45  ;;  %v1950_v17 = vmul.f32 %v6303_v13, %v6196_v44  ;;  %7347 = vst [vmem:[#allocation4_spill] sm:$0xff] %v6318_v19  ;;  %s7375_s29 = smov 17  }
  0xb9   : > { %1203 = vmatmul.mubr.f32.gmra.mxu0 %v6190_v31  ;;  %7348 = vst [vmem:[#allocation5_spill] sm:$0xff] %v6321_v20  ;;  %v5907_v31 = vld [vmem:[%s7346_s8 + $0xa] sm:$0x3]  ;;  %7349 = vst [vmem:[#allocation6_spill] sm:$0xff] %v6348_v33  ;;  %v6356_v36 = vrot.slane %v5908_v27, %v6297_v11  ;;  %v6365_v40 = vrot.slane %v5908_v27, %v6292_v9  ;;  %v6390_v53 = vrot.slane %v5905_v37, %v6297_v11 }
  0xba   : > { %1279 = vmatmul.mubr.f32.vlgmr.msra.gmra.mxu1 %v1015_v30  ;;  %1364 = vmatprep.mubr.f32.mxu0 %v7292_v5  ;;  %v6369_v41 = vrot.slane %v5907_v31, %v6297_v11  ;;  %v6387_v52 = vrot.slane %v5907_v31, %v6292_v9  ;;  %v6396_v56 = vrot.slane %v5905_v37, %v6292_v9 }
  0xbb   : > { %1412 = vmatpush1.msra.mxu1 %v978_v47  ;;  %1284 = vmatprep.mubr.f32.mxu1 %v7292_v5  ;;  %7350 = vst [vmem:[#allocation7_spill] sm:$0xff] %v6356_v36  ;;  %7351 = vst [vmem:[#allocation8_spill] sm:$0xff] %v6365_v40  ;;  %v6451_v31 = vrot.slane %v5903_v10, %v6297_v11 }
  0xbc   : > { %1936 = vrot.lane.b32.xlu1 %v6198_v45, %s7310_s0  ;;  %1934 = vrot.lane.b32.xlu0 %v6196_v44, %s7310_s0 }
  0xbd   : > { %1366 = vmatmul.mubr.f32.vlgmr.msra.gmra.mxu0 %v6180_v18 }
  0xbe   : > { %1288 = vmatmul.mubr.f32.gmra.mxu1 %v1026_v38  ;;  %1371 = vmatprep.mubr.f32.mxu0 %v7292_v5 }
  0xbf   : > { %1445 = vmatprep.mubr.f32.mxu1 %v7292_v5 }
  0xc0   : > { %1928 = vrot.lane.b32.xlu1 %v6198_v45, %s7278_s9  ;;  %1926 = vrot.lane.b32.xlu0 %v6196_v44, %s7278_s9  ;;  %s7377_s9 = smov 16  }
  0xc1   : > { %1373 = vmatmul.mubr.f32.gmra.mxu0 %v6186_v24 }
  0xc2   : > { %1447 = vmatmul.mubr.f32.vlgmr.msra.gmra.mxu1 %v6180_v18  ;;  %2077 = vmatprep.mubr.f32.mxu0 %v7292_v5  ;;  %v6314_v18 = vand.u32 4294901760, %v1951_v14 }
  0xc3   : > { %1452 = vmatprep.mubr.f32.mxu1 %v7292_v5 }
  0xc4   : > { %1920 = vrot.lane.b32.xlu1 %v6198_v45, %s7282_s30  ;;  %1918 = vrot.lane.b32.xlu0 %v6196_v44, %s7282_s30  ;;  %v6336_v28 = vsub.f32 %v1951_v14, %v6314_v18  ;;  %v1984_v14 = vld [vmem:[%s7352_s13] sm:$0xff]  ;;  %s7381_s30 = smov 111  }
  0xc6   : > { %1454 = vmatmul.mubr.f32.gmra.mxu1 %v6186_v24  ;;  %v6326_v24 = vand.u32 4294901760, %v1950_v17  ;;  %v7285_v43 = vand.u32 4294901760, %v6336_v28 }
  0xc7   : > { %2243 = vmatprep.mubr.f32.mxu1 %v7292_v5 }
  0xc8   : > { %1724 = vperm.xlu1 %5959, %v1720_v59   ;;  %931 = vperm.xlu0 %5958, %v927_v60   ;;  %v6362_v42 = vsub.f32 %v1950_v17, %v6326_v24 }
  0xca   : > { %v7284_v57 = vand.u32 4294901760, %v6362_v42 }
  0xcc   : > { %1755 = vperm.xlu1 %5959, %v5911_v61   ;;  %1738 = vperm.xlu0 %5958, %v1718_v62   ;;  %v5904_v62 = vld [vmem:[%s7346_s8 + $0x4] sm:$0x3] }
  0xd0   : > { %1797 = vperm.xlu1 %5959, %v5915_v63   ;;  %1776 = vperm.xlu0 %5958, %v5913_v0   ;;  %v6409_v63 = vsub.f32 %v6336_v28, %v7285_v43 }
  0xd4   : > { %1988 = vperm.xlu1 %5959, %v1985_v1   ;;  %1818 = vperm.xlu0 %5958, %v5917_v2  }
  0xd8   : > { %1860 = vperm.xlu1 %5959, %v5921_v3   ;;  %1839 = vperm.xlu0 %5958, %v5919_v4  }
  0xdc   : > { %1881 = vperm.xlu0 %5958, %v5923_v6  }
 0x119   : > { %v1979_v21 = vpop.permute.xlu1 %1978  ;;  %v1977_v22 = vpop.permute.xlu0 %1976 }
 0x11a   : > { %v1980_v25 = vsel %vm1696_vm1, %v1977_v22, %v1979_v21  ;;  %v1981_v26 = vsel %vm1696_vm1, %v1979_v21, %v1977_v22  ;;  %v6439_v21 = vrot.slane %v5904_v62, %v6297_v11  ;;  %v6442_v22 = vrot.slane %v5904_v62, %v6292_v9 }
 0x11b   : > { %v1982_v29 = vmul.f32 %v1980_v25, %v6318_v19  ;;  %v1983_v30 = vmul.f32 %v1981_v26, %v6321_v20 }
 0x11d   : > { %v6351_v34 = vand.u32 4294901760, %v1983_v30  ;;  %v6353_v35 = vand.u32 4294901760, %v1982_v29  ;;  %v1971_v38 = vpop.permute.xlu1 %1970  ;;  %v1969_v39 = vpop.permute.xlu0 %1968 }
 0x11e   : > { %v1972_v48 = vsel %vm1666_vm2, %v1969_v39, %v1971_v38  ;;  %v1973_v49 = vsel %vm1666_vm2, %v1971_v38, %v1969_v39  ;;  %v6457_v38 = vsub.f32 %v6362_v42, %v7284_v57  ;;  %v1993_v39 = vsel %vm1991_vm6, %v1984_v14, 0 }
 0x11f   : > { %v6373_v46 = vsub.f32 %v1983_v30, %v6351_v34  ;;  %v6376_v47 = vsub.f32 %v1982_v29, %v6353_v35  ;;  %2010 = vmatprep.subr.mxu0 %v6351_v34  ;;  %v1974_v50 = vmul.f32 %v1972_v48, %v6345_v32  ;;  %v1975_v51 = vmul.f32 %v1973_v49, %v6348_v33 }
 0x120   : > { %2012 = vmatpush1.msra.mxu0 %v6353_v35 }
 0x121   : > { %v7290_v54 = vand.u32 4294901760, %v6376_v47  ;;  %v7291_v55 = vand.u32 4294901760, %v6373_v46  ;;  %v6399_v58 = vand.u32 4294901760, %v1975_v51  ;;  %v6401_v59 = vand.u32 4294901760, %v1974_v50  ;;  %v1963_v60 = vpop.permute.xlu1 %1962  ;;  %v1961_v61 = vpop.permute.xlu0 %1960 }
 0x122   : > { %v1964_v0 = vsel %vm1636_vm3, %v1961_v61, %v1963_v60  ;;  %v1965_v1 = vsel %vm1636_vm3, %v1963_v60, %v1961_v61 }
 0x123   : > { %v2106_v2 = vsub.f32 %v6373_v46, %v7291_v55  ;;  %v2112_v3 = vsub.f32 %v6376_v47, %v7290_v54  ;;  %v6422_v4 = vsub.f32 %v1975_v51, %v6399_v58  ;;  %v6425_v6 = vsub.f32 %v1974_v50, %v6401_v59  ;;  %2014 = vmatprep.subr.mxu0 %v6399_v58 }
 0x124   : > { %v1966_v7 = vmul.f32 %v1964_v0, %v6356_v36  ;;  %v1967_v8 = vmul.f32 %v1965_v1, %v6365_v40  ;;  %2016 = vmatpush1.msra.mxu0 %v6401_v59 }
 0x125   : > { %v2107_v16 = vand.u32 4294901760, %v2106_v2  ;;  %v2113_v17 = vand.u32 4294901760, %v2112_v3  ;;  %v7286_v23 = vand.u32 4294901760, %v6425_v6  ;;  %v7289_v27 = vand.u32 4294901760, %v6422_v4 }
 0x126   : > { %v6445_v25 = vand.u32 4294901760, %v1967_v8  ;;  %v6447_v26 = vand.u32 4294901760, %v1966_v7  ;;  %v1955_v29 = vpop.permute.xlu1 %1954  ;;  %v1953_v30 = vpop.permute.xlu0 %1952  ;;  %v6483_v3 = vand.u32 4294901760, %v1993_v39 }
 0x127   : > { %2108 = vmatprep.subr.mxu1 %v2107_v16  ;;  %v1956_v50 = vsel %vm1606_vm4, %v1953_v30, %v1955_v29  ;;  %v1957_v51 = vsel %vm1606_vm4, %v1955_v29, %v1953_v30  ;;  %v2118_v62 = vsub.f32 %v6422_v4, %v7289_v27  ;;  %v2124_v1 = vsub.f32 %v6425_v6, %v7286_v23 }
 0x128   : > { %v6461_v48 = vsub.f32 %v1967_v8, %v6445_v25  ;;  %v6464_v49 = vsub.f32 %v1966_v7, %v6447_v26  ;;  %2018 = vmatprep.subr.mxu0 %v6445_v25  ;;  %v1958_v60 = vmul.f32 %v1956_v50, %v6369_v41  ;;  %v1959_v61 = vmul.f32 %v1957_v51, %v6387_v52 }
 0x129   : > { %2020 = vmatpush1.msra.mxu0 %v6447_v26  ;;  %2114 = vmatpush1.msra.mxu1 %v2113_v17  ;;  %v2119_v17 = vand.u32 4294901760, %v2118_v62  ;;  %v6490_v29 = vrot.slane %v5903_v10, %v6292_v9  ;;  %v2125_v51 = vand.u32 4294901760, %v2124_v1  ;;  %v1475_v1 = vld [vmem:[%s7346_s8] sm:$0x3] }
 0x12a   : > { %v7288_v0 = vand.u32 4294901760, %v6464_v49  ;;  %v7287_v2 = vand.u32 4294901760, %v6461_v48  ;;  %v6485_v7 = vand.u32 4294901760, %v1959_v61  ;;  %v6487_v8 = vand.u32 4294901760, %v1958_v60  ;;  %v1945_v14 = vpop.permute.xlu1 %1944  ;;  %v1943_v16 = vpop.permute.xlu0 %1942 }
 0x12b   : > { %v1946_v30 = vsel %vm1559_vm5, %v1943_v16, %v1945_v14  ;;  %v1947_v50 = vsel %vm1559_vm5, %v1945_v14, %v1943_v16  ;;  %2120 = vmatprep.subr.mxu1 %v2119_v17  ;;  %v6532_v54 = vrot.slane %v1475_v1, %v6297_v11 }
 0x12c   : > { %v2130_v57 = vsub.f32 %v6461_v48, %v7287_v2  ;;  %v6500_v43 = vsub.f32 %v1959_v61, %v6485_v7  ;;  %v6503_v23 = vsub.f32 %v1958_v60, %v6487_v8  ;;  %v1948_v10 = vmul.f32 %v1947_v50, %v6390_v53  ;;  %2022 = vmatprep.subr.mxu0 %v6485_v7 }
 0x12d   : > { %v1949_v62 = vmul.f32 %v1946_v30, %v6396_v56  ;;  %2024 = vmatpush1.msra.mxu0 %v6487_v8  ;;  %v2136_v61 = vsub.f32 %v6464_v49, %v7288_v0  ;;  %v6517_v60 = vsub.f32 %v1993_v39, %v6483_v3  ;;  %2126 = vmatpush1.msra.mxu1 %v2125_v51 }
 0x12e   : > { %v2131_v14 = vand.u32 4294901760, %v2130_v57  ;;  %v7295_v16 = vand.u32 4294901760, %v6503_v23  ;;  %v6522_v50 = vand.u32 4294901760, %v1948_v10  ;;  %v1937_v17 = vpop.permute.xlu1 %1936  ;;  %2026 = vmatprep.subr.mxu0 %v6314_v18  ;;  %v1935_v57 = vpop.permute.xlu0 %1934  ;;  %v7294_v2 = vand.u32 4294901760, %v6500_v43 }
 0x12f   : > { %v6520_v30 = vand.u32 4294901760, %v1949_v62  ;;  %v1938_v0 = vsel %vm1529_vm7, %v1935_v57, %v1937_v17  ;;  %v1939_v39 = vsel %vm1529_vm7, %v1937_v17, %v1935_v57  ;;  %2028 = vmatpush1.msra.mxu0 %v6326_v24  ;;  %v2137_v27 = vand.u32 4294901760, %v2136_v61 }
 0x130   : > { %2132 = vmatprep.subr.mxu1 %v2131_v14  ;;  %v6538_v55 = vsub.f32 %v1948_v10, %v6522_v50  ;;  %v1940_v5 = vmul.f32 %v1939_v39, %v6439_v21  ;;  %v1941_v37 = vmul.f32 %v1938_v0, %v6442_v22  ;;  %v2142_v11 = vsub.f32 %v6500_v43, %v7294_v2 }
 0x131   : > { %v6535_v51 = vsub.f32 %v1949_v62, %v6520_v30  ;;  %2030 = vmatprep.subr.mxu0 %v6520_v30  ;;  %2138 = vmatpush1.msra.mxu1 %v2137_v27  ;;  %v2148_v62 = vsub.f32 %v6503_v23, %v7295_v16  ;;  %v6551_v10 = vrot.slane %v1475_v1, %v6292_v9  ;;  %v2161_v39 = vand.u32 4294901760, %v6457_v38 }
 0x132   : > { %2032 = vmatpush1.msra.mxu0 %v6522_v50  ;;  %v6555_v61 = vand.u32 4294901760, %v1941_v37  ;;  %v6557_v17 = vand.u32 4294901760, %v1940_v5  ;;  %v1929_v27 = vpop.permute.xlu1 %1928  ;;  %v1927_v57 = vpop.permute.xlu0 %1926  ;;  %v2143_v9 = vand.u32 4294901760, %v2142_v11 }
 0x133   : > { %v1930_v2 = vsel %vm1499_vm8, %v1927_v57, %v1929_v27  ;;  %v1931_v16 = vsel %vm1499_vm8, %v1929_v27, %v1927_v57  ;;  %v2149_v1 = vand.u32 4294901760, %v2148_v62  ;;  %v7353_v11 = vand.u32 4294901760, %v6535_v51 }
 0x134   : > { %v6565_v14 = vsub.f32 %v1941_v37, %v6555_v61  ;;  %v6568_v0 = vsub.f32 %v1940_v5, %v6557_v17  ;;  %v1932_v44 = vmul.f32 %v1931_v16, %v6451_v31  ;;  %v1933_v45 = vmul.f32 %v1930_v2, %v6490_v29  ;;  %2034 = vmatprep.subr.mxu0 %v6555_v61 }
 0x135   : > { %2144 = vmatprep.subr.mxu1 %v2143_v9  ;;  %2036 = vmatpush1.msra.mxu0 %v6557_v17  ;;  %v2166_v62 = vsub.f32 %v6535_v51, %v7353_v11  ;;  %v7354_v37 = vand.u32 4294901760, %v6538_v55  ;;  %v7355_v27 = vand.u32 4294901760, %v6517_v60  ;;  %v7356_v11 = vand.u32 4294901760, %v6409_v63 }
 0x136   : > { %v6585_v57 = vand.u32 4294901760, %v1933_v45  ;;  %v6587_v9 = vand.u32 4294901760, %v1932_v44  ;;  %2150 = vmatpush1.msra.mxu1 %v2149_v1  ;;  %v1921_v38 = vpop.permute.xlu1 %1920  ;;  %v1919_v20 = vpop.permute.xlu0 %1918  ;;  %v7357_v63 = vand.u32 4294901760, %v6565_v14 }
 0x137   : > { %v2172_v5 = vsub.f32 %v6538_v55, %v7354_v37  ;;  %v2081_v16 = vsub.f32 %v6517_v60, %v7355_v27  ;;  %2156 = vmatprep.subr.mxu1 %v7356_v11  ;;  %v1922_v37 = vsel %vm1470_vm9, %v1919_v20, %v1921_v38  ;;  %v1923_v27 = vsel %vm1470_vm9, %v1921_v38, %v1919_v20 }
 0x138   : > { %v2167_v40 = vand.u32 4294901760, %v2166_v62  ;;  %v6597_v36 = vsub.f32 %v1933_v45, %v6585_v57  ;;  %v6600_v1 = vsub.f32 %v1932_v44, %v6587_v9  ;;  %v1924_v33 = vmul.f32 %v1923_v27, %v6532_v54  ;;  %2162 = vmatpush1.msra.mxu1 %v2161_v39  ;;  %2038 = vmatprep.subr.mxu0 %v6585_v57 }
 0x139   : > { %v2173_v2 = vand.u32 4294901760, %v2172_v5  ;;  %v1925_v19 = vmul.f32 %v1922_v37, %v6551_v10  ;;  %v2178_v20 = vsub.f32 %v6565_v14, %v7357_v63  ;;  %v7358_v62 = vand.u32 4294901760, %v6568_v0  ;;  %2040 = vmatpush1.msra.mxu0 %v6587_v9 }
 0x13a   : > { %2168 = vmatprep.subr.mxu1 %v2167_v40  ;;  %v2082_v5 = vand.u32 4294901760, %v2081_v16  ;;  %v2195_v44 = vand.u32 4294901760, %v6600_v1  ;;  %v6614_v11 = vand.u32 4294901760, %v1924_v33  ;;  %v2189_v40 = vand.u32 4294901760, %v6597_v36 }
 0x13b   : > { %v2184_v45 = vsub.f32 %v6568_v0, %v7358_v62  ;;  %v6612_v38 = vand.u32 4294901760, %v1925_v19  ;;  %2174 = vmatpush1.msra.mxu1 %v2173_v2  ;;  %v2179_v39 = vand.u32 4294901760, %v2178_v20 }
 0x13c   : > { %v6622_v63 = vsub.f32 %v1924_v33, %v6614_v11  ;;  %v2190_v16 = vsub.f32 %v6597_v36, %v2189_v40  ;;  %v2196_v2 = vsub.f32 %v6600_v1, %v2195_v44 }
 0x13d   : > { %v2185_v37 = vand.u32 4294901760, %v2184_v45  ;;  %v6619_v27 = vsub.f32 %v1925_v19, %v6612_v38  ;;  %2042 = vmatprep.subr.mxu0 %v6612_v38  ;;  %2180 = vmatprep.subr.mxu1 %v2179_v39  ;;  %v7359_v45 = vmov 0.0  }
 0x13e   : > { %2044 = vmatpush1.msra.mxu0 %v6614_v11  ;;  %v2207_v20 = vand.u32 4294901760, %v6622_v63  ;;  %v2191_v19 = vand.u32 4294901760, %v2190_v16  ;;  %v2197_v33 = vand.u32 4294901760, %v2196_v2  ;;  %v7360_v2 = vand.u32 4294901760, %v6373_v46 }
 0x13f   : > { %2186 = vmatpush1.msra.mxu1 %v2185_v37  ;;  %2083 = vmatmul.mubr.f32.vlgmr.msra.gmra.mxu0 %v2082_v5  ;;  %v2201_v62 = vand.u32 4294901760, %v6619_v27 }
 0x140   : > { %2267 = vmatprep.subr.mxu0 %v6373_v46  ;;  %2351 = vmatprep.mubr.f32.mxu0 %v7359_v45  ;;  %v2208_v37 = vsub.f32 %v6622_v63, %v2207_v20  ;;  %v7364_v46 = vand.u32 4294901760, %v6461_v48 }
 0x141   : > { %2270 = vmatpush1.msra.mxu0 %v6376_v47  ;;  %2192 = vmatprep.subr.mxu1 %v2191_v19  ;;  %v2202_v39 = vsub.f32 %v6619_v27, %v2201_v62  ;;  %v7361_v19 = vand.u32 4294901760, %v6376_v47  ;;  %v7365_v47 = vand.u32 4294901760, %v6464_v49 }
 0x142   : > { %2273 = vmatprep.subr.mxu0 %v6422_v4  ;;  %2198 = vmatpush1.msra.mxu1 %v2197_v33  ;;  %v2209_v16 = vand.u32 4294901760, %v2208_v37  ;;  %v7362_v33 = vand.u32 4294901760, %v6422_v4  ;;  %v7366_v4 = vand.u32 4294901760, %v6500_v43  ;;  %v7369_v37 = vand.u32 4294901760, %v6336_v28 }
 0x143   : > { %2276 = vmatpush1.msra.mxu0 %v6425_v6  ;;  %v2203_v5 = vand.u32 4294901760, %v2202_v39  ;;  %v7363_v39 = vand.u32 4294901760, %v6425_v6  ;;  %v7367_v6 = vand.u32 4294901760, %v6503_v23 }
 0x144   : > { %2279 = vmatprep.subr.mxu0 %v6461_v48  ;;  %v7368_v48 = vand.u32 4294901760, %v6517_v60 }
 0x145   : > { %2282 = vmatpush1.msra.mxu0 %v6464_v49  ;;  %2204 = vmatprep.subr.mxu1 %v2203_v5  ;;  %v7370_v49 = vand.u32 4294901760, %v6362_v42 }
 0x146   : > { %2285 = vmatprep.subr.mxu0 %v6500_v43  ;;  %2210 = vmatpush1.msra.mxu1 %v2209_v16  ;;  %v7371_v43 = vand.u32 4294901760, %v6535_v51  ;;  %v5925_v16 = vld [vmem:[%s7342_s11 + $0x80] sm:$0xff] }
 0x147   : > { %2288 = vmatpush1.msra.mxu0 %v6503_v23  ;;  %2245 = vmatmul.mubr.f32.vlgmr.msra.gmra.mxu1 %v6483_v3  ;;  %v7372_v23 = vand.u32 4294901760, %v6538_v55 }
 0x148   : > { %2291 = vmatprep.subr.mxu0 %v6336_v28  ;;  %2375 = vmatprep.subr.mxu1 %v6351_v34  ;;  %v7373_v28 = vand.u32 4294901760, %v6565_v14 }
 0x149   : > { %2294 = vmatpush1.msra.mxu0 %v6362_v42  ;;  %2377 = vmatpush1.msra.mxu1 %v6353_v35 }
 0x14a   : > { %2297 = vmatprep.subr.mxu0 %v6535_v51  ;;  %2379 = vmatprep.subr.mxu1 %v6399_v58 }
 0x14b   : > { %2300 = vmatpush1.msra.mxu0 %v6538_v55  ;;  %2381 = vmatpush1.msra.mxu1 %v6401_v59 }
 0x14c   : > { %2303 = vmatprep.subr.mxu0 %v6565_v14  ;;  %2383 = vmatprep.subr.mxu1 %v6445_v25 }
 0x14d   : > { %2306 = vmatpush1.msra.mxu0 %v6568_v0  ;;  %2385 = vmatpush1.msra.mxu1 %v6447_v26 }
 0x14e   : > { %2309 = vmatprep.subr.mxu0 %v6597_v36  ;;  %2387 = vmatprep.subr.mxu1 %v6485_v7 }
 0x14f   : > { %2312 = vmatpush1.msra.mxu0 %v6600_v1  ;;  %2389 = vmatpush1.msra.mxu1 %v6487_v8 }
 0x150   : > { %2315 = vmatprep.subr.mxu0 %v6619_v27  ;;  %2391 = vmatprep.subr.mxu1 %v6314_v18 }
 0x151   : > { %2318 = vmatpush1.msra.mxu0 %v6622_v63  ;;  %2393 = vmatpush1.msra.mxu1 %v6326_v24 }
 0x152   : > { %2354 = vmatmul.mubr.f32.vlgmr.msra.gmra.mxu0 %v6517_v60  ;;  %2395 = vmatprep.subr.mxu1 %v6520_v30 }
 0x153   : > { %2469 = vmatprep.subr.mxu0 %v7360_v2  ;;  %2397 = vmatpush1.msra.mxu1 %v6522_v50  ;;  %v1725_v2 = vpop.permute.xlu1 %1724 }
 0x154   : > { %2473 = vmatpush1.msra.mxu0 %v7361_v19  ;;  %2399 = vmatprep.subr.mxu1 %v6555_v61 }
 0x155   : > { %2477 = vmatprep.subr.mxu0 %v7362_v33  ;;  %2401 = vmatpush1.msra.mxu1 %v6557_v17 }
 0x156   : > { %2481 = vmatpush1.msra.mxu0 %v7363_v39  ;;  %2403 = vmatprep.subr.mxu1 %v6585_v57 }
 0x157   : > { %2485 = vmatprep.subr.mxu0 %v7364_v46  ;;  %2405 = vmatpush1.msra.mxu1 %v6587_v9  ;;  %v1756_v33 = vpop.permute.xlu1 %1755 }
 0x158   : > { %2489 = vmatpush1.msra.mxu0 %v7365_v47  ;;  %2407 = vmatprep.subr.mxu1 %v6612_v38 }
 0x159   : > { %2493 = vmatprep.subr.mxu0 %v7366_v4  ;;  %2409 = vmatpush1.msra.mxu1 %v6614_v11 }
 0x15a   : > { %2442 = vmatprep.mubr.f32.mxu1 %v7359_v45  ;;  %2497 = vmatpush1.msra.mxu0 %v7367_v6 }
 0x15b   : > { %2446 = vmatmul.mubr.f32.vlgmr.msra.gmra.mxu1 %v7368_v48  ;;  %2501 = vmatprep.subr.mxu0 %v7369_v37  ;;  %v1798_v46 = vpop.permute.xlu1 %1797 }
 0x15c   : > { %2593 = vmatprep.subr.mxu1 %v6351_v34  ;;  %2505 = vmatpush1.msra.mxu0 %v7370_v49  ;;  %v7374_v34 = vand.u32 4294901760, %v6568_v0 }
 0x15d   : > { %2595 = vmatpush1.msra.mxu1 %v6353_v35  ;;  %2509 = vmatprep.subr.mxu0 %v7371_v43 }
 0x15e   : > { %2597 = vmatprep.subr.mxu1 %v6399_v58  ;;  %2513 = vmatpush1.msra.mxu0 %v7372_v23  ;;  %v932_v58 = vpop.permute.xlu0 %931 }
 0x15f   : > { %2599 = vmatpush1.msra.mxu1 %v6401_v59  ;;  %2517 = vmatprep.subr.mxu0 %v7373_v28  ;;  %v6795_v4 = vpop.permute.xlu1 %1988 }
 0x160   : > { %2601 = vmatprep.subr.mxu1 %v6445_v25  ;;  %2521 = vmatpush1.msra.mxu0 %v7374_v34 }
 0x161   : > { %2603 = vmatpush1.msra.mxu1 %v6447_v26  ;;  %2525 = vmatprep.subr.mxu0 %v2189_v40 }
 0x162   : > { %2605 = vmatprep.subr.mxu1 %v6485_v7  ;;  %2529 = vmatpush1.msra.mxu0 %v2195_v44  ;;  %v1739_v19 = vpop.permute.xlu0 %1738 }
 0x163   : > { %2607 = vmatpush1.msra.mxu1 %v6487_v8  ;;  %2533 = vmatprep.subr.mxu0 %v2201_v62  ;;  %v6799_v48 = vpop.permute.xlu1 %1860 }
 0x164   : > { %2609 = vmatprep.subr.mxu1 %v6314_v18  ;;  %2537 = vmatpush1.msra.mxu0 %v2207_v20 }
 0x165   : > { %2570 = vmatprep.mubr.f32.mxu0 %v7359_v45  ;;  %2611 = vmatpush1.msra.mxu1 %v6326_v24 }
 0x166   : > { %2572 = vmatmul.mubr.f32.vlgmr.msra.gmra.mxu0 %v6483_v3  ;;  %2613 = vmatprep.subr.mxu1 %v6520_v30  ;;  %v1777_v39 = vpop.permute.xlu0 %1776 }
 0x167   : > { %2615 = vmatpush1.msra.mxu1 %v6522_v50  ;;  %2660 = vmatprep.mubr.f32.mxu1 %v7359_v45 }
 0x168   : > { %2617 = vmatprep.subr.mxu1 %v6555_v61 }
 0x169   : > { %2619 = vmatpush1.msra.mxu1 %v6557_v17 }
 0x16a   : > { %2621 = vmatprep.subr.mxu1 %v6585_v57  ;;  %v1019_v18 = vpop.f32.mrf.mxu0  ;;  %v1819_v47 = vpop.permute.xlu0 %1818 }
 0x16b   : > { %2623 = vmatpush1.msra.mxu1 %v6587_v9  ;;  %v1020_v25 = vadd.f32 %v1019_v18, %v932_v58 }
 0x16c   : > { %2625 = vmatprep.subr.mxu1 %v6612_v38  ;;  %v1021_v24 = vpop.f32.mrf.mxu0 }
 0x16d   : > { %2627 = vmatpush1.msra.mxu1 %v6614_v11  ;;  %v1022_v9 = vadd.f32 %v1021_v24, %v932_v58 }
 0x16e   : > { %2662 = vmatmul.mubr.f32.vlgmr.msra.gmra.mxu1 %v6483_v3  ;;  %v6740_v35 = vpop.f32.mrf.mxu0  ;;  %v6797_v6 = vpop.permute.xlu0 %1839 }
 0x170   : > { %v6742_v36 = vpop.f32.mrf.mxu0 }
 0x172   : > { %v1112_v42 = vpop.f32.mrf.mxu1  ;;  %v1196_v55 = vpop.f32.mrf.mxu0 }
 0x173   : > { %v1113_v8 = vadd.f32 %v1112_v42, %v1020_v25  ;;  %v6801_v37 = vpop.permute.xlu0 %1881 }
 0x174   : > { %v1114_v59 = vpop.f32.mrf.mxu1  ;;  %v1198_v26 = vpop.f32.mrf.mxu0 }
 0x175   : > { %v1197_v51 = vadd.f32 %v1196_v55, %v1113_v8  ;;  %v1115_v38 = vadd.f32 %v1114_v59, %v1022_v9 }
 0x176   : > { %v6744_v7 = vpop.f32.mrf.mxu1 }
 0x177   : > { %v1199_v40 = vadd.f32 %v1198_v26, %v1115_v38 }
 0x178   : > { %v6746_v60 = vpop.f32.mrf.mxu1 }
 0x179   : > { %v6748_v30 = vpop.f32.mrf.mxu0 }
 0x17a   : > { %v1280_v50 = vpop.f32.mrf.mxu1 }
 0x17b   : > { %v6750_v3 = vpop.f32.mrf.mxu0  ;;  %v1281_v0 = vadd.f32 %v1280_v50, %v1197_v51 }
 0x17c   : > { %v1282_v14 = vpop.f32.mrf.mxu1 }
 0x17d   : > { %v1367_v61 = vpop.f32.mrf.mxu0  ;;  %v1283_v27 = vadd.f32 %v1282_v14, %v1199_v40 }
 0x17e   : > { %v6752_v17 = vpop.f32.mrf.mxu1  ;;  %v1368_v1 = vadd.f32 %v1367_v61, %v1281_v0 }
 0x17f   : > { %v1369_v63 = vpop.f32.mrf.mxu0 }
 0x180   : > { %v6754_v57 = vpop.f32.mrf.mxu1  ;;  %v1370_v62 = vadd.f32 %v1369_v63, %v1283_v27 }
 0x182   : > { %v1448_v44 = vpop.f32.mrf.mxu1 }
 0x183   : > { %v6756_v11 = vadd.f32 %v1448_v44, %v1368_v1 }
 0x184   : > { %v1450_v20 = vpop.f32.mrf.mxu1 }
 0x185   : > { %1521 = vrot.lane.b32.xlu1 %v6756_v11, %s7310_s0  ;;  %1460 = vrot.lane.b32.xlu0 %v6756_v11, %s7375_s29  ;;  %v6770_v5 = vadd.f32 %v1450_v20, %v1370_v62 }
 0x189   : > { %1598 = vrot.lane.b32.xlu1 %v6756_v11, %s7376_s28  ;;  %1491 = vrot.lane.b32.xlu0 %v6756_v11, %s7377_s9 }
 0x18d   : > { %1658 = vrot.lane.b32.xlu1 %v6756_v11, %s7378_s3  ;;  %1551 = vrot.lane.b32.xlu0 %v6756_v11, %s7379_s2 }
 0x191   : > { %1464 = vrot.lane.b32.xlu1 %v6770_v5, %s7375_s29  ;;  %1628 = vrot.lane.b32.xlu0 %v6756_v11, %s7380_s10 }
 0x195   : > { %1495 = vrot.lane.b32.xlu1 %v6770_v5, %s7377_s9  ;;  %1525 = vrot.lane.b32.xlu0 %v6770_v5, %s7310_s0 }
 0x199   : > { %1555 = vrot.lane.b32.xlu1 %v6770_v5, %s7379_s2  ;;  %1602 = vrot.lane.b32.xlu0 %v6770_v5, %s7376_s28 }
 0x19d   : > { %1902 = vperm.xlu1 %5959, %v5925_v16   ;;  %1662 = vrot.lane.b32.xlu0 %v6770_v5, %s7378_s3 }
 0x1a1   : > { %1632 = vrot.lane.b32.xlu1 %v6770_v5, %s7380_s10  ;;  %1688 = vrot.lane.b32.xlu0 %v6756_v11, %s7381_s30 }
 0x1a5   : > { %1692 = vrot.lane.b32.xlu1 %v6770_v5, %s7381_s30 }
 0x1f7   : > { %v1522_v49 = vpop.permute.xlu1 %1521  ;;  %v1461_v43 = vpop.permute.xlu0 %1460 }
 0x1fb   : > { %v1599_v23 = vpop.permute.xlu1 %1598  ;;  %v1492_v28 = vpop.permute.xlu0 %1491 }
 0x1ff   : > { %v1659_v34 = vpop.permute.xlu1 %1658  ;;  %v1552_v18 = vpop.permute.xlu0 %1551 }
 0x203   : > { %v1465_v24 = vpop.permute.xlu1 %1464  ;;  %v1629_v42 = vpop.permute.xlu0 %1628 }
 0x204   : > { %v1471_v55 = vsel %vm1470_vm9, %v1461_v43, %v1465_v24  ;;  %v1473_v58 = vsel %vm1470_vm9, %v1465_v24, %v1461_v43 }
 0x205   : > { %v1487_v59 = vmul.f32 %v6532_v54, %v1473_v58  ;;  %v1488_v25 = vmul.f32 %v6551_v10, %v1471_v55 }
 0x207   : > { %v1496_v26 = vpop.permute.xlu1 %1495  ;;  %v1526_v51 = vpop.permute.xlu0 %1525  ;;  %v1732_v0 = vmul.f32 %v1725_v2, %v1487_v59  ;;  %v1733_v61 = vmul.f32 %v1725_v2, %v1488_v25 }
 0x208   : > { %v1500_v8 = vsel %vm1499_vm8, %v1492_v28, %v1496_v26  ;;  %v1502_v50 = vsel %vm1499_vm8, %v1496_v26, %v1492_v28  ;;  %v1530_v1 = vsel %vm1529_vm7, %v1522_v49, %v1526_v51  ;;  %v1532_v44 = vsel %vm1529_vm7, %v1526_v51, %v1522_v49 }
 0x209   : > { %v1517_v14 = vmul.f32 %v6451_v31, %v1502_v50  ;;  %v1518_v9 = vmul.f32 %v6490_v29, %v1500_v8  ;;  %v1746_v62 = vadd.f32 %v1739_v19, %v1732_v0  ;;  %v1747_v16 = vadd.f32 %v1739_v19, %v1733_v61  ;;  %v6835_v0 = vpop.f32.mrf.mxu1 }
 0x20a   : > { %v1547_v2 = vmul.f32 %v6439_v21, %v1532_v44  ;;  %v1548_v43 = vmul.f32 %v6442_v22, %v1530_v1  ;;  %v1594_v19 = vmul.f32 %v6303_v13, %v6756_v11  ;;  %v1595_v51 = vmul.f32 %v6300_v12, %v6770_v5 }
 0x20b   : > { %v1556_v38 = vpop.permute.xlu1 %1555  ;;  %v1763_v40 = vmul.f32 %v1756_v33, %v1517_v14  ;;  %v1764_v27 = vmul.f32 %v1756_v33, %v1518_v9  ;;  %v1603_v58 = vpop.permute.xlu0 %1602 }
 0x20c   : > { %v1560_v63 = vsel %vm1559_vm5, %v1552_v18, %v1556_v38  ;;  %v1562_v20 = vsel %vm1559_vm5, %v1556_v38, %v1552_v18  ;;  %v6827_v33 = vpop.f32.mrf.mxu0  ;;  %v1784_v59 = vmul.f32 %v1777_v39, %v1547_v2  ;;  %v1785_v25 = vmul.f32 %v1777_v39, %v1548_v43 }
 0x20d   : > { %v1767_v28 = vadd.f32 %v1763_v40, %v1746_v62  ;;  %v1768_v24 = vadd.f32 %v1764_v27, %v1747_v16  ;;  %v1577_v55 = vmul.f32 %v6390_v53, %v1562_v20  ;;  %v1578_v49 = vmul.f32 %v6396_v56, %v1560_v63  ;;  %v6847_v62 = vpop.f32.mrf.mxu1 }
 0x20e   : > { %v6833_v14 = vpop.f32.mrf.mxu0  ;;  %v1607_v61 = vsel %vm1606_vm4, %v1599_v23, %v1603_v58  ;;  %v1609_v39 = vsel %vm1606_vm4, %v1603_v58, %v1599_v23  ;;  %v1826_v38 = vmul.f32 %v1819_v47, %v1594_v19  ;;  %v1827_v40 = vmul.f32 %v1819_v47, %v1595_v51  ;;  %v7383_v58 = vld [vmem:[#allocation7_spill] sm:$0xff] }
 0x20f   : > { %v1788_v26 = vadd.f32 %v1784_v59, %v1767_v28  ;;  %v1789_v8 = vadd.f32 %v1785_v25, %v1768_v24  ;;  %v1805_v18 = vmul.f32 %v1798_v46, %v1577_v55  ;;  %v1806_v50 = vmul.f32 %v1798_v46, %v1578_v49  ;;  %v1663_v9 = vpop.permute.xlu0 %1662  ;;  %v7382_v28 = vld [vmem:[#allocation6_spill] sm:$0xff]  ;;  %v7384_v25 = vld [vmem:[#allocation8_spill] sm:$0xff] }
 0x210   : > { %v1624_v11 = vmul.f32 %v6369_v41, %v1607_v61  ;;  %v1625_v5 = vmul.f32 %v6387_v52, %v1609_v39  ;;  %v1667_v27 = vsel %vm1666_vm2, %v1659_v34, %v1663_v9  ;;  %v1669_v63 = vsel %vm1666_vm2, %v1663_v9, %v1659_v34  ;;  %v2084_v20 = vpop.f32.mrf.mxu0 }
 0x211   : > { %v1809_v1 = vadd.f32 %v1805_v18, %v1788_v26  ;;  %v1810_v44 = vadd.f32 %v1806_v50, %v1789_v8  ;;  %v1684_v43 = vmul.f32 %v6345_v32, %v1667_v27  ;;  %v1685_v47 = vmul.f32 %v7382_v28, %v1669_v63  ;;  %v2246_v18 = vpop.f32.mrf.mxu1  ;;  %v7386_v63 = vld [vmem:[#allocation5_spill] sm:$0xff] }
 0x212   : > { %v1847_v49 = vmul.f32 %v6797_v6, %v1624_v11  ;;  %v1848_v34 = vmul.f32 %v6797_v6, %v1625_v5  ;;  %v2086_v8 = vpop.f32.mrf.mxu0  ;;  %v7385_v5 = vld [vmem:[#allocation4_spill] sm:$0xff] }
 0x213   : > { %v1830_v23 = vadd.f32 %v1826_v38, %v1809_v1  ;;  %v1831_v16 = vadd.f32 %v1827_v40, %v1810_v44  ;;  %v1689_v51 = vpop.permute.xlu0 %1688  ;;  %v1890_v44 = vmul.f32 %v6801_v37, %v1685_v47 }
 0x214   : > { %v2355_v1 = vpop.f32.mrf.mxu0 }
 0x215   : > { %v1851_v50 = vadd.f32 %v1847_v49, %v1830_v23  ;;  %v1852_v19 = vadd.f32 %v1848_v34, %v1831_v16  ;;  %v2248_v16 = vpop.f32.mrf.mxu1  ;;  %v2087_v49 = vadd.f32 %v2086_v8, %v6795_v4 }
 0x218   : > { %v1903_v46 = vpop.permute.xlu1 %1902 }
 0x21b   : > { %v2447_v47 = vpop.f32.mrf.mxu1 }
 0x21c   : > { %v1633_v2 = vpop.permute.xlu1 %1632 }
 0x21d   : > { %v1637_v24 = vsel %vm1636_vm3, %v1629_v42, %v1633_v2  ;;  %v1639_v55 = vsel %vm1636_vm3, %v1633_v2, %v1629_v42  ;;  %v1889_v42 = vmul.f32 %v6801_v37, %v1684_v43  ;;  %v2357_v37 = vpop.f32.mrf.mxu0 }
 0x21e   : > { %v1654_v59 = vmul.f32 %v7383_v58, %v1637_v24  ;;  %v1655_v26 = vmul.f32 %v7384_v25, %v1639_v55 }
 0x220   : > { %v1868_v61 = vmul.f32 %v6799_v48, %v1654_v59  ;;  %v1869_v39 = vmul.f32 %v6799_v48, %v1655_v26  ;;  %v1693_v9 = vpop.permute.xlu1 %1692  ;;  %v2085_v48 = vadd.f32 %v2084_v20, %v6795_v4 }
 0x221   : > { %v1697_v6 = vsel %vm1696_vm1, %v1689_v51, %v1693_v9  ;;  %v1699_v38 = vsel %vm1696_vm1, %v1693_v9, %v1689_v51  ;;  %v2449_v9 = vpop.f32.mrf.mxu1 }
 0x222   : > { %v1872_v40 = vadd.f32 %v1868_v61, %v1851_v50  ;;  %v1873_v11 = vadd.f32 %v1869_v39, %v1852_v19  ;;  %v1714_v27 = vmul.f32 %v7385_v5, %v1697_v6  ;;  %v1715_v23 = vmul.f32 %v7386_v63, %v1699_v38 }
 0x223   : > { %v2247_v34 = vadd.f32 %v2246_v18, %v2085_v48  ;;  %v2249_v19 = vadd.f32 %v2248_v16, %v2087_v49  ;;  %v5914_v16 = vld [vmem:[%s7342_s11 + $0x28] sm:$0xff] }
 0x224   : > { %v1910_v2 = vmul.f32 %v1903_v46, %v1714_v27  ;;  %v1911_v24 = vmul.f32 %v1903_v46, %v1715_v23  ;;  %v1893_v43 = vadd.f32 %v1889_v42, %v1872_v40  ;;  %v1894_v55 = vadd.f32 %v1890_v44, %v1873_v11 }
 0x225   : > { %v2356_v51 = vadd.f32 %v2355_v1, %v2247_v34  ;;  %v2358_v6 = vadd.f32 %v2357_v37, %v2249_v19  ;;  %v3158_v1 = vld [vmem:[%s7387_s15] sm:$0xff] }
 0x226   : > { %v1914_v59 = vadd.f32 %v1910_v2, %v1893_v43  ;;  %v1915_v26 = vadd.f32 %v1911_v24, %v1894_v55  ;;  %v2573_v50 = vpop.f32.mrf.mxu0  ;;  %v5920_v2 = vld [vmem:[%s7342_s11 + $0x58] sm:$0xff] }
 0x227   : > { %v2448_v20 = vadd.f32 %v2447_v47, %v2356_v51  ;;  %v2450_v46 = vadd.f32 %v2449_v9, %v2358_v6 }
 0x228   : > { %v2677_v61 = vmul.f32 %v1914_v59, %v1914_v59  ;;  %v2678_v39 = vmul.f32 %v1915_v26, %v1915_v26  ;;  %v2575_v27 = vpop.f32.mrf.mxu0 }
 0x229   : > { %v2574_v42 = vadd.f32 %v2573_v50, %v2448_v20  ;;  %v2576_v40 = vadd.f32 %v2575_v27, %v2450_v46 }
 0x22a   : > { %v2679_v38 = vadd.f32 %v2678_v39, %v2677_v61 }
 0x22c   : > { %2680 = vadd.xlane.f32.xlu0 %v2679_v38 }
 0x22e   : > { %v2663_v44 = vpop.f32.mrf.mxu1 }
 0x22f   : > { %v2664_v11 = vadd.f32 %v2663_v44, %v2574_v42 }
 0x230   : > { %v2665_v4 = vpop.f32.mrf.mxu1 }
 0x231   : > { %v2666_v8 = vadd.f32 %v2665_v4, %v2576_v40  ;;  %v2668_v18 = vmul.f32 %v2664_v11, %v2664_v11 }
 0x233   : > { %v2669_v23 = vmul.f32 %v2666_v8, %v2666_v8 }
 0x235   : > { %v2670_v48 = vadd.f32 %v2669_v23, %v2668_v18 }
 0x237   : > { %2671 = vadd.xlane.f32.xlu1 %v2670_v48 }
 0x242   : > { %3161 = vperm.xlu0 %5958, %v3158_v1  }
 0x246   : > { %1781 = vperm.xlu0 %5958, %v5914_v16  }
 0x24a   : > { %1844 = vperm.xlu0 %5958, %v5920_v2  }
 0x2b5   : > { %v2681_v24 = vpop.xlane.xlu0 %2680 }
 0x2b6   : > { %v2682_v43 = vmax.f32 %v2681_v24, 1e-24 }
 0x2b8   : > { %5968 = vrsqrt.f32 %v2682_v43 }
 0x2c0   : > { %v2672_v55 = vpop.xlane.xlu1 %2671 }
 0x2c1   : > { %v2673_v37 = vmax.f32 %v2672_v55, 1e-24 }
 0x2c3   : > { %5970 = vrsqrt.f32 %v2673_v37 }
 0x2c5   : > { %v5969_v47 = vpop.eup %5968 }
 0x2c6   : > { %v2685_v49 = vmul.f32 %v5969_v47, %v1915_v26  ;;  %v2684_v34 = vmul.f32 %v5969_v47, %v1914_v59 }
 0x2c8   : > { %v2716_v50 = vand.u32 4294901760, %v2685_v49  ;;  %v2718_v19 = vand.u32 4294901760, %v2684_v34 }
 0x2ca   : > { %2717 = vmatprep.subr.mxu0 %v2716_v50  ;;  %v2805_v51 = vsub.f32 %v2684_v34, %v2718_v19  ;;  %v2799_v61 = vsub.f32 %v2685_v49, %v2716_v50 }
 0x2cb   : > { %2719 = vmatpush1.xpose.msra.mxu0 %v2718_v19 }
 0x2cc   : > { %2882 = vmatprep.subr.mxu0 %v2799_v61  ;;  %v2800_v39 = vand.u32 4294901760, %v2799_v61  ;;  %v2806_v9 = vand.u32 4294901760, %v2805_v51 }
 0x2ce   : > { %v2801_v6 = vsub.f32 %v2799_v61, %v2800_v39  ;;  %v2807_v20 = vsub.f32 %v2805_v51, %v2806_v9 }
 0x2d0   : > { %v5971_v38 = vpop.eup %5970  ;;  %v2802_v46 = vand.u32 4294901760, %v2801_v6  ;;  %v2808_v42 = vand.u32 4294901760, %v2807_v20 }
 0x2d1   : > { %v2676_v27 = vmul.f32 %v5971_v38, %v2666_v8  ;;  %v2675_v44 = vmul.f32 %v5971_v38, %v2664_v11  ;;  %v3162_v38 = vpop.permute.xlu0 %3161 }
 0x2d2   : > { %2803 = vmatprep.subr.mxu1 %v2802_v46 }
 0x2d3   : > { %v2752_v40 = vand.u32 4294901760, %v2676_v27  ;;  %v2758_v26 = vand.u32 4294901760, %v2675_v44  ;;  %2809 = vmatpush1.xpose.msra.mxu1 %v2808_v42  ;;  %v928_v42 = vld [vmem:[%s7343_s7 + $0x8] sm:$0xff]  ;;  %s7392_s7 = sld [smem:[#allocation17_spill]] }
 0x2d4   : > { %2959 = vmatprep.subr.mxu1 %v2716_v50 }
 0x2d5   : > { %2843 = vmatprep.mubr.f32.mxu1 %v2752_v40  ;;  %v2759_v59 = vsub.f32 %v2675_v44, %v2758_v26  ;;  %v2753_v4 = vsub.f32 %v2676_v27, %v2752_v40  ;;  %v1721_v44 = vld [vmem:[%s7342_s11 + $0x8] sm:$0xff] }
 0x2d6   : > { %2845 = vmatmul.mubr.f32.vlgmr.msra.gmra.mxu1 %v2758_v26 }
 0x2d7   : > { %v2754_v18 = vand.u32 4294901760, %v2753_v4  ;;  %v2760_v23 = vand.u32 4294901760, %v2759_v59  ;;  %2961 = vmatpush1.xpose.msra.mxu1 %v2718_v19 }
 0x2d8   : > { %3115 = vmatprep.subr.mxu1 %v2716_v50 }
 0x2d9   : > { %v2755_v48 = vsub.f32 %v2753_v4, %v2754_v18  ;;  %2997 = vmatprep.mubr.f32.mxu1 %v2754_v18  ;;  %v2761_v1 = vsub.f32 %v2759_v59, %v2760_v23 }
 0x2da   : > { %3001 = vmatmul.mubr.f32.vlgmr.msra.gmra.mxu1 %v2760_v23 }
 0x2db   : > { %v2756_v8 = vand.u32 4294901760, %v2755_v48  ;;  %v2762_v16 = vand.u32 4294901760, %v2761_v1  ;;  %3117 = vmatpush1.xpose.msra.mxu1 %v2718_v19  ;;  %3151 = vmatprep.mubr.f32.mxu1 %v2752_v40 }
 0x2dd   : > { %2757 = vmatprep.mubr.f32.mxu0 %v2756_v8 }
 0x2de   : > { %2763 = vmatmul.mubr.f32.vlgmr.msra.gmra.mxu0 %v2762_v16  ;;  %3153 = vmatmul.mubr.f32.vlgmr.msra.gmra.mxu1 %v2758_v26 }
 0x2df   : > { %2885 = vmatpush1.xpose.msra.mxu0 %v2805_v51  ;;  %2920 = vmatprep.mubr.f32.mxu0 %v2753_v4 }
 0x2e0   : > { %3039 = vmatprep.subr.mxu0 %v2800_v39  ;;  %3336 = vmatprep.mubr.f32.mxu1 %v7359_v45 }
 0x2e2   : > { %2923 = vmatmul.mubr.f32.vlgmr.msra.gmra.mxu0 %v2759_v59 }
 0x2e3   : > { %3043 = vmatpush1.xpose.msra.mxu0 %v2806_v9  ;;  %3077 = vmatprep.mubr.f32.mxu0 %v2752_v40 }
 0x2e6   : > { %3079 = vmatmul.mubr.f32.vlgmr.msra.gmra.mxu0 %v2758_v26 }
 0x2e7   : > { %3250 = vmatprep.mubr.f32.mxu0 %v7359_v45 }
 0x396   : > { %v2846_v11 = vpop.f32.mrf.mxu1 }
 0x398   : > { %v2848_v2 = vpop.f32.mrf.mxu1 }
 0x39a   : > { %v3002_v24 = vpop.f32.mrf.mxu1 }
 0x39c   : > { %v3004_v43 = vpop.f32.mrf.mxu1 }
 0x39d   : > { %v5922_v43 = vld [vmem:[%s7342_s11 + $0x68] sm:$0xff] }
 0x39e   : > { %v2764_v55 = vpop.f32.mrf.mxu0  ;;  %v3154_v47 = vpop.f32.mrf.mxu1 }
 0x39f   : > { %v2847_v49 = vadd.f32 %v2846_v11, %v2764_v55  ;;  %v5926_v55 = vld [vmem:[%s7342_s11 + $0x88] sm:$0xff] }
 0x3a0   : > { %v2766_v37 = vpop.f32.mrf.mxu0  ;;  %v3156_v50 = vpop.f32.mrf.mxu1 }
 0x3a1   : > { %v3650_v37 = vld [vmem:[%s7390_s18] sm:$0xff] }
 0x3a2   : > { %v2924_v34 = vpop.f32.mrf.mxu0  ;;  %v5191_v50 = vld [vmem:[%s7262_s22] sm:$0xff] }
 0x3a3   : > { %v2925_v19 = vadd.f32 %v2924_v34, %v2847_v49  ;;  %v4170_v49 = vld [vmem:[%s7392_s7] sm:$0xff] }
 0x3a4   : > { %v2926_v51 = vpop.f32.mrf.mxu0  ;;  %v5116_v34 = vld [vmem:[%s7261_s21] sm:$0xff] }
 0x3a5   : > { %v3003_v61 = vadd.f32 %v3002_v24, %v2925_v19  ;;  %v5190_v19 = vld [vmem:[%s7263_s23] sm:$0xff]  ;;  %v5927_v51 = vld [vmem:[%s7262_s22 + $0x8] sm:$0xff] }
 0x3a6   : > { %v3080_v39 = vpop.f32.mrf.mxu0 }
 0x3a7   : > { %v3081_v6 = vadd.f32 %v3080_v39, %v3003_v61  ;;  %v5928_v61 = vld [vmem:[%s7262_s22 + $0x10] sm:$0xff]  ;;  %v5929_v39 = vld [vmem:[%s7262_s22 + $0x18] sm:$0xff] }
 0x3a8   : > { %v3082_v9 = vpop.f32.mrf.mxu0 }
 0x3a9   : > { %v3155_v20 = vadd.f32 %v3154_v47, %v3081_v6  ;;  %v5930_v6 = vld [vmem:[%s7262_s22 + $0x20] sm:$0xff]  ;;  %v5931_v9 = vld [vmem:[%s7262_s22 + $0x28] sm:$0xff] }
 0x3ab   : > { %v3164_v27 = vmul.f32 %v3162_v38, %v3155_v20  ;;  %v5932_v20 = vld [vmem:[%s7262_s22 + $0x30] sm:$0xff]  ;;  %v5933_v38 = vld [vmem:[%s7262_s22 + $0x38] sm:$0xff] }
 0x3ad   : > { %v3165_v46 = vsel %vm939_vm0, %v3164_v27, -inf }
 0x3ae   : > { %3166 = vmax.xlane.f32.xlu1 %v3165_v46 }
 0x3bf   : > { %936 = vperm.xlu1 %5959, %v928_v42  }
 0x3c3   : > { %1729 = vperm.xlu1 %5959, %v1721_v44  }
 0x437   : > { %v3167_v40 = vpop.xlane.xlu1 %3166 }
 0x43b   : > { %v937_v26 = vpop.permute.xlu1 %936 }
 0x43c   : > { %v1031_v59 = vadd.f32 %v6740_v35, %v937_v26  ;;  %v1033_v4 = vadd.f32 %v6742_v36, %v937_v26 }
 0x43e   : > { %v1120_v18 = vadd.f32 %v6744_v7, %v1031_v59  ;;  %v1122_v23 = vadd.f32 %v6746_v60, %v1033_v4  ;;  %v5924_v7 = vld [vmem:[%s7342_s11 + $0x78] sm:$0xff]  ;;  %v1719_v60 = vld [vmem:[%s7344_s12 + $0x8] sm:$0xff]  ;;  %s7391_s12 = sld [smem:[#allocation16_spill]] }
 0x440   : > { %v1205_v48 = vadd.f32 %v6748_v30, %v1120_v18  ;;  %v1207_v1 = vadd.f32 %v6750_v3, %v1122_v23  ;;  %v5912_v30 = vld [vmem:[%s7342_s11 + $0x18] sm:$0xff]  ;;  %v3168_v3 = vsub.f32 %v3164_v27, %v3167_v40  ;;  %v1730_v27 = vpop.permute.xlu1 %1729  ;;  %v1782_v18 = vpop.permute.xlu0 %1781 }
 0x442   : > { %v1290_v8 = vadd.f32 %v6752_v17, %v1205_v48  ;;  %v1292_v16 = vadd.f32 %v6754_v57, %v1207_v1  ;;  %v3169_v17 = vmul.f32 1.442695, %v3168_v3  ;;  %v5916_v57 = vld [vmem:[%s7342_s11 + $0x38] sm:$0xff] }
 0x444   : > { %v1375_v11 = vadd.f32 %v6827_v33, %v1290_v8  ;;  %v1377_v2 = vadd.f32 %v6833_v14, %v1292_v16  ;;  %5972 = vpow2.f32 %v3169_v17  ;;  %v3171_v14 = vld [vmem:[%s7389_s16] sm:$0xff]  ;;  %v1845_v1 = vpop.permute.xlu0 %1844 }
 0x445   : > { %v4162_v47 = vld [vmem:[%s7391_s12] sm:$0xff] }
 0x446   : > { %v6900_v35 = vadd.f32 %v6835_v0, %v1375_v11  ;;  %v6903_v36 = vadd.f32 %v6847_v62, %v1377_v2  ;;  %v5918_v62 = vld [vmem:[%s7342_s11 + $0x48] sm:$0xff] }
 0x448   : > { %1604 = vrot.lane.b32.xlu0 %v6903_v36, %s7376_s28  ;;  %1462 = vrot.lane.b32.xlu1 %v6900_v35, %s7375_s29 }
 0x44c   : > { %1630 = vrot.lane.b32.xlu0 %v6900_v35, %s7380_s10  ;;  %1466 = vrot.lane.b32.xlu1 %v6903_v36, %s7375_s29 }
 0x450   : > { %1886 = vperm.xlu0 %5958, %v5924_v7   ;;  %1743 = vperm.xlu1 %5959, %v1719_v60  }
 0x451   : > { %v5973_v33 = vpop.eup %5972 }
 0x452   : > { %v6940_v0 = vmul.f32 %v5973_v33, %v3171_v14 }
 0x454   : > { %1664 = vrot.lane.b32.xlu0 %v6903_v36, %s7378_s3  ;;  %1760 = vperm.xlu1 %5959, %v5912_v30   ;;  %v3173_v24 = vsel %vm939_vm0, %v6940_v0, 0.0 }
 0x458   : > { %1493 = vrot.lane.b32.xlu1 %v6900_v35, %s7377_s9 }
 0x45c   : > { %1497 = vrot.lane.b32.xlu1 %v6903_v36, %s7377_s9 }
 0x460   : > { %1523 = vrot.lane.b32.xlu1 %v6900_v35, %s7388_s6 }
 0x464   : > { %1527 = vrot.lane.b32.xlu1 %v6903_v36, %s7388_s6 }
 0x468   : > { %1802 = vperm.xlu1 %5959, %v5916_v57  }
 0x46c   : > { %1553 = vrot.lane.b32.xlu1 %v6900_v35, %s7379_s2 }
 0x470   : > { %1557 = vrot.lane.b32.xlu1 %v6903_v36, %s7379_s2 }
 0x473   : > { %3174 = vadd.xlane.f32.xlu0 %v3173_v24 }
 0x474   : > { %1823 = vperm.xlu1 %5959, %v5918_v62  }
 0x478   : > { %1600 = vrot.lane.b32.xlu1 %v6900_v35, %s7376_s28 }
 0x47c   : > { %1865 = vperm.xlu1 %5959, %v5922_v43  }
 0x480   : > { %1634 = vrot.lane.b32.xlu1 %v6903_v36, %s7380_s10 }
 0x484   : > { %1660 = vrot.lane.b32.xlu1 %v6900_v35, %s7378_s3 }
 0x488   : > { %1907 = vperm.xlu1 %5959, %v5926_v55  }
 0x489   : > { %1690 = vrot.lane.b32.xlu0 %v6900_v35, %s7381_s30 }
 0x48c   : > { %1694 = vrot.lane.b32.xlu1 %v6903_v36, %s7381_s30 }
 0x48d   : > { %3653 = vperm.xlu0 %5958, %v3650_v37  }
 0x490   : > { %4165 = vperm.xlu1 %5959, %v4162_v47  }
 0x491   : > { %4173 = vperm.xlu0 %5958, %v4170_v49  }
 0x494   : > { %5119 = vperm.xlu1 %5959, %v5116_v34  }
 0x495   : > { %5194 = vperm.xlu0 %5958, %v5191_v50  }
 0x498   : > { %5201 = vperm.xlu1 %5959, %v5190_v19  }
 0x499   : > { %5210 = vperm.xlu0 %5958, %v5927_v51  }
 0x49c   : > { %5221 = vperm.xlu1 %5959, %v5928_v61  }
 0x49d   : > { %5232 = vperm.xlu0 %5958, %v5929_v39  }
 0x4a0   : > { %5243 = vperm.xlu1 %5959, %v5930_v6  }
 0x4a1   : > { %5254 = vperm.xlu0 %5958, %v5931_v9  }
 0x4a4   : > { %5265 = vperm.xlu1 %5959, %v5932_v20  }
 0x4a5   : > { %5276 = vperm.xlu0 %5958, %v5933_v38  }
 0x4ba   : > { %v1463_v46 = vpop.permute.xlu1 %1462  ;;  %v1605_v16 = vpop.permute.xlu0 %1604 }
 0x4be   : > { %v1467_v42 = vpop.permute.xlu1 %1466  ;;  %v1631_v2 = vpop.permute.xlu0 %1630 }
 0x4bf   : > { %v1474_v60 = vsel %vm1470_vm9, %v1467_v42, %v1463_v46  ;;  %v1472_v3 = vsel %vm1470_vm9, %v1463_v46, %v1467_v42 }
 0x4c0   : > { %v1489_v62 = vmul.f32 %v6532_v54, %v1474_v60  ;;  %v1490_v55 = vmul.f32 %v6551_v10, %v1472_v3  ;;  %v1596_v60 = vmul.f32 %v6303_v13, %v6900_v35  ;;  %v1597_v35 = vmul.f32 %v6300_v12, %v6903_v36 }
 0x4c2   : > { %v1734_v51 = vmul.f32 %v1730_v27, %v1489_v62  ;;  %v1735_v9 = vmul.f32 %v1730_v27, %v1490_v55 }
 0x4cb   : > { %v1744_v44 = vpop.permute.xlu1 %1743  ;;  %v7010_v17 = vpop.permute.xlu0 %1886 }
 0x4cc   : > { %v1748_v46 = vadd.f32 %v1744_v44, %v1734_v51 }
 0x4cf   : > { %v1761_v40 = vpop.permute.xlu1 %1760  ;;  %v1665_v61 = vpop.permute.xlu0 %1664 }
 0x4d3   : > { %v1494_v26 = vpop.permute.xlu1 %1493 }
 0x4d7   : > { %v1498_v59 = vpop.permute.xlu1 %1497 }
 0x4d8   : > { %v1503_v30 = vsel %vm1499_vm8, %v1498_v59, %v1494_v26  ;;  %v1501_v57 = vsel %vm1499_vm8, %v1494_v26, %v1498_v59  ;;  %v1749_v26 = vadd.f32 %v1744_v44, %v1735_v9 }
 0x4d9   : > { %v1519_v24 = vmul.f32 %v6451_v31, %v1503_v30  ;;  %v1520_v37 = vmul.f32 %v6490_v29, %v1501_v57 }
 0x4db   : > { %v1524_v4 = vpop.permute.xlu1 %1523  ;;  %v1765_v39 = vmul.f32 %v1761_v40, %v1519_v24  ;;  %v1766_v20 = vmul.f32 %v1761_v40, %v1520_v37 }
 0x4dd   : > { %v1770_v40 = vadd.f32 %v1766_v20, %v1749_v26 }
 0x4df   : > { %v1528_v23 = vpop.permute.xlu1 %1527 }
 0x4e0   : > { %v1533_v33 = vsel %vm1529_vm7, %v1528_v23, %v1524_v4  ;;  %v1531_v43 = vsel %vm1529_vm7, %v1524_v4, %v1528_v23 }
 0x4e1   : > { %v1549_v49 = vmul.f32 %v6439_v21, %v1533_v33  ;;  %v1550_v50 = vmul.f32 %v6442_v22, %v1531_v43 }
 0x4e3   : > { %v1803_v48 = vpop.permute.xlu1 %1802  ;;  %v1786_v42 = vmul.f32 %v1782_v18, %v1549_v49  ;;  %v1787_v59 = vmul.f32 %v1782_v18, %v1550_v50 }
 0x4e5   : > { %v1791_v62 = vadd.f32 %v1787_v59, %v1770_v40 }
 0x4e7   : > { %v1554_v8 = vpop.permute.xlu1 %1553 }
 0x4eb   : > { %v1558_v11 = vpop.permute.xlu1 %1557 }
 0x4ec   : > { %v1563_v47 = vsel %vm1559_vm5, %v1558_v11, %v1554_v8  ;;  %v1561_v34 = vsel %vm1559_vm5, %v1554_v8, %v1558_v11  ;;  %v1769_v8 = vadd.f32 %v1765_v39, %v1748_v46 }
 0x4ed   : > { %v1579_v6 = vmul.f32 %v6390_v53, %v1563_v47  ;;  %v1580_v38 = vmul.f32 %v6396_v56, %v1561_v34 }
 0x4ee   : > { %v1790_v44 = vadd.f32 %v1786_v42, %v1769_v8 }
 0x4ef   : > { %v1824_v7 = vpop.permute.xlu1 %1823  ;;  %v1807_v11 = vmul.f32 %v1803_v48, %v1579_v6  ;;  %v1808_v3 = vmul.f32 %v1803_v48, %v1580_v38 }
 0x4f0   : > { %v1828_v24 = vmul.f32 %v1824_v7, %v1596_v60  ;;  %v1829_v49 = vmul.f32 %v1824_v7, %v1597_v35 }
 0x4f1   : > { %v1811_v43 = vadd.f32 %v1807_v11, %v1790_v44  ;;  %v1812_v47 = vadd.f32 %v1808_v3, %v1791_v62 }
 0x4f3   : > { %v1601_v14 = vpop.permute.xlu1 %1600  ;;  %v1832_v6 = vadd.f32 %v1828_v24, %v1811_v43  ;;  %v1833_v20 = vadd.f32 %v1829_v49, %v1812_v47 }
 0x4f4   : > { %v1608_v4 = vsel %vm1606_vm4, %v1601_v14, %v1605_v16  ;;  %v1610_v30 = vsel %vm1606_vm4, %v1605_v16, %v1601_v14 }
 0x4f5   : > { %v1626_v18 = vmul.f32 %v6369_v41, %v1608_v4  ;;  %v1627_v16 = vmul.f32 %v6387_v52, %v1610_v30 }
 0x4f7   : > { %v1866_v19 = vpop.permute.xlu1 %1865  ;;  %v1849_v34 = vmul.f32 %v1845_v1, %v1626_v18  ;;  %v1850_v50 = vmul.f32 %v1845_v1, %v1627_v16 }
 0x4f9   : > { %v1853_v46 = vadd.f32 %v1849_v34, %v1832_v6  ;;  %v1854_v26 = vadd.f32 %v1850_v50, %v1833_v20 }
 0x4fb   : > { %v1635_v23 = vpop.permute.xlu1 %1634 }
 0x4fc   : > { %v3175_v27 = vpop.xlane.xlu0 %3174  ;;  %v1638_v57 = vsel %vm1636_vm3, %v1631_v2, %v1635_v23  ;;  %v1640_v33 = vsel %vm1636_vm3, %v1635_v23, %v1631_v2 }
 0x4fd   : > { %5974 = vrcp.f32 %v3175_v27  ;;  %v1656_v48 = vmul.f32 %v7383_v58, %v1638_v57  ;;  %v1657_v2 = vmul.f32 %v7384_v25, %v1640_v33 }
 0x4ff   : > { %v1661_v14 = vpop.permute.xlu1 %1660  ;;  %v1870_v9 = vmul.f32 %v1866_v19, %v1656_v48  ;;  %v1871_v38 = vmul.f32 %v1866_v19, %v1657_v2 }
 0x500   : > { %v1668_v55 = vsel %vm1666_vm2, %v1661_v14, %v1665_v61  ;;  %v1670_v37 = vsel %vm1666_vm2, %v1665_v61, %v1661_v14  ;;  %v1691_v7 = vpop.permute.xlu0 %1690 }
 0x501   : > { %v1686_v36 = vmul.f32 %v6345_v32, %v1668_v55  ;;  %v1687_v51 = vmul.f32 %v7382_v28, %v1670_v37  ;;  %v1874_v4 = vadd.f32 %v1870_v9, %v1853_v46  ;;  %v1875_v8 = vadd.f32 %v1871_v38, %v1854_v26 }
 0x503   : > { %v1908_v39 = vpop.permute.xlu1 %1907  ;;  %v1891_v42 = vmul.f32 %v7010_v17, %v1686_v36  ;;  %v1892_v61 = vmul.f32 %v7010_v17, %v1687_v51 }
 0x505   : > { %v1895_v30 = vadd.f32 %v1891_v42, %v1874_v4  ;;  %v1896_v3 = vadd.f32 %v1892_v61, %v1875_v8 }
 0x507   : > { %v1695_v59 = vpop.permute.xlu1 %1694 }
 0x508   : > { %v1698_v23 = vsel %vm1696_vm1, %v1691_v7, %v1695_v59  ;;  %v1700_v1 = vsel %vm1696_vm1, %v1695_v59, %v1691_v7 }
 0x509   : > { %v1716_v11 = vmul.f32 %v7385_v5, %v1698_v23  ;;  %v1717_v19 = vmul.f32 %v7386_v63, %v1700_v1 }
 0x50a   : > { %v5975_v60 = vpop.eup %5974 }
 0x50b   : > { %v3177_v40 = vmul.f32 %v5975_v60, %v3175_v27  ;;  %v1912_v57 = vmul.f32 %v1908_v39, %v1716_v11  ;;  %v1913_v17 = vmul.f32 %v1908_v39, %v1717_v19  ;;  %v3649_v39 = vld [vmem:[%s7257_s17] sm:$0xff] }
 0x50c   : > { %v3657_v6 = vsel %vm939_vm0, %v3649_v39, 0 }
 0x50d   : > { %v3178_v44 = vsub.f32 2.0, %v3177_v40  ;;  %v1916_v18 = vadd.f32 %v1912_v57, %v1895_v30  ;;  %v1917_v33 = vadd.f32 %v1913_v17, %v1896_v3  ;;  %v3726_v38 = vand.u32 4294901760, %v3657_v6 }
 0x50f   : > { %v3179_v62 = vmul.f32 %v5975_v60, %v3178_v44  ;;  %v3214_v35 = vand.u32 4294901760, %v1917_v33  ;;  %v3216_v24 = vand.u32 4294901760, %v1916_v18  ;;  %v3727_v7 = vsub.f32 %v3657_v6, %v3726_v38 }
 0x511   : > { %v3180_v16 = vmul.f32 %v3179_v62, %v6940_v0  ;;  %3215 = vmatprep.subr.mxu0 %v3214_v35  ;;  %v3293_v14 = vsub.f32 %v1917_v33, %v3214_v35  ;;  %v3299_v43 = vsub.f32 %v1916_v18, %v3216_v24  ;;  %v3728_v60 = vand.u32 4294901760, %v3727_v7 }
 0x512   : > { %3217 = vmatpush1.msra.mxu0 %v3216_v24 }
 0x513   : > { %v3182_v48 = vsel %vm939_vm0, %v3180_v16, 0  ;;  %3376 = vmatprep.subr.mxu0 %v3293_v14  ;;  %v3294_v55 = vand.u32 4294901760, %v3293_v14  ;;  %v3300_v27 = vand.u32 4294901760, %v3299_v43  ;;  %v3729_v33 = vsub.f32 %v3727_v7, %v3728_v60 }
 0x514   : > { %v3251_v37 = vand.u32 4294901760, %v3182_v48 }
 0x515   : > { %v3295_v47 = vsub.f32 %v3293_v14, %v3294_v55  ;;  %v3301_v49 = vsub.f32 %v3299_v43, %v3300_v27 }
 0x516   : > { %v3252_v2 = vsub.f32 %v3182_v48, %v3251_v37 }
 0x517   : > { %v3296_v34 = vand.u32 4294901760, %v3295_v47  ;;  %v3302_v36 = vand.u32 4294901760, %v3301_v49 }
 0x518   : > { %v3253_v50 = vand.u32 4294901760, %v3252_v2 }
 0x519   : > { %3297 = vmatprep.subr.mxu1 %v3296_v34 }
 0x51a   : > { %3303 = vmatpush1.msra.mxu1 %v3302_v36  ;;  %v3254_v51 = vsub.f32 %v3252_v2, %v3253_v50 }
 0x51b   : > { %3338 = vmatmul.mubr.f32.vlgmr.msra.gmra.mxu1 %v3251_v37  ;;  %3452 = vmatprep.subr.mxu1 %v3214_v35 }
 0x51c   : > { %3454 = vmatpush1.msra.mxu1 %v3216_v24  ;;  %v3255_v0 = vand.u32 4294901760, %v3254_v51  ;;  %3487 = vmatprep.mubr.f32.mxu1 %v7359_v45  ;;  %v3654_v51 = vpop.permute.xlu0 %3653 }
 0x51d   : > { %3606 = vmatprep.subr.mxu1 %v3214_v35 }
 0x51e   : > { %3256 = vmatmul.mubr.f32.vlgmr.msra.gmra.mxu0 %v3255_v0 }
 0x51f   : > { %3379 = vmatpush1.msra.mxu0 %v3299_v43  ;;  %3491 = vmatmul.mubr.f32.vlgmr.msra.gmra.mxu1 %v3253_v50  ;;  %v3730_v43 = vand.u32 4294901760, %v3729_v33 }
 0x520   : > { %3530 = vmatprep.subr.mxu0 %v3294_v55  ;;  %3608 = vmatpush1.msra.mxu1 %v3216_v24 }
 0x521   : > { %3412 = vmatprep.mubr.f32.mxu0 %v7359_v45  ;;  %3641 = vmatprep.mubr.f32.mxu1 %v7359_v45 }
 0x522   : > { %3415 = vmatmul.mubr.f32.vlgmr.msra.gmra.mxu0 %v3252_v2 }
 0x523   : > { %3534 = vmatpush1.msra.mxu0 %v3300_v27  ;;  %3643 = vmatmul.mubr.f32.vlgmr.msra.gmra.mxu1 %v3251_v37 }
 0x524   : > { %3567 = vmatprep.mubr.f32.mxu0 %v7359_v45  ;;  %3811 = vmatprep.mubr.f32.mxu1 %v7359_v45 }
 0x526   : > { %3569 = vmatmul.mubr.f32.vlgmr.msra.gmra.mxu0 %v3251_v37 }
 0x527   : > { %3725 = vmatprep.mubr.f32.mxu0 %v7359_v45 }
 0x5db   : > { %v3339_v9 = vpop.f32.mrf.mxu1 }
 0x5dd   : > { %v3341_v20 = vpop.f32.mrf.mxu1 }
 0x5de   : > { %v3257_v46 = vpop.f32.mrf.mxu0 }
 0x5df   : > { %v3492_v42 = vpop.f32.mrf.mxu1  ;;  %v3340_v61 = vadd.f32 %v3339_v9, %v3257_v46 }
 0x5e0   : > { %v3259_v26 = vpop.f32.mrf.mxu0 }
 0x5e1   : > { %v3494_v59 = vpop.f32.mrf.mxu1  ;;  %v3342_v23 = vadd.f32 %v3341_v20, %v3259_v26 }
 0x5e2   : > { %v3416_v4 = vpop.f32.mrf.mxu0 }
 0x5e3   : > { %v3417_v1 = vadd.f32 %v3416_v4, %v3340_v61  ;;  %v3644_v30 = vpop.f32.mrf.mxu1 }
 0x5e4   : > { %v3418_v8 = vpop.f32.mrf.mxu0 }
 0x5e5   : > { %v3419_v11 = vadd.f32 %v3418_v8, %v3342_v23  ;;  %v3493_v19 = vadd.f32 %v3492_v42, %v3417_v1  ;;  %v3646_v62 = vpop.f32.mrf.mxu1 }
 0x5e6   : > { %v3570_v40 = vpop.f32.mrf.mxu0 }
 0x5e7   : > { %v3571_v3 = vadd.f32 %v3570_v40, %v3493_v19  ;;  %v3495_v57 = vadd.f32 %v3494_v59, %v3419_v11 }
 0x5e8   : > { %v3572_v17 = vpop.f32.mrf.mxu0 }
 0x5e9   : > { %v3645_v44 = vadd.f32 %v3644_v30, %v3571_v3  ;;  %v3573_v18 = vadd.f32 %v3572_v17, %v3495_v57 }
 0x5eb   : > { %v3691_v35 = vand.u32 4294901760, %v3645_v44  ;;  %v3647_v24 = vadd.f32 %v3646_v62, %v3573_v18 }
 0x5ed   : > { %v3774_v16 = vsub.f32 %v3645_v44, %v3691_v35  ;;  %v3689_v14 = vand.u32 4294901760, %v3647_v24 }
 0x5ef   : > { %3690 = vmatprep.subr.mxu0 %v3689_v14  ;;  %v3768_v48 = vsub.f32 %v3647_v24, %v3689_v14  ;;  %v3775_v55 = vand.u32 4294901760, %v3774_v16 }
 0x5f0   : > { %3692 = vmatpush1.msra.mxu0 %v3691_v35 }
 0x5f1   : > { %3731 = vmatmul.mubr.f32.vlgmr.msra.gmra.mxu0 %v3730_v43  ;;  %3851 = vmatprep.subr.mxu0 %v3768_v48  ;;  %v3769_v27 = vand.u32 4294901760, %v3768_v48  ;;  %v3776_v37 = vsub.f32 %v3774_v16, %v3775_v55 }
 0x5f2   : > { %3854 = vmatpush1.msra.mxu0 %v3774_v16  ;;  %3887 = vmatprep.mubr.f32.mxu0 %v7359_v45 }
 0x5f3   : > { %4005 = vmatprep.subr.mxu0 %v3769_v27  ;;  %v3770_v47 = vsub.f32 %v3768_v48, %v3769_v27  ;;  %v3777_v2 = vand.u32 4294901760, %v3776_v37 }
 0x5f5   : > { %3890 = vmatmul.mubr.f32.vlgmr.msra.gmra.mxu0 %v3727_v7  ;;  %v3771_v49 = vand.u32 4294901760, %v3770_v47 }
 0x5f6   : > { %4009 = vmatpush1.msra.mxu0 %v3775_v55  ;;  %4042 = vmatprep.mubr.f32.mxu0 %v7359_v45 }
 0x5f7   : > { %3772 = vmatprep.subr.mxu1 %v3771_v49 }
 0x5f8   : > { %3778 = vmatpush1.msra.mxu1 %v3777_v2 }
 0x5f9   : > { %3813 = vmatmul.mubr.f32.vlgmr.msra.gmra.mxu1 %v3726_v38  ;;  %3927 = vmatprep.subr.mxu1 %v3689_v14 }
 0x5fa   : > { %3929 = vmatpush1.msra.mxu1 %v3691_v35  ;;  %3962 = vmatprep.mubr.f32.mxu1 %v7359_v45 }
 0x5fb   : > { %4081 = vmatprep.subr.mxu1 %v3689_v14  ;;  %4044 = vmatmul.mubr.f32.vlgmr.msra.gmra.mxu0 %v3726_v38 }
 0x5fc   : > { %4249 = vmatprep.mubr.f32.mxu0 %v7359_v45 }
 0x5fd   : > { %3966 = vmatmul.mubr.f32.vlgmr.msra.gmra.mxu1 %v3728_v60 }
 0x5fe   : > { %4083 = vmatpush1.msra.mxu1 %v3691_v35  ;;  %4116 = vmatprep.mubr.f32.mxu1 %v7359_v45 }
 0x601   : > { %4118 = vmatmul.mubr.f32.vlgmr.msra.gmra.mxu1 %v3726_v38 }
 0x602   : > { %4335 = vmatprep.mubr.f32.mxu1 %v7359_v45 }
 0x6b1   : > { %v3732_v34 = vpop.f32.mrf.mxu0 }
 0x6b2   : > { %v3733_v0 = vadd.f32 %v3732_v34, %v3654_v51 }
 0x6b3   : > { %v3734_v36 = vpop.f32.mrf.mxu0 }
 0x6b4   : > { %v3735_v9 = vadd.f32 %v3734_v36, %v3654_v51 }
 0x6b5   : > { %v3891_v50 = vpop.f32.mrf.mxu0 }
 0x6b7   : > { %v3893_v6 = vpop.f32.mrf.mxu0 }
 0x6b9   : > { %v3814_v39 = vpop.f32.mrf.mxu1 }
 0x6ba   : > { %v3815_v20 = vadd.f32 %v3814_v39, %v3733_v0 }
 0x6bb   : > { %v3816_v46 = vpop.f32.mrf.mxu1  ;;  %v4045_v7 = vpop.f32.mrf.mxu0 }
 0x6bc   : > { %v3892_v42 = vadd.f32 %v3891_v50, %v3815_v20  ;;  %v3817_v26 = vadd.f32 %v3816_v46, %v3735_v9 }
 0x6bd   : > { %v3967_v61 = vpop.f32.mrf.mxu1  ;;  %v4047_v8 = vpop.f32.mrf.mxu0 }
 0x6be   : > { %v3894_v59 = vadd.f32 %v3893_v6, %v3817_v26  ;;  %v3968_v4 = vadd.f32 %v3967_v61, %v3892_v42 }
 0x6bf   : > { %v3969_v23 = vpop.f32.mrf.mxu1 }
 0x6c0   : > { %v4046_v38 = vadd.f32 %v4045_v7, %v3968_v4  ;;  %v3970_v1 = vadd.f32 %v3969_v23, %v3894_v59  ;;  %v4179_v4 = vld [vmem:[%s7260_s20] sm:$0xff] }
 0x6c1   : > { %v4119_v11 = vpop.f32.mrf.mxu1  ;;  %v4181_v23 = vsel %vm939_vm0, %v4179_v4, 0 }
 0x6c2   : > { %v4048_v19 = vadd.f32 %v4047_v8, %v3970_v1  ;;  %v4120_v60 = vadd.f32 %v4119_v11, %v4046_v38  ;;  %v7082_v38 = vand.u32 4294901760, %v4181_v23  ;;  %v4178_v11 = vld [vmem:[%s7259_s19] sm:$0xff] }
 0x6c3   : > { %v4121_v30 = vpop.f32.mrf.mxu1 }
 0x6c4   : > { %v4124_v40 = vrot.slane %v4120_v60, 4  ;;  %v4122_v3 = vadd.f32 %v4121_v30, %v4048_v19  ;;  %v4251_v1 = vsub.f32 %v4181_v23, %v7082_v38 }
 0x6c6   : > { %v4125_v57 = vadd.f32 %v4124_v40, %v4120_v60  ;;  %v4130_v17 = vrot.slane %v4122_v3, 4  ;;  %v4166_v40 = vpop.permute.xlu1 %4165 }
 0x6c8   : > { %v4126_v44 = vrot.slane %v4125_v57, 2  ;;  %v4131_v18 = vadd.f32 %v4130_v17, %v4122_v3  ;;  %v4649_v17 = vsel %vm939_vm0, %v4178_v11, 0 }
 0x6ca   : > { %v4127_v33 = vadd.f32 %v4126_v44, %v4125_v57  ;;  %v4132_v62 = vrot.slane %v4131_v18, 2  ;;  %v4174_v44 = vpop.permute.xlu0 %4173 }
 0x6cc   : > { %v4128_v35 = vrot.slane %v4127_v33, 1  ;;  %v4133_v24 = vadd.f32 %v4132_v62, %v4131_v18 }
 0x6ce   : > { %v4129_v16 = vadd.f32 %v4128_v35, %v4127_v33  ;;  %v4134_v14 = vrot.slane %v4133_v24, 1  ;;  %v7089_v35 = vand.u32 4294901760, %v4649_v17 }
 0x6d0   : > { %v4136_v43 = vmul.f32 0.125, %v4129_v16  ;;  %v4135_v48 = vadd.f32 %v4134_v14, %v4133_v24 }
 0x6d2   : > { %v4138_v55 = vsub.f32 %v4120_v60, %v4136_v43  ;;  %v4137_v27 = vmul.f32 0.125, %v4135_v48  ;;  %v4252_v60 = vand.u32 4294901760, %v4251_v1 }
 0x6d4   : > { %v4140_v37 = vmul.f32 %v4138_v55, %v4138_v55  ;;  %v4139_v47 = vsub.f32 %v4122_v3, %v4137_v27  ;;  %v4253_v62 = vsub.f32 %v4251_v1, %v4252_v60  ;;  %v7393_v27 = vld [vmem:[#allocation3_spill] sm:$0xff] }
 0x6d6   : > { %v4142_v49 = vrot.slane %v4140_v37, 4  ;;  %v4141_v2 = vmul.f32 %v4139_v47, %v4139_v47  ;;  %v4254_v43 = vand.u32 4294901760, %v4253_v62 }
 0x6d8   : > { %v4143_v34 = vadd.f32 %v4142_v49, %v4140_v37  ;;  %v4148_v36 = vrot.slane %v4141_v2, 4  ;;  %v7093_v37 = vsub.f32 %v4649_v17, %v7089_v35 }
 0x6da   : > { %v4144_v50 = vrot.slane %v4143_v34, 2  ;;  %v4149_v51 = vadd.f32 %v4148_v36, %v4141_v2  ;;  %v7394_v2 = vld [vmem:[#allocation2_spill] sm:$0xff] }
 0x6dc   : > { %v4145_v0 = vadd.f32 %v4144_v50, %v4143_v34  ;;  %v4150_v39 = vrot.slane %v4149_v51, 2  ;;  %v4683_v34 = vand.u32 4294901760, %v7394_v2 }
 0x6de   : > { %v4146_v6 = vrot.slane %v4145_v0, 1  ;;  %v4151_v9 = vadd.f32 %v4150_v39, %v4149_v51 }
 0x6e0   : > { %v4147_v20 = vadd.f32 %v4146_v6, %v4145_v0  ;;  %v4152_v46 = vrot.slane %v4151_v9, 1  ;;  %v4720_v0 = vand.u32 4294901760, %v7093_v37  ;;  %v4766_v6 = vsub.f32 %v7394_v2, %v4683_v34 }
 0x6e2   : > { %v4154_v42 = vmul.f32 0.125, %v4147_v20  ;;  %v4153_v26 = vadd.f32 %v4152_v46, %v4151_v9 }
 0x6e4   : > { %v4156_v61 = vadd.f32 1e-05, %v4154_v42  ;;  %v4155_v7 = vmul.f32 0.125, %v4153_v26  ;;  %v4721_v42 = vsub.f32 %v7093_v37, %v4720_v0  ;;  %v4767_v26 = vand.u32 4294901760, %v4766_v6 }
 0x6e6   : > { %5976 = vrsqrt.f32 %v4156_v61  ;;  %v4157_v59 = vadd.f32 1e-05, %v4155_v7  ;;  %v4722_v7 = vand.u32 4294901760, %v4721_v42 }
 0x6e8   : > { %5978 = vrsqrt.f32 %v4157_v59  ;;  %v4768_v59 = vsub.f32 %v4766_v6, %v4767_v26 }
 0x6ea   : > { %v4769_v23 = vand.u32 4294901760, %v4768_v59 }
 0x6f3   : > { %v5977_v8 = vpop.eup %5976 }
 0x6f4   : > { %v4160_v19 = vmul.f32 %v5977_v8, %v4138_v55  ;;  %v4681_v55 = vand.u32 4294901760, %v7393_v27 }
 0x6f5   : > { %v5979_v30 = vpop.eup %5978 }
 0x6f6   : > { %v4168_v3 = vmul.f32 %v4166_v40, %v4160_v19  ;;  %v4161_v57 = vmul.f32 %v5979_v30, %v4139_v47  ;;  %v4760_v50 = vsub.f32 %v7393_v27, %v4681_v55 }
 0x6f8   : > { %v4169_v18 = vmul.f32 %v4166_v40, %v4161_v57  ;;  %v4176_v33 = vadd.f32 %v4174_v44, %v4168_v3  ;;  %v4761_v20 = vand.u32 4294901760, %v4760_v50 }
 0x6fa   : > { %v4177_v24 = vadd.f32 %v4174_v44, %v4169_v18  ;;  %v4215_v16 = vand.u32 4294901760, %v4176_v33  ;;  %v4762_v61 = vsub.f32 %v4760_v50, %v4761_v20 }
 0x6fc   : > { %v4213_v14 = vand.u32 4294901760, %v4177_v24  ;;  %v4298_v48 = vsub.f32 %v4176_v33, %v4215_v16  ;;  %v4763_v4 = vand.u32 4294901760, %v4762_v61 }
 0x6fe   : > { %4214 = vmatprep.subr.mxu0 %v4213_v14  ;;  %v4292_v47 = vsub.f32 %v4177_v24, %v4213_v14  ;;  %v4299_v49 = vand.u32 4294901760, %v4298_v48 }
 0x6ff   : > { %4216 = vmatpush1.msra.mxu0 %v4215_v16 }
 0x700   : > { %4255 = vmatmul.mubr.f32.vlgmr.msra.gmra.mxu0 %v4254_v43  ;;  %4375 = vmatprep.subr.mxu0 %v4292_v47  ;;  %v4293_v36 = vand.u32 4294901760, %v4292_v47  ;;  %v4300_v51 = vsub.f32 %v4298_v48, %v4299_v49 }
 0x701   : > { %4378 = vmatpush1.msra.mxu0 %v4298_v48  ;;  %4411 = vmatprep.mubr.f32.mxu0 %v7359_v45 }
 0x702   : > { %4529 = vmatprep.subr.mxu0 %v4293_v36  ;;  %v4294_v39 = vsub.f32 %v4292_v47, %v4293_v36  ;;  %v4301_v46 = vand.u32 4294901760, %v4300_v51 }
 0x704   : > { %4414 = vmatmul.mubr.f32.vlgmr.msra.gmra.mxu0 %v4251_v1  ;;  %v4295_v9 = vand.u32 4294901760, %v4294_v39 }
 0x705   : > { %4533 = vmatpush1.msra.mxu0 %v4299_v49  ;;  %4566 = vmatprep.mubr.f32.mxu0 %v7359_v45 }
 0x706   : > { %4682 = vmatprep.subr.mxu0 %v4681_v55  ;;  %4296 = vmatprep.subr.mxu1 %v4295_v9 }
 0x707   : > { %4302 = vmatpush1.msra.mxu1 %v4301_v46 }
 0x708   : > { %4337 = vmatmul.mubr.f32.vlgmr.msra.gmra.mxu1 %v7082_v38  ;;  %4451 = vmatprep.subr.mxu1 %v4213_v14 }
 0x709   : > { %4568 = vmatmul.mubr.f32.vlgmr.msra.gmra.mxu0 %v7082_v38  ;;  %4453 = vmatpush1.msra.mxu1 %v4215_v16 }
 0x70a   : > { %4684 = vmatpush1.msra.mxu0 %v4683_v34  ;;  %4605 = vmatprep.subr.mxu1 %v4213_v14 }
 0x70b   : > { %4843 = vmatprep.subr.mxu0 %v4760_v50  ;;  %4486 = vmatprep.mubr.f32.mxu1 %v7359_v45 }
 0x70c   : > { %4717 = vmatprep.mubr.f32.mxu0 %v7359_v45  ;;  %4490 = vmatmul.mubr.f32.vlgmr.msra.gmra.mxu1 %v4252_v60 }
 0x70d   : > { %4607 = vmatpush1.msra.mxu1 %v4215_v16  ;;  %4723 = vmatmul.mubr.f32.vlgmr.msra.gmra.mxu0 %v4722_v7 }
 0x70e   : > { %4846 = vmatpush1.msra.mxu0 %v4766_v6  ;;  %4764 = vmatprep.subr.mxu1 %v4763_v4  ;;  %v5120_v4 = vpop.permute.xlu1 %5119 }
 0x70f   : > { %4997 = vmatprep.subr.mxu0 %v4761_v20  ;;  %4640 = vmatprep.mubr.f32.mxu1 %v7359_v45 }
 0x710   : > { %4879 = vmatprep.mubr.f32.mxu0 %v7359_v45  ;;  %4642 = vmatmul.mubr.f32.vlgmr.msra.gmra.mxu1 %v7082_v38 }
 0x711   : > { %4770 = vmatpush1.msra.mxu1 %v4769_v23  ;;  %4882 = vmatmul.mubr.f32.vlgmr.msra.gmra.mxu0 %v7093_v37 }
 0x712   : > { %5001 = vmatpush1.msra.mxu0 %v4767_v26  ;;  %4919 = vmatprep.subr.mxu1 %v4681_v55 }
 0x713   : > { %4803 = vmatprep.mubr.f32.mxu1 %v7359_v45  ;;  %5034 = vmatprep.mubr.f32.mxu0 %v7359_v45 }
 0x714   : > { %4805 = vmatmul.mubr.f32.vlgmr.msra.gmra.mxu1 %v7089_v35 }
 0x715   : > { %4921 = vmatpush1.msra.mxu1 %v4683_v34  ;;  %4954 = vmatprep.mubr.f32.mxu1 %v7359_v45 }
 0x716   : > { %5073 = vmatprep.subr.mxu1 %v4681_v55  ;;  %5036 = vmatmul.mubr.f32.vlgmr.msra.gmra.mxu0 %v7089_v35 }
 0x717   : > { %5424 = vmatprep.mubr.f32.mxu0 %v7359_v45 }
 0x718   : > { %4958 = vmatmul.mubr.f32.vlgmr.msra.gmra.mxu1 %v4720_v0 }
 0x719   : > { %5075 = vmatpush1.msra.mxu1 %v4683_v34  ;;  %5108 = vmatprep.mubr.f32.mxu1 %v7359_v45 }
 0x71c   : > { %5110 = vmatmul.mubr.f32.vlgmr.msra.gmra.mxu1 %v7089_v35 }
 0x71d   : > { %5510 = vmatprep.mubr.f32.mxu1 %v7359_v45 }
 0x7c0   : > { %v4256_v38 = vpop.f32.mrf.mxu0 }
 0x7c2   : > { %v4258_v1 = vpop.f32.mrf.mxu0 }
 0x7c4   : > { %v4415_v8 = vpop.f32.mrf.mxu0 }
 0x7c6   : > { %v4417_v11 = vpop.f32.mrf.mxu0 }
 0x7c8   : > { %v4338_v19 = vpop.f32.mrf.mxu1 }
 0x7c9   : > { %v4339_v60 = vadd.f32 %v4338_v19, %v4256_v38  ;;  %v4569_v30 = vpop.f32.mrf.mxu0 }
 0x7ca   : > { %v4340_v40 = vpop.f32.mrf.mxu1 }
 0x7cb   : > { %v4416_v3 = vadd.f32 %v4415_v8, %v4339_v60  ;;  %v4341_v57 = vadd.f32 %v4340_v40, %v4258_v1  ;;  %v4571_v17 = vpop.f32.mrf.mxu0  ;;  %v5934_v60 = vld [vmem:[%s7262_s22 + $0x40] sm:$0xff]  ;;  %v5195_v40 = vpop.permute.xlu0 %5194 }
 0x7cc   : > { %v4491_v44 = vpop.f32.mrf.mxu1 }
 0x7cd   : > { %v4418_v18 = vadd.f32 %v4417_v11, %v4341_v57  ;;  %v4492_v33 = vadd.f32 %v4491_v44, %v4416_v3  ;;  %v4724_v62 = vpop.f32.mrf.mxu0  ;;  %v5202_v3 = vpop.permute.xlu1 %5201 }
 0x7ce   : > { %v4493_v24 = vpop.f32.mrf.mxu1 }
 0x7cf   : > { %v4570_v16 = vadd.f32 %v4569_v30, %v4492_v33  ;;  %v4494_v35 = vadd.f32 %v4493_v24, %v4418_v18  ;;  %v4726_v14 = vpop.f32.mrf.mxu0  ;;  %v5349_v30 = vld [vmem:[%s7265_s25] sm:$0xff]  ;;  %v5211_v57 = vpop.permute.xlu0 %5210 }
 0x7d0   : > { %v4643_v43 = vpop.f32.mrf.mxu1 }
 0x7d1   : > { %v4572_v48 = vadd.f32 %v4571_v17, %v4494_v35  ;;  %v4644_v27 = vadd.f32 %v4643_v43, %v4570_v16  ;;  %v4883_v37 = vpop.f32.mrf.mxu0  ;;  %v5222_v17 = vpop.permute.xlu1 %5221 }
 0x7d2   : > { %v4645_v55 = vpop.f32.mrf.mxu1 }
 0x7d3   : > { %v4725_v47 = vadd.f32 %v4724_v62, %v4644_v27  ;;  %v4646_v49 = vadd.f32 %v4645_v55, %v4572_v48  ;;  %v4885_v51 = vpop.f32.mrf.mxu0  ;;  %v5233_v44 = vpop.permute.xlu0 %5232 }
 0x7d4   : > { %v4806_v2 = vpop.f32.mrf.mxu1 }
 0x7d5   : > { %v4727_v34 = vadd.f32 %v4726_v14, %v4646_v49  ;;  %v4807_v36 = vadd.f32 %v4806_v2, %v4725_v47  ;;  %v5244_v18 = vpop.permute.xlu1 %5243 }
 0x7d6   : > { %v4808_v50 = vpop.f32.mrf.mxu1  ;;  %v5037_v46 = vpop.f32.mrf.mxu0 }
 0x7d7   : > { %v4884_v0 = vadd.f32 %v4883_v37, %v4807_v36  ;;  %v4809_v39 = vadd.f32 %v4808_v50, %v4727_v34  ;;  %v7161_v33 = vpop.permute.xlu0 %5254 }
 0x7d8   : > { %v4959_v6 = vpop.f32.mrf.mxu1  ;;  %v5039_v23 = vpop.f32.mrf.mxu0 }
 0x7d9   : > { %v4886_v9 = vadd.f32 %v4885_v51, %v4809_v39  ;;  %v4960_v20 = vadd.f32 %v4959_v6, %v4884_v0  ;;  %v7163_v62 = vpop.permute.xlu1 %5265 }
 0x7da   : > { %v4961_v42 = vpop.f32.mrf.mxu1 }
 0x7db   : > { %v5038_v26 = vadd.f32 %v5037_v46, %v4960_v20  ;;  %v4962_v61 = vadd.f32 %v4961_v42, %v4886_v9  ;;  %v7165_v24 = vpop.permute.xlu0 %5276 }
 0x7dc   : > { %v5111_v7 = vpop.f32.mrf.mxu1 }
 0x7dd   : > { %v5112_v59 = vadd.f32 %v5111_v7, %v5038_v26  ;;  %v5040_v38 = vadd.f32 %v5039_v23, %v4962_v61 }
 0x7de   : > { %v5113_v8 = vpop.f32.mrf.mxu1 }
 0x7df   : > { %v7119_v1 = vadd.f32 %v5120_v4, %v5112_v59  ;;  %v5114_v11 = vadd.f32 %v5113_v8, %v5040_v38 }
 0x7e1   : > { %5140 = vrot.lane.b32.xlu0 %v7119_v1, %s7388_s6  ;;  %5124 = vrot.lane.b32.xlu1 %v7119_v1, %s7375_s29  ;;  %v7129_v19 = vadd.f32 %v5120_v4, %v5114_v11 }
 0x7e5   : > { %5166 = vrot.lane.b32.xlu0 %v7119_v1, %s7380_s10  ;;  %5132 = vrot.lane.b32.xlu1 %v7119_v1, %s7377_s9 }
 0x7e9   : > { %5126 = vrot.lane.b32.xlu0 %v7129_v19, %s7375_s29  ;;  %5148 = vrot.lane.b32.xlu1 %v7119_v1, %s7379_s2 }
 0x7ed   : > { %5134 = vrot.lane.b32.xlu0 %v7129_v19, %s7377_s9  ;;  %5158 = vrot.lane.b32.xlu1 %v7119_v1, %s7376_s28 }
 0x7f1   : > { %5150 = vrot.lane.b32.xlu0 %v7129_v19, %s7379_s2  ;;  %5174 = vrot.lane.b32.xlu1 %v7119_v1, %s7378_s3 }
 0x7f5   : > { %5160 = vrot.lane.b32.xlu0 %v7129_v19, %s7376_s28  ;;  %5142 = vrot.lane.b32.xlu1 %v7129_v19, %s7388_s6  ;;  %s811_s6 = scalar_lea.vmem %s7266_s26, %s6163_s1 }
 0x7f9   : > { %5176 = vrot.lane.b32.xlu0 %v7129_v19, %s7378_s3  ;;  %5287 = vperm.xlu1 %5959, %v5934_v60  }
 0x7fd   : > { %5182 = vrot.lane.b32.xlu0 %v7119_v1, %s7381_s30  ;;  %5168 = vrot.lane.b32.xlu1 %v7129_v19, %s7380_s10 }
 0x801   : > { %5352 = vperm.xlu0 %5958, %v5349_v30   ;;  %5184 = vrot.lane.b32.xlu1 %v7129_v19, %s7381_s30 }
 0x853   : > { %v5141_v16 = vpop.permute.xlu0 %5140  ;;  %v5125_v35 = vpop.permute.xlu1 %5124 }
 0x857   : > { %v5167_v14 = vpop.permute.xlu0 %5166  ;;  %v5133_v43 = vpop.permute.xlu1 %5132 }
 0x85b   : > { %v5127_v48 = vpop.permute.xlu0 %5126  ;;  %v5149_v27 = vpop.permute.xlu1 %5148 }
 0x85c   : > { %v5128_v47 = vsel %vm1470_vm9, %v5125_v35, %v5127_v48  ;;  %v5129_v49 = vsel %vm1470_vm9, %v5127_v48, %v5125_v35 }
 0x85d   : > { %v5130_v50 = vmul.f32 %v5129_v49, %v6532_v54  ;;  %v5131_v51 = vmul.f32 %v5128_v47, %v6551_v10 }
 0x85f   : > { %v5159_v55 = vpop.permute.xlu1 %5158  ;;  %v5135_v37 = vpop.permute.xlu0 %5134  ;;  %v5197_v20 = vmul.f32 %v5195_v40, %v5130_v50  ;;  %v5198_v46 = vmul.f32 %v5195_v40, %v5131_v51 }
 0x860   : > { %v5136_v2 = vsel %vm1499_vm8, %v5133_v43, %v5135_v37  ;;  %v5137_v34 = vsel %vm1499_vm8, %v5135_v37, %v5133_v43 }
 0x861   : > { %v5138_v0 = vmul.f32 %v5137_v34, %v6451_v31  ;;  %v5139_v39 = vmul.f32 %v5136_v2, %v6490_v29  ;;  %v5204_v59 = vadd.f32 %v5202_v3, %v5197_v20  ;;  %v5205_v4 = vadd.f32 %v5202_v3, %v5198_v46 }
 0x863   : > { %v5175_v36 = vpop.permute.xlu1 %5174  ;;  %v5151_v6 = vpop.permute.xlu0 %5150  ;;  %v5213_v7 = vmul.f32 %v5211_v57, %v5138_v0  ;;  %v5214_v10 = vmul.f32 %v5211_v57, %v5139_v39  ;;  %v5156_v57 = vmul.f32 %v7119_v1, %v6303_v13 }
 0x864   : > { %v5152_v31 = vsel %vm1559_vm5, %v5149_v27, %v5151_v6  ;;  %v5153_v29 = vsel %vm1559_vm5, %v5151_v6, %v5149_v27 }
 0x865   : > { %v5215_v11 = vadd.f32 %v5213_v7, %v5204_v59  ;;  %v5216_v60 = vadd.f32 %v5214_v10, %v5205_v4  ;;  %v5154_v30 = vmul.f32 %v5153_v29, %v6390_v53  ;;  %v5246_v37 = vmul.f32 %v5244_v18, %v5156_v57 }
 0x867   : > { %v5143_v9 = vpop.permute.xlu1 %5142  ;;  %v5161_v8 = vpop.permute.xlu0 %5160  ;;  %v5235_v35 = vmul.f32 %v5233_v44, %v5154_v30 }
 0x868   : > { %v5144_v42 = vsel %vm1529_vm7, %v5141_v16, %v5143_v9  ;;  %v5145_v26 = vsel %vm1529_vm7, %v5143_v9, %v5141_v16  ;;  %v5157_v16 = vmul.f32 %v7129_v19, %v6300_v12  ;;  %v5162_v3 = vsel %vm1606_vm4, %v5159_v55, %v5161_v8 }
 0x869   : > { %v5146_v61 = vmul.f32 %v5145_v26, %v6439_v21  ;;  %v5147_v54 = vmul.f32 %v5144_v42, %v6442_v22  ;;  %v5155_v21 = vmul.f32 %v5152_v31, %v6396_v56  ;;  %v5164_v49 = vmul.f32 %v5162_v3, %v6369_v41 }
 0x86a   : > { %v5247_v47 = vmul.f32 %v5244_v18, %v5157_v16 }
 0x86b   : > { %v5224_v23 = vmul.f32 %v5222_v17, %v5146_v61  ;;  %v5225_v38 = vmul.f32 %v5222_v17, %v5147_v54  ;;  %v5236_v43 = vmul.f32 %v5233_v44, %v5155_v21  ;;  %v5163_v17 = vsel %vm1606_vm4, %v5161_v8, %v5159_v55  ;;  %v5177_v48 = vpop.permute.xlu0 %5176 }
 0x86c   : > { %v5165_v13 = vmul.f32 %v5163_v17, %v6387_v52  ;;  %v5178_v12 = vsel %vm1666_vm2, %v5175_v36, %v5177_v48  ;;  %v5179_v1 = vsel %vm1666_vm2, %v5177_v48, %v5175_v36  ;;  %v5257_v52 = vmul.f32 %v7161_v33, %v5164_v49 }
 0x86d   : > { %v5226_v22 = vadd.f32 %v5224_v23, %v5215_v11  ;;  %v5227_v40 = vadd.f32 %v5225_v38, %v5216_v60  ;;  %v5180_v55 = vmul.f32 %v5178_v12, %v6345_v32  ;;  %v5181_v34 = vmul.f32 %v5179_v1, %v7382_v28 }
 0x86e   : > { %v5258_v50 = vmul.f32 %v7161_v33, %v5165_v13 }
 0x86f   : > { %v5237_v53 = vadd.f32 %v5235_v35, %v5226_v22  ;;  %v5238_v27 = vadd.f32 %v5236_v43, %v5227_v40  ;;  %v5183_v0 = vpop.permute.xlu0 %5182  ;;  %v5279_v20 = vmul.f32 %v7165_v24, %v5180_v55 }
 0x871   : > { %v5248_v19 = vadd.f32 %v5246_v37, %v5237_v53  ;;  %v5249_v44 = vadd.f32 %v5247_v47, %v5238_v27 }
 0x873   : > { %v5259_v39 = vadd.f32 %v5257_v52, %v5248_v19  ;;  %v5260_v6 = vadd.f32 %v5258_v50, %v5249_v44 }
 0x874   : > { %v5288_v56 = vpop.permute.xlu1 %5287 }
 0x878   : > { %v5169_v2 = vpop.permute.xlu1 %5168 }
 0x879   : > { %v5170_v18 = vsel %vm1636_vm3, %v5167_v14, %v5169_v2  ;;  %v5171_v41 = vsel %vm1636_vm3, %v5169_v2, %v5167_v14  ;;  %v5280_v14 = vmul.f32 %v7165_v24, %v5181_v34 }
 0x87a   : > { %v5172_v51 = vmul.f32 %v5170_v18, %v7383_v58  ;;  %v5173_v36 = vmul.f32 %v5171_v41, %v7384_v25 }
 0x87c   : > { %v5268_v32 = vmul.f32 %v7163_v62, %v5172_v51  ;;  %v5269_v28 = vmul.f32 %v7163_v62, %v5173_v36  ;;  %v5185_v9 = vpop.permute.xlu1 %5184 }
 0x87d   : > { %v5186_v46 = vsel %vm1696_vm1, %v5183_v0, %v5185_v9  ;;  %v5187_v58 = vsel %vm1696_vm1, %v5185_v9, %v5183_v0 }
 0x87e   : > { %v5270_v33 = vadd.f32 %v5268_v32, %v5259_v39  ;;  %v5271_v25 = vadd.f32 %v5269_v28, %v5260_v6  ;;  %v5188_v42 = vmul.f32 %v5186_v46, %v7385_v5  ;;  %v5189_v26 = vmul.f32 %v5187_v58, %v7386_v63 }
 0x880   : > { %v5281_v61 = vadd.f32 %v5279_v20, %v5270_v33  ;;  %v5282_v54 = vadd.f32 %v5280_v14, %v5271_v25  ;;  %v5290_v62 = vmul.f32 %v5288_v56, %v5188_v42  ;;  %v5291_v7 = vmul.f32 %v5288_v56, %v5189_v26  ;;  %v5348_v56 = vld [vmem:[%s7264_s24] sm:$0xff] }
 0x881   : > { %v5356_v13 = vsel %vm939_vm0, %v5348_v56, 0 }
 0x882   : > { %v5292_v10 = vadd.f32 %v5290_v62, %v5281_v61  ;;  %v5293_v31 = vadd.f32 %v5291_v7, %v5282_v54  ;;  %v5425_v44 = vand.u32 4294901760, %v5356_v13 }
 0x884   : > { %v5296_v29 = vmul.f32 0.70710677, %v5292_v10  ;;  %v5297_v24 = vmul.f32 0.70710677, %v5293_v31  ;;  %v5426_v50 = vsub.f32 %v5356_v13, %v5425_v44  ;;  %v5294_v9 = vmul.f32 0.5, %v5292_v10 }
 0x885   : > { %v5295_v46 = vmul.f32 0.5, %v5293_v31 }
 0x886   : > { %v5298_v59 = vand.u32 2147483647, %v5296_v29  ;;  %v5299_v4 = vand.u32 2147483647, %v5297_v24  ;;  %v5427_v6 = vand.u32 4294901760, %v5426_v50  ;;  %vm5338_vm10 = vcmp.ge.f32.partialorder %v5296_v29, 0.0 }
 0x887   : > { %vm5339_vm11 = vcmp.ge.f32.partialorder %v5297_v24, 0.0 }
 0x888   : > { %v5300_v23 = vmul.f32 0.3275911, %v5298_v59  ;;  %v5301_v38 = vmul.f32 0.3275911, %v5299_v4  ;;  %v5326_v11 = vsub.f32 0.0, %v5298_v59  ;;  %v5327_v5 = vsub.f32 0.0, %v5299_v4 }
 0x889   : > { %v5428_v33 = vsub.f32 %v5426_v50, %v5427_v6 }
 0x88a   : > { %v5302_v15 = vadd.f32 1.0, %v5300_v23  ;;  %v5303_v8 = vadd.f32 1.0, %v5301_v38  ;;  %v5328_v60 = vmul.f32 %v5326_v11, %v5298_v59  ;;  %v5329_v63 = vmul.f32 %v5327_v5, %v5299_v4 }
 0x88b   : > { %v5429_v54 = vand.u32 4294901760, %v5428_v33 }
 0x88c   : > { %5980 = vrcp.f32 %v5302_v15  ;;  %v5330_v22 = vmul.f32 1.442695, %v5328_v60  ;;  %v5332_v57 = vmul.f32 1.442695, %v5329_v63 }
 0x88d   : > { %5982 = vrcp.f32 %v5303_v8  ;;  %v5353_v8 = vpop.permute.xlu0 %5352 }
 0x88e   : > { %5984 = vpow2.f32 %v5330_v22 }
 0x88f   : > { %5986 = vpow2.f32 %v5332_v57 }
 0x899   : > { %v5981_v30 = vpop.eup %5980 }
 0x89a   : > { %v5983_v21 = vpop.eup %5982  ;;  %v5308_v40 = vmul.f32 1.0614054, %v5981_v30 }
 0x89b   : > { %v5309_v16 = vmul.f32 1.0614054, %v5983_v21  ;;  %v5985_v34 = vpop.eup %5984 }
 0x89c   : > { %v5310_v35 = vadd.f32 -1.4531521, %v5308_v40  ;;  %v5987_v41 = vpop.eup %5986 }
 0x89d   : > { %v5311_v43 = vadd.f32 -1.4531521, %v5309_v16 }
 0x89e   : > { %v5312_v3 = vmul.f32 %v5981_v30, %v5310_v35 }
 0x89f   : > { %v5313_v17 = vmul.f32 %v5983_v21, %v5311_v43 }
 0x8a0   : > { %v5314_v48 = vadd.f32 1.4214138, %v5312_v3 }
 0x8a1   : > { %v5315_v53 = vadd.f32 1.4214138, %v5313_v17 }
 0x8a2   : > { %v5316_v27 = vmul.f32 %v5981_v30, %v5314_v48 }
 0x8a3   : > { %v5317_v37 = vmul.f32 %v5983_v21, %v5315_v53 }
 0x8a4   : > { %v5318_v47 = vadd.f32 -0.28449672, %v5316_v27 }
 0x8a5   : > { %v5319_v49 = vadd.f32 -0.28449672, %v5317_v37 }
 0x8a6   : > { %v5320_v12 = vmul.f32 %v5981_v30, %v5318_v47 }
 0x8a7   : > { %v5321_v1 = vmul.f32 %v5983_v21, %v5319_v49 }
 0x8a8   : > { %v5322_v19 = vadd.f32 0.2548296, %v5320_v12 }
 0x8a9   : > { %v5323_v2 = vadd.f32 0.2548296, %v5321_v1 }
 0x8aa   : > { %v5324_v55 = vmul.f32 %v5981_v30, %v5322_v19 }
 0x8ab   : > { %v5325_v18 = vmul.f32 %v5983_v21, %v5323_v2 }
 0x8ac   : > { %v5334_v52 = vmul.f32 %v5985_v34, %v5324_v55 }
 0x8ad   : > { %v5335_v51 = vmul.f32 %v5987_v41, %v5325_v18 }
 0x8ae   : > { %v5336_v36 = vsub.f32 1.0, %v5334_v52 }
 0x8af   : > { %v5337_v0 = vsub.f32 1.0, %v5335_v51 }
 0x8b0   : > { %v5340_v39 = vsub.f32 0.0, %v5336_v36 }
 0x8b1   : > { %v5341_v32 = vsub.f32 0.0, %v5337_v0 }
 0x8b2   : > { %v5342_v28 = vsel %vm5338_vm10, %v5336_v36, %v5340_v39 }
 0x8b3   : > { %v5343_v20 = vsel %vm5339_vm11, %v5337_v0, %v5341_v32  ;;  %v5344_v14 = vadd.f32 1.0, %v5342_v28 }
 0x8b4   : > { %v5345_v58 = vadd.f32 1.0, %v5343_v20 }
 0x8b5   : > { %v5346_v25 = vmul.f32 %v5344_v14, %v5294_v9 }
 0x8b6   : > { %v5347_v42 = vmul.f32 %v5345_v58, %v5295_v46 }
 0x8b7   : > { %v5390_v26 = vand.u32 4294901760, %v5346_v25 }
 0x8b8   : > { %v5388_v61 = vand.u32 4294901760, %v5347_v42 }
 0x8b9   : > { %v5473_v62 = vsub.f32 %v5346_v25, %v5390_v26 }
 0x8ba   : > { %5389 = vmatprep.subr.mxu0 %v5388_v61  ;;  %v5467_v7 = vsub.f32 %v5347_v42, %v5388_v61 }
 0x8bb   : > { %5391 = vmatpush1.msra.mxu0 %v5390_v26  ;;  %v5474_v59 = vand.u32 4294901760, %v5473_v62 }
 0x8bc   : > { %5430 = vmatmul.mubr.f32.vlgmr.msra.gmra.mxu0 %v5429_v54  ;;  %5550 = vmatprep.subr.mxu0 %v5467_v7  ;;  %v5468_v29 = vand.u32 4294901760, %v5467_v7 }
 0x8bd   : > { %5553 = vmatpush1.msra.mxu0 %v5473_v62  ;;  %5586 = vmatprep.mubr.f32.mxu0 %v7359_v45  ;;  %v5475_v10 = vsub.f32 %v5473_v62, %v5474_v59 }
 0x8be   : > { %5704 = vmatprep.subr.mxu0 %v5468_v29  ;;  %v5469_v31 = vsub.f32 %v5467_v7, %v5468_v29 }
 0x8bf   : > { %v5476_v24 = vand.u32 4294901760, %v5475_v10 }
 0x8c0   : > { %5589 = vmatmul.mubr.f32.vlgmr.msra.gmra.mxu0 %v5426_v50  ;;  %v5470_v4 = vand.u32 4294901760, %v5469_v31 }
 0x8c1   : > { %5708 = vmatpush1.msra.mxu0 %v5474_v59  ;;  %5741 = vmatprep.mubr.f32.mxu0 %v7359_v45 }
 0x8c2   : > { %5471 = vmatprep.subr.mxu1 %v5470_v4 }
 0x8c3   : > { %5477 = vmatpush1.msra.mxu1 %v5476_v24 }
 0x8c4   : > { %5512 = vmatmul.mubr.f32.vlgmr.msra.gmra.mxu1 %v5425_v44  ;;  %5626 = vmatprep.subr.mxu1 %v5388_v61 }
 0x8c5   : > { %5628 = vmatpush1.msra.mxu1 %v5390_v26  ;;  %5661 = vmatprep.mubr.f32.mxu1 %v7359_v45 }
 0x8c6   : > { %5780 = vmatprep.subr.mxu1 %v5388_v61  ;;  %5743 = vmatmul.mubr.f32.vlgmr.msra.gmra.mxu0 %v5425_v44 }
 0x8c8   : > { %5665 = vmatmul.mubr.f32.vlgmr.msra.gmra.mxu1 %v5427_v6 }
 0x8c9   : > { %5782 = vmatpush1.msra.mxu1 %v5390_v26  ;;  %5815 = vmatprep.mubr.f32.mxu1 %v7359_v45 }
 0x8cc   : > { %5817 = vmatmul.mubr.f32.vlgmr.msra.gmra.mxu1 %v5425_v44 }
 0x97c   : > { %v5431_v23 = vpop.f32.mrf.mxu0 }
 0x97d   : > { %v5432_v11 = vadd.f32 %v5431_v23, %v5353_v8 }
 0x97e   : > { %v5433_v38 = vpop.f32.mrf.mxu0 }
 0x97f   : > { %v5434_v63 = vadd.f32 %v5433_v38, %v5353_v8 }
 0x980   : > { %v5590_v15 = vpop.f32.mrf.mxu0 }
 0x982   : > { %v5592_v60 = vpop.f32.mrf.mxu0 }
 0x984   : > { %v5513_v5 = vpop.f32.mrf.mxu1 }
 0x985   : > { %v5514_v30 = vadd.f32 %v5513_v5, %v5432_v11 }
 0x986   : > { %v5515_v21 = vpop.f32.mrf.mxu1  ;;  %v5744_v16 = vpop.f32.mrf.mxu0 }
 0x987   : > { %v5516_v22 = vadd.f32 %v5515_v21, %v5434_v63  ;;  %v5591_v40 = vadd.f32 %v5590_v15, %v5514_v30 }
 0x988   : > { %v5666_v57 = vpop.f32.mrf.mxu1  ;;  %v5746_v48 = vpop.f32.mrf.mxu0 }
 0x989   : > { %v5593_v35 = vadd.f32 %v5592_v60, %v5516_v22  ;;  %v5667_v43 = vadd.f32 %v5666_v57, %v5591_v40 }
 0x98a   : > { %v5668_v3 = vpop.f32.mrf.mxu1 }
 0x98b   : > { %v5669_v45 = vadd.f32 %v5668_v3, %v5593_v35  ;;  %v5745_v17 = vadd.f32 %v5744_v16, %v5667_v43 }
 0x98c   : > { %v5818_v53 = vpop.f32.mrf.mxu1 }
 0x98d   : > { %v5747_v27 = vadd.f32 %v5746_v48, %v5669_v45  ;;  %v5819_v56 = vadd.f32 %v5818_v53, %v5745_v17 }
 0x98e   : > { %v5820_v37 = vpop.f32.mrf.mxu1 }
 0x98f   : > { %5823 = vst [vmem:[%s811_s6] sm:$0xff] %v5819_v56  ;;  %v5821_v47 = vadd.f32 %v5820_v37, %v5747_v27 }
 0x991   : > { %5824 = vst [vmem:[%s811_s6 + $0x8] sm:$0xff] %v5821_v47 }
 0x992 PF: > { %s36_s27 = sadd.s32 1, %s5994_s27  }
 0x993   : > { %p33_p4 = scmp.ge.s32.totalorder %s36_s27, 4  }
 0x995   :  { %35 = sbr.rel (!%p33_p4) target bundleno = 19 (0x13), region = 181 }

</bundles_post_ra>
